<compile_context>
chip_gen: v7x
topology: tpu7x:2x2x1
jax: 0.10.0
libtpu: 0.0.40
codegen_flags: <defaults>
</compile_context>

<pallas_src>
import functools
import math

import jax
import jax.numpy as jnp
from jax.experimental import pallas as pl
from jax.experimental.pallas import tpu as pltpu


# --------------------------------------------------------------------------
# Per-generation VMEM budget (review: 64-96 MiB on v5e/v6e, <=48 MiB on v7x)
# --------------------------------------------------------------------------
_VMEM_BUDGET_CACHE = None


def _vmem_budget():
    global _VMEM_BUDGET_CACHE
    if _VMEM_BUDGET_CACHE is None:
        try:
            cap = int(pltpu.get_tpu_info().vmem_capacity_bytes)
        except Exception:
            cap = 64 * 1024 * 1024          # unknown chip -> v7x-safe fallback
        _VMEM_BUDGET_CACHE = max(32 * 1024 * 1024,
                                 min(cap * 3 // 4, 96 * 1024 * 1024))
    return _VMEM_BUDGET_CACHE


# --------------------------------------------------------------------------
# Fused ConvTranspose1d + linear interpolation (factored, O(L*K) operator)
# --------------------------------------------------------------------------
def _linear_interp_matrix(lo, li):
    """F.interpolate(mode='linear', align_corners=False) as a (lo, li) operator."""
    o = jnp.arange(lo, dtype=jnp.float32)
    src = jnp.clip((o + 0.5) * (li / lo) - 0.5, 0.0, li - 1)
    i0 = jnp.floor(src).astype(jnp.int32)
    i1 = jnp.minimum(i0 + 1, li - 1)
    w1 = src - i0.astype(jnp.float32)
    m = jnp.zeros((lo, li), jnp.float32)
    m = m.at[jnp.arange(lo), i0].add(1.0 - w1)
    m = m.at[jnp.arange(lo), i1].add(w1)
    return m


def _build_upsample_operators(convt_w, convt_b, lx, lenc, stride, padding):
    """Per-tap factorisation of ConvTranspose1d(stride, padding) + interpolation:
       xi[b] = sum_t A_t @ x[b] @ W_t + bias,  A_t (Lenc, Lx), W_t (Cin, Cout)."""
    cin, cout, k = convt_w.shape
    lout = (lx - 1) * stride - 2 * padding + k
    m_interp = _linear_interp_matrix(lenc, lout)                  # (Lenc, Lout)
    o_pos = (jnp.arange(lx)[None, :] * stride
             + jnp.arange(k)[:, None] - padding)                  # (K, Lx)
    valid = (o_pos >= 0) & (o_pos < lout)
    o_clip = jnp.clip(o_pos, 0, lout - 1)
    # A[q, t, i] = interp weight of convT output position i*stride + t - padding
    a = m_interp[:, o_clip] * valid[None, :, :].astype(jnp.float32)   # (Lenc, K, Lx)
    a_t = jnp.transpose(a, (1, 0, 2))                                 # (K, Lenc, Lx)
    w_t = jnp.transpose(convt_w, (2, 0, 1))                           # (K, Cin, Cout)
    # interpolation rows sum to 1 -> ConvTranspose bias passes through unchanged
    bias_row = convt_b[None, :]                                       # (1, Cout)
    return a_t, w_t, bias_row


def _upsample_kernel(x_ref, a_ref, w_ref, b_ref, o_ref, *, kconv):
    x = x_ref[0]                                       # (Lx, Cin) bf16
    lenc, cout = o_ref.shape[1], o_ref.shape[2]
    acc = jnp.zeros((lenc, cout), jnp.float32)
    for t in range(kconv):                             # K = 2*pool, small & static
        yt = jnp.dot(a_ref[t], x, preferred_element_type=jnp.float32)   # (Lenc, Cin)
        acc = acc + jnp.dot(yt.astype(jnp.bfloat16), w_ref[t],
                            preferred_element_type=jnp.float32)          # (Lenc, Cout)
    o_ref[0] = (acc + b_ref[...]).astype(o_ref.dtype)


def upsample_interpolate(x, prepared):
    """x: (B, Lx, Cin) -> (B, Lenc, Cout) bf16 via the factored upsample kernel."""
    b, lx, cin = x.shape
    a_t, w_t, bias = prepared['up_a'], prepared['up_w'], prepared['up_b']
    k, lenc, _ = a_t.shape
    cout = w_t.shape[-1]
    kern = functools.partial(_upsample_kernel, kconv=k)
    return pl.pallas_call(
        kern,
        out_shape=jax.ShapeDtypeStruct((b, lenc, cout), jnp.bfloat16),
        grid=(b,),
        in_specs=[pl.BlockSpec((1, lx, cin), lambda i: (i, 0, 0)),
                  pl.BlockSpec((k, lenc, lx), lambda i: (0, 0, 0)),
                  pl.BlockSpec((k, cin, cout), lambda i: (0, 0, 0)),
                  pl.BlockSpec((1, cout), lambda i: (0, 0))],
        out_specs=pl.BlockSpec((1, lenc, cout), lambda i: (i, 0, 0)),
        compiler_params=pltpu.CompilerParams(
            dimension_semantics=("parallel",),
            vmem_limit_bytes=_vmem_budget()),
    )(x.astype(jnp.bfloat16), a_t, w_t, bias)


# --------------------------------------------------------------------------
# TransformerDecoderLayer (post-norm, batch_first, dropout=0, ReLU FFN) kernel
# --------------------------------------------------------------------------
def _layernorm(x2, g, b, eps=1e-5):
    mu = jnp.mean(x2, axis=-1, keepdims=True)
    xc = x2 - mu
    var = jnp.mean(xc * xc, axis=-1, keepdims=True)
    return xc * jax.lax.rsqrt(var + eps) * g + b


def _mha(x_rows, kv_rows, wqkv_ref, bqkv_ref, wo_ref, bo_ref, hmask_ref,
         *, num_heads, n, p, m):
    """x_rows: (n*p, d) bf16, kv_rows: (n*m, d) bf16 -> (n*p, d) f32.
    Head separation via 0/1 masks over the lane dim (no sub-128-lane slicing);
    single output projection with contraction K=d."""
    d = x_rows.shape[-1]
    dh = d // num_heads
    scale = 1.0 / math.sqrt(dh)
    q = (jnp.dot(x_rows, wqkv_ref[:, 0:d], preferred_element_type=jnp.float32)
         + bqkv_ref[:, 0:d]).astype(jnp.bfloat16)
    k = (jnp.dot(kv_rows, wqkv_ref[:, d:2 * d], preferred_element_type=jnp.float32)
         + bqkv_ref[:, d:2 * d]).astype(jnp.bfloat16)
    v = (jnp.dot(kv_rows, wqkv_ref[:, 2 * d:3 * d], preferred_element_type=jnp.float32)
         + bqkv_ref[:, 2 * d:3 * d]).astype(jnp.bfloat16)
    q3 = q.reshape(n, p, d)        # leading-dim reshapes only (lane dim untouched)
    k3 = k.reshape(n, m, d)
    v3 = v.reshape(n, m, d)
    o = jnp.zeros((n, p, d), jnp.float32)
    for h in range(num_heads):
        mh = hmask_ref[h:h + 1, :]                               # (1, d) bf16 0/1
        s = jnp.einsum('npd,nmd->npm', q3 * mh, k3,
                       preferred_element_type=jnp.float32) * scale
        s = s - jnp.max(s, axis=-1, keepdims=True)
        e = jnp.exp(s)                                           # f32 softmax
        a = (e * pl.reciprocal(jnp.sum(e, axis=-1, keepdims=True),
                               approx=True)).astype(jnp.bfloat16)
        oh = jnp.einsum('npm,nmd->npd', a, v3,
                        preferred_element_type=jnp.float32)
        o = o + oh * mh.astype(jnp.float32)
    out = jnp.dot(o.reshape(n * p, d).astype(jnp.bfloat16), wo_ref[...],
                  preferred_element_type=jnp.float32) + bo_ref[...]
    return out


def _decoder_layer_kernel(tgt_ref, mem_ref,
                          wqkv_s_ref, bqkv_s_ref, wo_s_ref, bo_s_ref,
                          wqkv_c_ref, bqkv_c_ref, wo_c_ref, bo_c_ref,
                          w1_ref, b1_ref, w2_ref, b2_ref,
                          ln_g_ref, ln_b_ref, hmask_ref,
                          out_ref, *, num_heads, patch):
    x_rows = tgt_ref[...]                    # (R, d) bf16, R = tile_n * patch
    mem_rows = mem_ref[...]                  # (R, d) bf16
    r, d = x_rows.shape
    n = r // patch

    # self-attention + add & norm
    sa = _mha(x_rows, x_rows, wqkv_s_ref, bqkv_s_ref, wo_s_ref, bo_s_ref,
              hmask_ref, num_heads=num_heads, n=n, p=patch, m=patch)
    x1 = _layernorm(x_rows.astype(jnp.float32) + sa,
                    ln_g_ref[0:1, :], ln_b_ref[0:1, :])

    # cross-attention + add & norm
    ca = _mha(x1.astype(jnp.bfloat16), mem_rows, wqkv_c_ref, bqkv_c_ref,
              wo_c_ref, bo_c_ref, hmask_ref,
              num_heads=num_heads, n=n, p=patch, m=patch)
    x2 = _layernorm(x1 + ca, ln_g_ref[1:2, :], ln_b_ref[1:2, :])

    # feed-forward (ReLU) + add & norm; hidden cast to bf16 right after ReLU
    h = jnp.maximum(
        jnp.dot(x2.astype(jnp.bfloat16), w1_ref[...],
                preferred_element_type=jnp.float32) + b1_ref[...],
        0.0).astype(jnp.bfloat16)
    f = jnp.dot(h, w2_ref[...], preferred_element_type=jnp.float32) + b2_ref[...]
    x3 = _layernorm(x2 + f, ln_g_ref[2:3, :], ln_b_ref[2:3, :])

    out_ref[...] = x3.astype(out_ref.dtype)


def transformer_decoder_layer(tgt_rows, mem_rows, prepared, *, num_heads, patch,
                              tile_n=256, out_dtype=jnp.bfloat16):
    """tgt_rows/mem_rows: (R, D) token rows, patches = consecutive `patch` rows."""
    r, d = tgt_rows.shape
    n = r // patch
    tile_n_eff = max(1, min(tile_n, n))
    if tile_n_eff < n and (tile_n_eff * patch) % 8 != 0:
        tile_n_eff = n                       # keep row tiles 8-sublane aligned
    tile_r = tile_n_eff * patch
    n_pad = pl.cdiv(n, tile_n_eff) * tile_n_eff
    r_pad = n_pad * patch

    tgt_rows = tgt_rows.astype(jnp.bfloat16)
    mem_rows = mem_rows.astype(jnp.bfloat16)
    if r_pad != r:
        # zero-padded patches are independent and sliced off afterwards
        tgt_rows = jnp.pad(tgt_rows, ((0, r_pad - r), (0, 0)))
        mem_rows = jnp.pad(mem_rows, ((0, r_pad - r), (0, 0)))
    grid = (r_pad // tile_r,)

    act_spec = pl.BlockSpec((tile_r, d), lambda i: (i, 0))

    def wspec(arr):                          # resident weight (constant block index)
        zero = (0,) * arr.ndim
        return pl.BlockSpec(arr.shape, lambda i, _z=zero: _z)

    weights = (prepared['wqkv_s'], prepared['bqkv_s'],
               prepared['wo_s'], prepared['bo_s'],
               prepared['wqkv_c'], prepared['bqkv_c'],
               prepared['wo_c'], prepared['bo_c'],
               prepared['w1'], prepared['b1'],
               prepared['w2'], prepared['b2'],
               prepared['ln_g'], prepared['ln_b'],
               prepared['hmask'])

    kern = functools.partial(_decoder_layer_kernel, num_heads=num_heads, patch=patch)
    out = pl.pallas_call(
        kern,
        out_shape=jax.ShapeDtypeStruct((r_pad, d), out_dtype),
        grid=grid,
        in_specs=[act_spec, act_spec] + [wspec(w) for w in weights],
        out_specs=pl.BlockSpec((tile_r, d), lambda i: (i, 0)),
        compiler_params=pltpu.CompilerParams(
            dimension_semantics=("parallel",),
            vmem_limit_bytes=_vmem_budget()),
    )(tgt_rows, mem_rows, *weights)
    return out[:r]


# --------------------------------------------------------------------------
# One-time parameter preparation (hoisted out of the forward path)
# --------------------------------------------------------------------------
def prepare_params(params, *, lx, lenc, pool_size, num_heads):
    # TODO(synk): modules.compute_convt assumed to return (2*pool, pool//2).
    padding = pool_size // 2
    a_t, w_t, bias = _build_upsample_operators(
        params['convt_w'], params['convt_b'], lx, lenc, pool_size, padding)
    d = params['wqkv_s'].shape[0]
    dh = d // num_heads
    hmask = (jnp.arange(d)[None, :] // dh
             == jnp.arange(num_heads)[:, None]).astype(jnp.bfloat16)   # (H, D)
    bf16 = jnp.bfloat16
    return {
        'up_a': a_t.astype(bf16), 'up_w': w_t.astype(bf16), 'up_b': bias,
        'wqkv_s': params['wqkv_s'].astype(bf16), 'bqkv_s': params['bqkv_s'],
        'wo_s': params['wo_s'].astype(bf16), 'bo_s': params['bo_s'],
        'wqkv_c': params['wqkv_c'].astype(bf16), 'bqkv_c': params['bqkv_c'],
        'wo_c': params['wo_c'].astype(bf16), 'bo_c': params['bo_c'],
        'w1': params['w1'].astype(bf16), 'b1': params['b1'],
        'w2': params['w2'].astype(bf16), 'b2': params['b2'],
        'ln_g': params['ln_g'], 'ln_b': params['ln_b'],
        'hmask': hmask,
    }


# --------------------------------------------------------------------------
# Full ExpansionLayer.forward
# --------------------------------------------------------------------------
def expansion_layer_forward(x, enc, prepared, *, patch_size, num_heads, tile_n=256):
    b, lx, cin = x.shape
    _, lenc, d = enc.shape
    assert lenc % patch_size == 0            # Folder1D: non-overlapping patches

    xi = upsample_interpolate(x, prepared)                      # (B, Lenc, D) bf16

    # Folder1D.unfold: patches are consecutive groups of `patch_size` rows.
    tgt_rows = xi.reshape(b * lenc, d)
    mem_rows = enc.astype(jnp.bfloat16).reshape(b * lenc, d)

    # BatchWrapper chunking is math-identical to one full-batch kernel call.
    y_rows = transformer_decoder_layer(tgt_rows, mem_rows, prepared,
                                       num_heads=num_heads, patch=patch_size,
                                       tile_n=tile_n)

    # Folder1D.fold; return f32 to match the PyTorch module's dtype.
    return y_rows.reshape(b, lenc, d).astype(jnp.float32)


# --------------------------------------------------------------------------
# Deterministic parameter init (synthetic weights, PyTorch-equivalent shapes)
# --------------------------------------------------------------------------
def init_params(key, cin, d, pool_size):
    k = 2 * pool_size
    ks = jax.random.split(key, 10)

    def w(kk, shape, fan_in):
        return jax.random.normal(kk, shape, jnp.float32) / math.sqrt(fan_in)

    return {
        'convt_w': w(ks[0], (cin, d, k), cin * k),      # (Cin, Cout, K)
        'convt_b': 0.01 * jax.random.normal(ks[1], (d,), jnp.float32),
        'wqkv_s': w(ks[2], (d, 3 * d), d),
        'bqkv_s': jnp.zeros((1, 3 * d), jnp.float32),
        'wo_s': w(ks[3], (d, d), d),
        'bo_s': jnp.zeros((1, d), jnp.float32),
        'wqkv_c': w(ks[4], (d, 3 * d), d),
        'bqkv_c': jnp.zeros((1, 3 * d), jnp.float32),
        'wo_c': w(ks[5], (d, d), d),
        'bo_c': jnp.zeros((1, d), jnp.float32),
        'w1': w(ks[6], (d, 4 * d), d),
        'b1': jnp.zeros((1, 4 * d), jnp.float32),
        'w2': w(ks[7], (4 * d, d), 4 * d),
        'b2': jnp.zeros((1, d), jnp.float32),
        'ln_g': jnp.ones((3, d), jnp.float32),
        'ln_b': jnp.zeros((3, d), jnp.float32),
    }


if __name__ == "__main__":
    B, Cin, D = 2, 8, 32          # input_channels=8, output_channels=32
    Lx, Lenc = 10, 12             # x seq len, encoder seq len
    pool_size, patch_size, num_heads = 2, 4, 4

    key = jax.random.PRNGKey(0)
    kx, ke, kp = jax.random.split(key, 3)
    x = jax.random.normal(kx, (B, Lx, Cin), jnp.float32)
    enc = jax.random.normal(ke, (B, Lenc, D), jnp.float32)
    params = init_params(kp, Cin, D, pool_size)

    prepared = prepare_params(params, lx=Lx, lenc=Lenc,
                              pool_size=pool_size, num_heads=num_heads)
    fwd = jax.jit(functools.partial(expansion_layer_forward,
                                    patch_size=patch_size,
                                    num_heads=num_heads,
                                    tile_n=256))
    out = jax.block_until_ready(fwd(x, enc, prepared))
    assert out.shape == (B, Lenc, D)
    assert bool(jnp.all(jnp.isfinite(out)))
    print("KERNEL_OK")
</pallas_src>

<mosaic_0001>
module attributes {stable_mosaic.version = 11 : i64} {
  func.func @_upsample_kernel(%arg0: i32, %arg1: memref<1x10x8xbf16, #tpu.memory_space<vmem>>, %arg2: memref<4x12x10xbf16, #tpu.memory_space<vmem>>, %arg3: memref<4x8x32xbf16, #tpu.memory_space<vmem>>, %arg4: memref<1x32xf32, #tpu.memory_space<vmem>>, %arg5: memref<1x12x32xbf16, #tpu.memory_space<vmem>>) attributes {dimension_semantics = [#tpu.dimension_semantics<parallel>], iteration_bounds = array<i64: 2>, scalar_prefetch = 0 : i64, scratch_operands = 0 : i64, tpu.core_type = #tpu.core_type<tc>, window_params = [{transform_indices = @transform_0, window_bounds = array<i64: 1, 10, 8>}, {pipeline_mode = #tpu.pipeline_mode<synchronous>, transform_indices = @transform_1, window_bounds = array<i64: 4, 12, 10>}, {pipeline_mode = #tpu.pipeline_mode<synchronous>, transform_indices = @transform_2, window_bounds = array<i64: 4, 8, 32>}, {pipeline_mode = #tpu.pipeline_mode<synchronous>, transform_indices = @transform_3, window_bounds = array<i64: 1, 32>}, {transform_indices = @transform_4, window_bounds = array<i64: 1, 12, 32>}]} {
    %c0 = arith.constant 0 : index
    %c0_0 = arith.constant 0 : index
    %c0_1 = arith.constant 0 : index
    %0 = vector.load %arg1[%c0, %c0_0, %c0_1] : memref<1x10x8xbf16, #tpu.memory_space<vmem>>, vector<1x10x8xbf16>
    %1 = vector.shape_cast %0 : vector<1x10x8xbf16> to vector<10x8xbf16>
    %cst = arith.constant 0.000000e+00 : f32
    %2 = vector.broadcast %cst : f32 to vector<12x32xf32>
    %c0_2 = arith.constant 0 : index
    %c0_3 = arith.constant 0 : index
    %c0_4 = arith.constant 0 : index
    %3 = vector.load %arg2[%c0_2, %c0_3, %c0_4] : memref<4x12x10xbf16, #tpu.memory_space<vmem>>, vector<1x12x10xbf16>
    %4 = vector.shape_cast %3 : vector<1x12x10xbf16> to vector<12x10xbf16>
    %cst_5 = arith.constant dense<0.000000e+00> : vector<12x8xf32>
    %5 = tpu.matmul %4, %1, %cst_5 {dimension_numbers = #tpu.dot_dimension_numbers<[1], [0], [0], [1], [0, 0, 1, 1], [], []>} : vector<12x10xbf16>, vector<10x8xbf16>, vector<12x8xf32> -> vector<12x8xf32>
    %6 = arith.truncf %5 : vector<12x8xf32> to vector<12x8xbf16>
    %c0_6 = arith.constant 0 : index
    %c0_7 = arith.constant 0 : index
    %c0_8 = arith.constant 0 : index
    %7 = vector.load %arg3[%c0_6, %c0_7, %c0_8] : memref<4x8x32xbf16, #tpu.memory_space<vmem>>, vector<1x8x32xbf16>
    %8 = vector.shape_cast %7 : vector<1x8x32xbf16> to vector<8x32xbf16>
    %cst_9 = arith.constant dense<0.000000e+00> : vector<12x32xf32>
    %9 = tpu.matmul %6, %8, %cst_9 {dimension_numbers = #tpu.dot_dimension_numbers<[1], [0], [0], [1], [0, 0, 1, 1], [], []>} : vector<12x8xbf16>, vector<8x32xbf16>, vector<12x32xf32> -> vector<12x32xf32>
    %10 = arith.addf %2, %9 : vector<12x32xf32>
    %c1 = arith.constant 1 : index
    %c0_10 = arith.constant 0 : index
    %c0_11 = arith.constant 0 : index
    %11 = vector.load %arg2[%c1, %c0_10, %c0_11] : memref<4x12x10xbf16, #tpu.memory_space<vmem>>, vector<1x12x10xbf16>
    %12 = vector.shape_cast %11 : vector<1x12x10xbf16> to vector<12x10xbf16>
    %cst_12 = arith.constant dense<0.000000e+00> : vector<12x8xf32>
    %13 = tpu.matmul %12, %1, %cst_12 {dimension_numbers = #tpu.dot_dimension_numbers<[1], [0], [0], [1], [0, 0, 1, 1], [], []>} : vector<12x10xbf16>, vector<10x8xbf16>, vector<12x8xf32> -> vector<12x8xf32>
    %14 = arith.truncf %13 : vector<12x8xf32> to vector<12x8xbf16>
    %c1_13 = arith.constant 1 : index
    %c0_14 = arith.constant 0 : index
    %c0_15 = arith.constant 0 : index
    %15 = vector.load %arg3[%c1_13, %c0_14, %c0_15] : memref<4x8x32xbf16, #tpu.memory_space<vmem>>, vector<1x8x32xbf16>
    %16 = vector.shape_cast %15 : vector<1x8x32xbf16> to vector<8x32xbf16>
    %cst_16 = arith.constant dense<0.000000e+00> : vector<12x32xf32>
    %17 = tpu.matmul %14, %16, %cst_16 {dimension_numbers = #tpu.dot_dimension_numbers<[1], [0], [0], [1], [0, 0, 1, 1], [], []>} : vector<12x8xbf16>, vector<8x32xbf16>, vector<12x32xf32> -> vector<12x32xf32>
    %18 = arith.addf %10, %17 : vector<12x32xf32>
    %c2 = arith.constant 2 : index
    %c0_17 = arith.constant 0 : index
    %c0_18 = arith.constant 0 : index
    %19 = vector.load %arg2[%c2, %c0_17, %c0_18] : memref<4x12x10xbf16, #tpu.memory_space<vmem>>, vector<1x12x10xbf16>
    %20 = vector.shape_cast %19 : vector<1x12x10xbf16> to vector<12x10xbf16>
    %cst_19 = arith.constant dense<0.000000e+00> : vector<12x8xf32>
    %21 = tpu.matmul %20, %1, %cst_19 {dimension_numbers = #tpu.dot_dimension_numbers<[1], [0], [0], [1], [0, 0, 1, 1], [], []>} : vector<12x10xbf16>, vector<10x8xbf16>, vector<12x8xf32> -> vector<12x8xf32>
    %22 = arith.truncf %21 : vector<12x8xf32> to vector<12x8xbf16>
    %c2_20 = arith.constant 2 : index
    %c0_21 = arith.constant 0 : index
    %c0_22 = arith.constant 0 : index
    %23 = vector.load %arg3[%c2_20, %c0_21, %c0_22] : memref<4x8x32xbf16, #tpu.memory_space<vmem>>, vector<1x8x32xbf16>
    %24 = vector.shape_cast %23 : vector<1x8x32xbf16> to vector<8x32xbf16>
    %cst_23 = arith.constant dense<0.000000e+00> : vector<12x32xf32>
    %25 = tpu.matmul %22, %24, %cst_23 {dimension_numbers = #tpu.dot_dimension_numbers<[1], [0], [0], [1], [0, 0, 1, 1], [], []>} : vector<12x8xbf16>, vector<8x32xbf16>, vector<12x32xf32> -> vector<12x32xf32>
    %26 = arith.addf %18, %25 : vector<12x32xf32>
    %c3 = arith.constant 3 : index
    %c0_24 = arith.constant 0 : index
    %c0_25 = arith.constant 0 : index
    %27 = vector.load %arg2[%c3, %c0_24, %c0_25] : memref<4x12x10xbf16, #tpu.memory_space<vmem>>, vector<1x12x10xbf16>
    %28 = vector.shape_cast %27 : vector<1x12x10xbf16> to vector<12x10xbf16>
    %cst_26 = arith.constant dense<0.000000e+00> : vector<12x8xf32>
    %29 = tpu.matmul %28, %1, %cst_26 {dimension_numbers = #tpu.dot_dimension_numbers<[1], [0], [0], [1], [0, 0, 1, 1], [], []>} : vector<12x10xbf16>, vector<10x8xbf16>, vector<12x8xf32> -> vector<12x8xf32>
    %30 = arith.truncf %29 : vector<12x8xf32> to vector<12x8xbf16>
    %c3_27 = arith.constant 3 : index
    %c0_28 = arith.constant 0 : index
    %c0_29 = arith.constant 0 : index
    %31 = vector.load %arg3[%c3_27, %c0_28, %c0_29] : memref<4x8x32xbf16, #tpu.memory_space<vmem>>, vector<1x8x32xbf16>
    %32 = vector.shape_cast %31 : vector<1x8x32xbf16> to vector<8x32xbf16>
    %cst_30 = arith.constant dense<0.000000e+00> : vector<12x32xf32>
    %33 = tpu.matmul %30, %32, %cst_30 {dimension_numbers = #tpu.dot_dimension_numbers<[1], [0], [0], [1], [0, 0, 1, 1], [], []>} : vector<12x8xbf16>, vector<8x32xbf16>, vector<12x32xf32> -> vector<12x32xf32>
    %34 = arith.addf %26, %33 : vector<12x32xf32>
    %c0_31 = arith.constant 0 : index
    %c0_32 = arith.constant 0 : index
    %35 = vector.load %arg4[%c0_31, %c0_32] : memref<1x32xf32, #tpu.memory_space<vmem>>, vector<1x32xf32>
    %36 = vector.broadcast %35 : vector<1x32xf32> to vector<12x32xf32>
    %37 = arith.addf %34, %36 : vector<12x32xf32>
    %38 = arith.truncf %37 : vector<12x32xf32> to vector<12x32xbf16>
    %c0_33 = arith.constant 0 : index
    %c0_34 = arith.constant 0 : index
    %c0_35 = arith.constant 0 : index
    %39 = vector.load %arg5[%c0_33, %c0_34, %c0_35] : memref<1x12x32xbf16, #tpu.memory_space<vmem>>, vector<1x12x32xbf16>
    %40 = vector.shape_cast %39 : vector<1x12x32xbf16> to vector<12x32xbf16>
    %41 = vector.shape_cast %38 : vector<12x32xbf16> to vector<1x12x32xbf16>
    tpu.vector_store %arg5[%c0_33, %c0_34, %c0_35], %41 {strides = array<i32>} : memref<1x12x32xbf16, #tpu.memory_space<vmem>>, vector<1x12x32xbf16>,
    return
  }
  func.func @transform_0(%arg0: i32) -> (i32, i32, i32) {
    %c0_i32 = arith.constant 0 : i32
    %c0_i32_0 = arith.constant 0 : i32
    %c0_i32_1 = arith.constant 0 : i32
    return %arg0, %c0_i32, %c0_i32_0 : i32, i32, i32
  }
  func.func @transform_1(%arg0: i32) -> (i32, i32, i32) {
    %c0_i32 = arith.constant 0 : i32
    %c0_i32_0 = arith.constant 0 : i32
    %c0_i32_1 = arith.constant 0 : i32
    %c0_i32_2 = arith.constant 0 : i32
    return %c0_i32, %c0_i32_0, %c0_i32_1 : i32, i32, i32
  }
  func.func @transform_2(%arg0: i32) -> (i32, i32, i32) {
    %c0_i32 = arith.constant 0 : i32
    %c0_i32_0 = arith.constant 0 : i32
    %c0_i32_1 = arith.constant 0 : i32
    %c0_i32_2 = arith.constant 0 : i32
    return %c0_i32, %c0_i32_0, %c0_i32_1 : i32, i32, i32
  }
  func.func @transform_3(%arg0: i32) -> (i32, i32) {
    %c0_i32 = arith.constant 0 : i32
    %c0_i32_0 = arith.constant 0 : i32
    %c0_i32_1 = arith.constant 0 : i32
    return %c0_i32, %c0_i32_0 : i32, i32
  }
  func.func @transform_4(%arg0: i32) -> (i32, i32, i32) {
    %c0_i32 = arith.constant 0 : i32
    %c0_i32_0 = arith.constant 0 : i32
    %c0_i32_1 = arith.constant 0 : i32
    return %arg0, %c0_i32, %c0_i32_0 : i32, i32, i32
  }
}

module attributes {stable_mosaic.version = 11 : i64} {
  func.func @_decoder_layer_kernel(%arg0: i32, %arg1: memref<24x32xbf16, #tpu.memory_space<vmem>>, %arg2: memref<24x32xbf16, #tpu.memory_space<vmem>>, %arg3: memref<32x96xbf16, #tpu.memory_space<vmem>>, %arg4: memref<1x96xf32, #tpu.memory_space<vmem>>, %arg5: memref<32x32xbf16, #tpu.memory_space<vmem>>, %arg6: memref<1x32xf32, #tpu.memory_space<vmem>>, %arg7: memref<32x96xbf16, #tpu.memory_space<vmem>>, %arg8: memref<1x96xf32, #tpu.memory_space<vmem>>, %arg9: memref<32x32xbf16, #tpu.memory_space<vmem>>, %arg10: memref<1x32xf32, #tpu.memory_space<vmem>>, %arg11: memref<32x128xbf16, #tpu.memory_space<vmem>>, %arg12: memref<1x128xf32, #tpu.memory_space<vmem>>, %arg13: memref<128x32xbf16, #tpu.memory_space<vmem>>, %arg14: memref<1x32xf32, #tpu.memory_space<vmem>>, %arg15: memref<3x32xf32, #tpu.memory_space<vmem>>, %arg16: memref<3x32xf32, #tpu.memory_space<vmem>>, %arg17: memref<4x32xbf16, #tpu.memory_space<vmem>>, %arg18: memref<24x32xbf16, #tpu.memory_space<vmem>>) attributes {dimension_semantics = [#tpu.dimension_semantics<parallel>], iteration_bounds = array<i64: 1>, scalar_prefetch = 0 : i64, scratch_operands = 0 : i64, tpu.core_type = #tpu.core_type<tc>, window_params = [{transform_indices = @transform_0, window_bounds = array<i64: 24, 32>}, {transform_indices = @transform_1, window_bounds = array<i64: 24, 32>}, {pipeline_mode = #tpu.pipeline_mode<synchronous>, transform_indices = @transform_2, window_bounds = array<i64: 32, 96>}, {pipeline_mode = #tpu.pipeline_mode<synchronous>, transform_indices = @transform_3, window_bounds = array<i64: 1, 96>}, {pipeline_mode = #tpu.pipeline_mode<synchronous>, transform_indices = @transform_4, window_bounds = array<i64: 32, 32>}, {pipeline_mode = #tpu.pipeline_mode<synchronous>, transform_indices = @transform_5, window_bounds = array<i64: 1, 32>}, {pipeline_mode = #tpu.pipeline_mode<synchronous>, transform_indices = @transform_6, window_bounds = array<i64: 32, 96>}, {pipeline_mode = #tpu.pipeline_mode<synchronous>, transform_indices = @transform_7, window_bounds = array<i64: 1, 96>}, {pipeline_mode = #tpu.pipeline_mode<synchronous>, transform_indices = @transform_8, window_bounds = array<i64: 32, 32>}, {pipeline_mode = #tpu.pipeline_mode<synchronous>, transform_indices = @transform_9, window_bounds = array<i64: 1, 32>}, {pipeline_mode = #tpu.pipeline_mode<synchronous>, transform_indices = @transform_10, window_bounds = array<i64: 32, 128>}, {pipeline_mode = #tpu.pipeline_mode<synchronous>, transform_indices = @transform_11, window_bounds = array<i64: 1, 128>}, {pipeline_mode = #tpu.pipeline_mode<synchronous>, transform_indices = @transform_12, window_bounds = array<i64: 128, 32>}, {pipeline_mode = #tpu.pipeline_mode<synchronous>, transform_indices = @transform_13, window_bounds = array<i64: 1, 32>}, {pipeline_mode = #tpu.pipeline_mode<synchronous>, transform_indices = @transform_14, window_bounds = array<i64: 3, 32>}, {pipeline_mode = #tpu.pipeline_mode<synchronous>, transform_indices = @transform_15, window_bounds = array<i64: 3, 32>}, {pipeline_mode = #tpu.pipeline_mode<synchronous>, transform_indices = @transform_16, window_bounds = array<i64: 4, 32>}, {transform_indices = @transform_17, window_bounds = array<i64: 24, 32>}]} {
    %c0 = arith.constant 0 : index
    %c0_0 = arith.constant 0 : index
    %0 = vector.load %arg1[%c0, %c0_0] : memref<24x32xbf16, #tpu.memory_space<vmem>>, vector<24x32xbf16>
    %c0_1 = arith.constant 0 : index
    %c0_2 = arith.constant 0 : index
    %1 = vector.load %arg2[%c0_1, %c0_2] : memref<24x32xbf16, #tpu.memory_space<vmem>>, vector<24x32xbf16>
    %c0_3 = arith.constant 0 : index
    %c0_4 = arith.constant 0 : index
    %2 = vector.load %arg3[%c0_3, %c0_4] : memref<32x96xbf16, #tpu.memory_space<vmem>>, vector<32x32xbf16>
    %cst = arith.constant dense<0.000000e+00> : vector<24x32xf32>
    %3 = tpu.matmul %0, %2, %cst {dimension_numbers = #tpu.dot_dimension_numbers<[1], [0], [0], [1], [0, 0, 1, 1], [], []>} : vector<24x32xbf16>, vector<32x32xbf16>, vector<24x32xf32> -> vector<24x32xf32>
    %c0_5 = arith.constant 0 : index
    %c0_6 = arith.constant 0 : index
    %4 = vector.load %arg4[%c0_5, %c0_6] : memref<1x96xf32, #tpu.memory_space<vmem>>, vector<1x32xf32>
    %5 = vector.broadcast %4 : vector<1x32xf32> to vector<24x32xf32>
    %6 = arith.addf %3, %5 : vector<24x32xf32>
    %7 = arith.truncf %6 : vector<24x32xf32> to vector<24x32xbf16>
    %c0_7 = arith.constant 0 : index
    %c32 = arith.constant 32 : index
    %8 = vector.load %arg3[%c0_7, %c32] : memref<32x96xbf16, #tpu.memory_space<vmem>>, vector<32x32xbf16>
    %cst_8 = arith.constant dense<0.000000e+00> : vector<24x32xf32>
    %9 = tpu.matmul %0, %8, %cst_8 {dimension_numbers = #tpu.dot_dimension_numbers<[1], [0], [0], [1], [0, 0, 1, 1], [], []>} : vector<24x32xbf16>, vector<32x32xbf16>, vector<24x32xf32> -> vector<24x32xf32>
    %c0_9 = arith.constant 0 : index
    %c32_10 = arith.constant 32 : index
    %10 = vector.load %arg4[%c0_9, %c32_10] : memref<1x96xf32, #tpu.memory_space<vmem>>, vector<1x32xf32>
    %11 = vector.broadcast %10 : vector<1x32xf32> to vector<24x32xf32>
    %12 = arith.addf %9, %11 : vector<24x32xf32>
    %13 = arith.truncf %12 : vector<24x32xf32> to vector<24x32xbf16>
    %c0_11 = arith.constant 0 : index
    %c64 = arith.constant 64 : index
    %14 = vector.load %arg3[%c0_11, %c64] : memref<32x96xbf16, #tpu.memory_space<vmem>>, vector<32x32xbf16>
    %cst_12 = arith.constant dense<0.000000e+00> : vector<24x32xf32>
    %15 = tpu.matmul %0, %14, %cst_12 {dimension_numbers = #tpu.dot_dimension_numbers<[1], [0], [0], [1], [0, 0, 1, 1], [], []>} : vector<24x32xbf16>, vector<32x32xbf16>, vector<24x32xf32> -> vector<24x32xf32>
    %c0_13 = arith.constant 0 : index
    %c64_14 = arith.constant 64 : index
    %16 = vector.load %arg4[%c0_13, %c64_14] : memref<1x96xf32, #tpu.memory_space<vmem>>, vector<1x32xf32>
    %17 = vector.broadcast %16 : vector<1x32xf32> to vector<24x32xf32>
    %18 = arith.addf %15, %17 : vector<24x32xf32>
    %19 = arith.truncf %18 : vector<24x32xf32> to vector<24x32xbf16>
    %20 = vector.shape_cast %7 : vector<24x32xbf16> to vector<6x4x32xbf16>
    %21 = vector.shape_cast %13 : vector<24x32xbf16> to vector<6x4x32xbf16>
    %22 = vector.shape_cast %19 : vector<24x32xbf16> to vector<6x4x32xbf16>
    %cst_15 = arith.constant 0.000000e+00 : f32
    %23 = vector.broadcast %cst_15 : f32 to vector<6x4x32xf32>
    %c0_16 = arith.constant 0 : index
    %c0_17 = arith.constant 0 : index
    %24 = vector.load %arg17[%c0_16, %c0_17] : memref<4x32xbf16, #tpu.memory_space<vmem>>, vector<1x32xbf16>
    %25 = vector.shape_cast %24 : vector<1x32xbf16> to vector<1x1x32xbf16>
    %26 = vector.broadcast %25 : vector<1x1x32xbf16> to vector<6x4x32xbf16>
    %27 = arith.mulf %20, %26 : vector<6x4x32xbf16>
    "tpu.trace_start"() <{level = 10 : i32, message = "npd,nmd->npm"}> : () -> ()
    %cst_18 = arith.constant dense<0.000000e+00> : vector<6x4x4xf32>
    %28 = tpu.matmul %27, %21, %cst_18 {dimension_numbers = #tpu.dot_dimension_numbers<[2], [2], [1], [1], [0, 0, 0, 1, 1, 1], [0], [0]>} : vector<6x4x32xbf16>, vector<6x4x32xbf16>, vector<6x4x4xf32> -> vector<6x4x4xf32>
    "tpu.trace_stop"() : () -> ()
    %cst_19 = arith.constant 0.353553385 : f32
    %29 = vector.broadcast %cst_19 : f32 to vector<6x4x4xf32>
    %30 = arith.mulf %28, %29 : vector<6x4x4xf32>
    %cst_20 = arith.constant dense<0xFF800000> : vector<6x4xf32>
    %31 = vector.multi_reduction <maximumf>, %30, %cst_20 [2] : vector<6x4x4xf32> to vector<6x4xf32>
    %32 = vector.shape_cast %31 : vector<6x4xf32> to vector<6x4x1xf32>
    %33 = vector.broadcast %32 : vector<6x4x1xf32> to vector<6x4x4xf32>
    %34 = arith.subf %30, %33 : vector<6x4x4xf32>
    %35 = math.exp %34 : vector<6x4x4xf32>
    %cst_21 = arith.constant dense<0.000000e+00> : vector<6x4xf32>
    %36 = vector.multi_reduction <add>, %35, %cst_21 [2] : vector<6x4x4xf32> to vector<6x4xf32>
    %37 = vector.shape_cast %36 : vector<6x4xf32> to vector<6x4x1xf32>
    %38 = tpu.reciprocal %37 {approx = true} : vector<6x4x1xf32> -> vector<6x4x1xf32>
    %39 = vector.broadcast %38 : vector<6x4x1xf32> to vector<6x4x4xf32>
    %40 = arith.mulf %35, %39 : vector<6x4x4xf32>
    %41 = arith.truncf %40 : vector<6x4x4xf32> to vector<6x4x4xbf16>
    "tpu.trace_start"() <{level = 10 : i32, message = "npm,nmd->npd"}> : () -> ()
    %cst_22 = arith.constant dense<0.000000e+00> : vector<6x4x32xf32>
    %42 = tpu.matmul %41, %22, %cst_22 {dimension_numbers = #tpu.dot_dimension_numbers<[2], [1], [1], [2], [0, 0, 0, 1, 1, 2], [0], [0]>} : vector<6x4x4xbf16>, vector<6x4x32xbf16>, vector<6x4x32xf32> -> vector<6x4x32xf32>
    "tpu.trace_stop"() : () -> ()
    %43 = arith.extf %24 : vector<1x32xbf16> to vector<1x32xf32>
    %44 = vector.shape_cast %43 : vector<1x32xf32> to vector<1x1x32xf32>
    %45 = vector.broadcast %44 : vector<1x1x32xf32> to vector<6x4x32xf32>
    %46 = arith.mulf %42, %45 : vector<6x4x32xf32>
    %47 = arith.addf %23, %46 : vector<6x4x32xf32>
    %c1 = arith.constant 1 : index
    %c0_23 = arith.constant 0 : index
    %48 = vector.load %arg17[%c1, %c0_23] : memref<4x32xbf16, #tpu.memory_space<vmem>>, vector<1x32xbf16>
    %49 = vector.shape_cast %48 : vector<1x32xbf16> to vector<1x1x32xbf16>
    %50 = vector.broadcast %49 : vector<1x1x32xbf16> to vector<6x4x32xbf16>
    %51 = arith.mulf %20, %50 : vector<6x4x32xbf16>
    "tpu.trace_start"() <{level = 10 : i32, message = "npd,nmd->npm"}> : () -> ()
    %cst_24 = arith.constant dense<0.000000e+00> : vector<6x4x4xf32>
    %52 = tpu.matmul %51, %21, %cst_24 {dimension_numbers = #tpu.dot_dimension_numbers<[2], [2], [1], [1], [0, 0, 0, 1, 1, 1], [0], [0]>} : vector<6x4x32xbf16>, vector<6x4x32xbf16>, vector<6x4x4xf32> -> vector<6x4x4xf32>
    "tpu.trace_stop"() : () -> ()
    %cst_25 = arith.constant 0.353553385 : f32
    %53 = vector.broadcast %cst_25 : f32 to vector<6x4x4xf32>
    %54 = arith.mulf %52, %53 : vector<6x4x4xf32>
    %cst_26 = arith.constant dense<0xFF800000> : vector<6x4xf32>
    %55 = vector.multi_reduction <maximumf>, %54, %cst_26 [2] : vector<6x4x4xf32> to vector<6x4xf32>
    %56 = vector.shape_cast %55 : vector<6x4xf32> to vector<6x4x1xf32>
    %57 = vector.broadcast %56 : vector<6x4x1xf32> to vector<6x4x4xf32>
    %58 = arith.subf %54, %57 : vector<6x4x4xf32>
    %59 = math.exp %58 : vector<6x4x4xf32>
    %cst_27 = arith.constant dense<0.000000e+00> : vector<6x4xf32>
    %60 = vector.multi_reduction <add>, %59, %cst_27 [2] : vector<6x4x4xf32> to vector<6x4xf32>
    %61 = vector.shape_cast %60 : vector<6x4xf32> to vector<6x4x1xf32>
    %62 = tpu.reciprocal %61 {approx = true} : vector<6x4x1xf32> -> vector<6x4x1xf32>
    %63 = vector.broadcast %62 : vector<6x4x1xf32> to vector<6x4x4xf32>
    %64 = arith.mulf %59, %63 : vector<6x4x4xf32>
    %65 = arith.truncf %64 : vector<6x4x4xf32> to vector<6x4x4xbf16>
    "tpu.trace_start"() <{level = 10 : i32, message = "npm,nmd->npd"}> : () -> ()
    %cst_28 = arith.constant dense<0.000000e+00> : vector<6x4x32xf32>
    %66 = tpu.matmul %65, %22, %cst_28 {dimension_numbers = #tpu.dot_dimension_numbers<[2], [1], [1], [2], [0, 0, 0, 1, 1, 2], [0], [0]>} : vector<6x4x4xbf16>, vector<6x4x32xbf16>, vector<6x4x32xf32> -> vector<6x4x32xf32>
    "tpu.trace_stop"() : () -> ()
    %67 = arith.extf %48 : vector<1x32xbf16> to vector<1x32xf32>
    %68 = vector.shape_cast %67 : vector<1x32xf32> to vector<1x1x32xf32>
    %69 = vector.broadcast %68 : vector<1x1x32xf32> to vector<6x4x32xf32>
    %70 = arith.mulf %66, %69 : vector<6x4x32xf32>
    %71 = arith.addf %47, %70 : vector<6x4x32xf32>
    %c2 = arith.constant 2 : index
    %c0_29 = arith.constant 0 : index
    %72 = vector.load %arg17[%c2, %c0_29] : memref<4x32xbf16, #tpu.memory_space<vmem>>, vector<1x32xbf16>
    %73 = vector.shape_cast %72 : vector<1x32xbf16> to vector<1x1x32xbf16>
    %74 = vector.broadcast %73 : vector<1x1x32xbf16> to vector<6x4x32xbf16>
    %75 = arith.mulf %20, %74 : vector<6x4x32xbf16>
    "tpu.trace_start"() <{level = 10 : i32, message = "npd,nmd->npm"}> : () -> ()
    %cst_30 = arith.constant dense<0.000000e+00> : vector<6x4x4xf32>
    %76 = tpu.matmul %75, %21, %cst_30 {dimension_numbers = #tpu.dot_dimension_numbers<[2], [2], [1], [1], [0, 0, 0, 1, 1, 1], [0], [0]>} : vector<6x4x32xbf16>, vector<6x4x32xbf16>, vector<6x4x4xf32> -> vector<6x4x4xf32>
    "tpu.trace_stop"() : () -> ()
    %cst_31 = arith.constant 0.353553385 : f32
    %77 = vector.broadcast %cst_31 : f32 to vector<6x4x4xf32>
    %78 = arith.mulf %76, %77 : vector<6x4x4xf32>
    %cst_32 = arith.constant dense<0xFF800000> : vector<6x4xf32>
    %79 = vector.multi_reduction <maximumf>, %78, %cst_32 [2] : vector<6x4x4xf32> to vector<6x4xf32>
    %80 = vector.shape_cast %79 : vector<6x4xf32> to vector<6x4x1xf32>
    %81 = vector.broadcast %80 : vector<6x4x1xf32> to vector<6x4x4xf32>
    %82 = arith.subf %78, %81 : vector<6x4x4xf32>
    %83 = math.exp %82 : vector<6x4x4xf32>
    %cst_33 = arith.constant dense<0.000000e+00> : vector<6x4xf32>
    %84 = vector.multi_reduction <add>, %83, %cst_33 [2] : vector<6x4x4xf32> to vector<6x4xf32>
    %85 = vector.shape_cast %84 : vector<6x4xf32> to vector<6x4x1xf32>
    %86 = tpu.reciprocal %85 {approx = true} : vector<6x4x1xf32> -> vector<6x4x1xf32>
    %87 = vector.broadcast %86 : vector<6x4x1xf32> to vector<6x4x4xf32>
    %88 = arith.mulf %83, %87 : vector<6x4x4xf32>
    %89 = arith.truncf %88 : vector<6x4x4xf32> to vector<6x4x4xbf16>
    "tpu.trace_start"() <{level = 10 : i32, message = "npm,nmd->npd"}> : () -> ()
    %cst_34 = arith.constant dense<0.000000e+00> : vector<6x4x32xf32>
    %90 = tpu.matmul %89, %22, %cst_34 {dimension_numbers = #tpu.dot_dimension_numbers<[2], [1], [1], [2], [0, 0, 0, 1, 1, 2], [0], [0]>} : vector<6x4x4xbf16>, vector<6x4x32xbf16>, vector<6x4x32xf32> -> vector<6x4x32xf32>
    "tpu.trace_stop"() : () -> ()
    %91 = arith.extf %72 : vector<1x32xbf16> to vector<1x32xf32>
    %92 = vector.shape_cast %91 : vector<1x32xf32> to vector<1x1x32xf32>
    %93 = vector.broadcast %92 : vector<1x1x32xf32> to vector<6x4x32xf32>
    %94 = arith.mulf %90, %93 : vector<6x4x32xf32>
    %95 = arith.addf %71, %94 : vector<6x4x32xf32>
    %c3 = arith.constant 3 : index
    %c0_35 = arith.constant 0 : index
    %96 = vector.load %arg17[%c3, %c0_35] : memref<4x32xbf16, #tpu.memory_space<vmem>>, vector<1x32xbf16>
    %97 = vector.shape_cast %96 : vector<1x32xbf16> to vector<1x1x32xbf16>
    %98 = vector.broadcast %97 : vector<1x1x32xbf16> to vector<6x4x32xbf16>
    %99 = arith.mulf %20, %98 : vector<6x4x32xbf16>
    "tpu.trace_start"() <{level = 10 : i32, message = "npd,nmd->npm"}> : () -> ()
    %cst_36 = arith.constant dense<0.000000e+00> : vector<6x4x4xf32>
    %100 = tpu.matmul %99, %21, %cst_36 {dimension_numbers = #tpu.dot_dimension_numbers<[2], [2], [1], [1], [0, 0, 0, 1, 1, 1], [0], [0]>} : vector<6x4x32xbf16>, vector<6x4x32xbf16>, vector<6x4x4xf32> -> vector<6x4x4xf32>
    "tpu.trace_stop"() : () -> ()
    %cst_37 = arith.constant 0.353553385 : f32
    %101 = vector.broadcast %cst_37 : f32 to vector<6x4x4xf32>
    %102 = arith.mulf %100, %101 : vector<6x4x4xf32>
    %cst_38 = arith.constant dense<0xFF800000> : vector<6x4xf32>
    %103 = vector.multi_reduction <maximumf>, %102, %cst_38 [2] : vector<6x4x4xf32> to vector<6x4xf32>
    %104 = vector.shape_cast %103 : vector<6x4xf32> to vector<6x4x1xf32>
    %105 = vector.broadcast %104 : vector<6x4x1xf32> to vector<6x4x4xf32>
    %106 = arith.subf %102, %105 : vector<6x4x4xf32>
    %107 = math.exp %106 : vector<6x4x4xf32>
    %cst_39 = arith.constant dense<0.000000e+00> : vector<6x4xf32>
    %108 = vector.multi_reduction <add>, %107, %cst_39 [2] : vector<6x4x4xf32> to vector<6x4xf32>
    %109 = vector.shape_cast %108 : vector<6x4xf32> to vector<6x4x1xf32>
    %110 = tpu.reciprocal %109 {approx = true} : vector<6x4x1xf32> -> vector<6x4x1xf32>
    %111 = vector.broadcast %110 : vector<6x4x1xf32> to vector<6x4x4xf32>
    %112 = arith.mulf %107, %111 : vector<6x4x4xf32>
    %113 = arith.truncf %112 : vector<6x4x4xf32> to vector<6x4x4xbf16>
    "tpu.trace_start"() <{level = 10 : i32, message = "npm,nmd->npd"}> : () -> ()
    %cst_40 = arith.constant dense<0.000000e+00> : vector<6x4x32xf32>
    %114 = tpu.matmul %113, %22, %cst_40 {dimension_numbers = #tpu.dot_dimension_numbers<[2], [1], [1], [2], [0, 0, 0, 1, 1, 2], [0], [0]>} : vector<6x4x4xbf16>, vector<6x4x32xbf16>, vector<6x4x32xf32> -> vector<6x4x32xf32>
    "tpu.trace_stop"() : () -> ()
    %115 = arith.extf %96 : vector<1x32xbf16> to vector<1x32xf32>
    %116 = vector.shape_cast %115 : vector<1x32xf32> to vector<1x1x32xf32>
    %117 = vector.broadcast %116 : vector<1x1x32xf32> to vector<6x4x32xf32>
    %118 = arith.mulf %114, %117 : vector<6x4x32xf32>
    %119 = arith.addf %95, %118 : vector<6x4x32xf32>
    %120 = vector.shape_cast %119 : vector<6x4x32xf32> to vector<24x32xf32>
    %121 = arith.truncf %120 : vector<24x32xf32> to vector<24x32xbf16>
    %c0_41 = arith.constant 0 : index
    %c0_42 = arith.constant 0 : index
    %122 = vector.load %arg5[%c0_41, %c0_42] : memref<32x32xbf16, #tpu.memory_space<vmem>>, vector<32x32xbf16>
    %cst_43 = arith.constant dense<0.000000e+00> : vector<24x32xf32>
    %123 = tpu.matmul %121, %122, %cst_43 {dimension_numbers = #tpu.dot_dimension_numbers<[1], [0], [0], [1], [0, 0, 1, 1], [], []>} : vector<24x32xbf16>, vector<32x32xbf16>, vector<24x32xf32> -> vector<24x32xf32>
    %c0_44 = arith.constant 0 : index
    %c0_45 = arith.constant 0 : index
    %124 = vector.load %arg6[%c0_44, %c0_45] : memref<1x32xf32, #tpu.memory_space<vmem>>, vector<1x32xf32>
    %125 = vector.broadcast %124 : vector<1x32xf32> to vector<24x32xf32>
    %126 = arith.addf %123, %125 : vector<24x32xf32>
    %127 = arith.extf %0 : vector<24x32xbf16> to vector<24x32xf32>
    %128 = arith.addf %127, %126 : vector<24x32xf32>
    %c0_46 = arith.constant 0 : index
    %c0_47 = arith.constant 0 : index
    %129 = vector.load %arg15[%c0_46, %c0_47] : memref<3x32xf32, #tpu.memory_space<vmem>>, vector<1x32xf32>
    %c0_48 = arith.constant 0 : index
    %c0_49 = arith.constant 0 : index
    %130 = vector.load %arg16[%c0_48, %c0_49] : memref<3x32xf32, #tpu.memory_space<vmem>>, vector<1x32xf32>
    %cst_50 = arith.constant dense<0.000000e+00> : vector<24xf32>
    %131 = vector.multi_reduction <add>, %128, %cst_50 [1] : vector<24x32xf32> to vector<24xf32>
    %132 = vector.shape_cast %131 : vector<24xf32> to vector<24x1xf32>
    %cst_51 = arith.constant 3.200000e+01 : f32
    %133 = vector.broadcast %cst_51 : f32 to vector<24x1xf32>
    %134 = arith.divf %132, %133 : vector<24x1xf32>
    %135 = vector.broadcast %134 : vector<24x1xf32> to vector<24x32xf32>
    %136 = arith.subf %128, %135 : vector<24x32xf32>
    %137 = arith.mulf %136, %136 : vector<24x32xf32>
    %cst_52 = arith.constant dense<0.000000e+00> : vector<24xf32>
    %138 = vector.multi_reduction <add>, %137, %cst_52 [1] : vector<24x32xf32> to vector<24xf32>
    %139 = vector.shape_cast %138 : vector<24xf32> to vector<24x1xf32>
    %cst_53 = arith.constant 3.200000e+01 : f32
    %140 = vector.broadcast %cst_53 : f32 to vector<24x1xf32>
    %141 = arith.divf %139, %140 : vector<24x1xf32>
    %cst_54 = arith.constant 9.99999974E-6 : f32
    %142 = vector.broadcast %cst_54 : f32 to vector<24x1xf32>
    %143 = arith.addf %141, %142 : vector<24x1xf32>
    %144 = math.rsqrt %143 : vector<24x1xf32>
    %145 = vector.broadcast %144 : vector<24x1xf32> to vector<24x32xf32>
    %146 = arith.mulf %136, %145 : vector<24x32xf32>
    %147 = vector.broadcast %129 : vector<1x32xf32> to vector<24x32xf32>
    %148 = arith.mulf %146, %147 : vector<24x32xf32>
    %149 = vector.broadcast %130 : vector<1x32xf32> to vector<24x32xf32>
    %150 = arith.addf %148, %149 : vector<24x32xf32>
    %151 = arith.truncf %150 : vector<24x32xf32> to vector<24x32xbf16>
    %c0_55 = arith.constant 0 : index
    %c0_56 = arith.constant 0 : index
    %152 = vector.load %arg7[%c0_55, %c0_56] : memref<32x96xbf16, #tpu.memory_space<vmem>>, vector<32x32xbf16>
    %cst_57 = arith.constant dense<0.000000e+00> : vector<24x32xf32>
    %153 = tpu.matmul %151, %152, %cst_57 {dimension_numbers = #tpu.dot_dimension_numbers<[1], [0], [0], [1], [0, 0, 1, 1], [], []>} : vector<24x32xbf16>, vector<32x32xbf16>, vector<24x32xf32> -> vector<24x32xf32>
    %c0_58 = arith.constant 0 : index
    %c0_59 = arith.constant 0 : index
    %154 = vector.load %arg8[%c0_58, %c0_59] : memref<1x96xf32, #tpu.memory_space<vmem>>, vector<1x32xf32>
    %155 = vector.broadcast %154 : vector<1x32xf32> to vector<24x32xf32>
    %156 = arith.addf %153, %155 : vector<24x32xf32>
    %157 = arith.truncf %156 : vector<24x32xf32> to vector<24x32xbf16>
    %c0_60 = arith.constant 0 : index
    %c32_61 = arith.constant 32 : index
    %158 = vector.load %arg7[%c0_60, %c32_61] : memref<32x96xbf16, #tpu.memory_space<vmem>>, vector<32x32xbf16>
    %cst_62 = arith.constant dense<0.000000e+00> : vector<24x32xf32>
    %159 = tpu.matmul %1, %158, %cst_62 {dimension_numbers = #tpu.dot_dimension_numbers<[1], [0], [0], [1], [0, 0, 1, 1], [], []>} : vector<24x32xbf16>, vector<32x32xbf16>, vector<24x32xf32> -> vector<24x32xf32>
    %c0_63 = arith.constant 0 : index
    %c32_64 = arith.constant 32 : index
    %160 = vector.load %arg8[%c0_63, %c32_64] : memref<1x96xf32, #tpu.memory_space<vmem>>, vector<1x32xf32>
    %161 = vector.broadcast %160 : vector<1x32xf32> to vector<24x32xf32>
    %162 = arith.addf %159, %161 : vector<24x32xf32>
    %163 = arith.truncf %162 : vector<24x32xf32> to vector<24x32xbf16>
    %c0_65 = arith.constant 0 : index
    %c64_66 = arith.constant 64 : index
    %164 = vector.load %arg7[%c0_65, %c64_66] : memref<32x96xbf16, #tpu.memory_space<vmem>>, vector<32x32xbf16>
    %cst_67 = arith.constant dense<0.000000e+00> : vector<24x32xf32>
    %165 = tpu.matmul %1, %164, %cst_67 {dimension_numbers = #tpu.dot_dimension_numbers<[1], [0], [0], [1], [0, 0, 1, 1], [], []>} : vector<24x32xbf16>, vector<32x32xbf16>, vector<24x32xf32> -> vector<24x32xf32>
    %c0_68 = arith.constant 0 : index
    %c64_69 = arith.constant 64 : index
    %166 = vector.load %arg8[%c0_68, %c64_69] : memref<1x96xf32, #tpu.memory_space<vmem>>, vector<1x32xf32>
    %167 = vector.broadcast %166 : vector<1x32xf32> to vector<24x32xf32>
    %168 = arith.addf %165, %167 : vector<24x32xf32>
    %169 = arith.truncf %168 : vector<24x32xf32> to vector<24x32xbf16>
    %170 = vector.shape_cast %157 : vector<24x32xbf16> to vector<6x4x32xbf16>
    %171 = vector.shape_cast %163 : vector<24x32xbf16> to vector<6x4x32xbf16>
    %172 = vector.shape_cast %169 : vector<24x32xbf16> to vector<6x4x32xbf16>
    %cst_70 = arith.constant 0.000000e+00 : f32
    %173 = vector.broadcast %cst_70 : f32 to vector<6x4x32xf32>
    %c0_71 = arith.constant 0 : index
    %c0_72 = arith.constant 0 : index
    %174 = vector.load %arg17[%c0_71, %c0_72] : memref<4x32xbf16, #tpu.memory_space<vmem>>, vector<1x32xbf16>
    %175 = vector.shape_cast %174 : vector<1x32xbf16> to vector<1x1x32xbf16>
    %176 = vector.broadcast %175 : vector<1x1x32xbf16> to vector<6x4x32xbf16>
    %177 = arith.mulf %170, %176 : vector<6x4x32xbf16>
    "tpu.trace_start"() <{level = 10 : i32, message = "npd,nmd->npm"}> : () -> ()
    %cst_73 = arith.constant dense<0.000000e+00> : vector<6x4x4xf32>
    %178 = tpu.matmul %177, %171, %cst_73 {dimension_numbers = #tpu.dot_dimension_numbers<[2], [2], [1], [1], [0, 0, 0, 1, 1, 1], [0], [0]>} : vector<6x4x32xbf16>, vector<6x4x32xbf16>, vector<6x4x4xf32> -> vector<6x4x4xf32>
    "tpu.trace_stop"() : () -> ()
    %cst_74 = arith.constant 0.353553385 : f32
    %179 = vector.broadcast %cst_74 : f32 to vector<6x4x4xf32>
    %180 = arith.mulf %178, %179 : vector<6x4x4xf32>
    %cst_75 = arith.constant dense<0xFF800000> : vector<6x4xf32>
    %181 = vector.multi_reduction <maximumf>, %180, %cst_75 [2] : vector<6x4x4xf32> to vector<6x4xf32>
    %182 = vector.shape_cast %181 : vector<6x4xf32> to vector<6x4x1xf32>
    %183 = vector.broadcast %182 : vector<6x4x1xf32> to vector<6x4x4xf32>
    %184 = arith.subf %180, %183 : vector<6x4x4xf32>
    %185 = math.exp %184 : vector<6x4x4xf32>
    %cst_76 = arith.constant dense<0.000000e+00> : vector<6x4xf32>
    %186 = vector.multi_reduction <add>, %185, %cst_76 [2] : vector<6x4x4xf32> to vector<6x4xf32>
    %187 = vector.shape_cast %186 : vector<6x4xf32> to vector<6x4x1xf32>
    %188 = tpu.reciprocal %187 {approx = true} : vector<6x4x1xf32> -> vector<6x4x1xf32>
    %189 = vector.broadcast %188 : vector<6x4x1xf32> to vector<6x4x4xf32>
    %190 = arith.mulf %185, %189 : vector<6x4x4xf32>
    %191 = arith.truncf %190 : vector<6x4x4xf32> to vector<6x4x4xbf16>
    "tpu.trace_start"() <{level = 10 : i32, message = "npm,nmd->npd"}> : () -> ()
    %cst_77 = arith.constant dense<0.000000e+00> : vector<6x4x32xf32>
    %192 = tpu.matmul %191, %172, %cst_77 {dimension_numbers = #tpu.dot_dimension_numbers<[2], [1], [1], [2], [0, 0, 0, 1, 1, 2], [0], [0]>} : vector<6x4x4xbf16>, vector<6x4x32xbf16>, vector<6x4x32xf32> -> vector<6x4x32xf32>
    "tpu.trace_stop"() : () -> ()
    %193 = arith.extf %174 : vector<1x32xbf16> to vector<1x32xf32>
    %194 = vector.shape_cast %193 : vector<1x32xf32> to vector<1x1x32xf32>
    %195 = vector.broadcast %194 : vector<1x1x32xf32> to vector<6x4x32xf32>
    %196 = arith.mulf %192, %195 : vector<6x4x32xf32>
    %197 = arith.addf %173, %196 : vector<6x4x32xf32>
    %c1_78 = arith.constant 1 : index
    %c0_79 = arith.constant 0 : index
    %198 = vector.load %arg17[%c1_78, %c0_79] : memref<4x32xbf16, #tpu.memory_space<vmem>>, vector<1x32xbf16>
    %199 = vector.shape_cast %198 : vector<1x32xbf16> to vector<1x1x32xbf16>
    %200 = vector.broadcast %199 : vector<1x1x32xbf16> to vector<6x4x32xbf16>
    %201 = arith.mulf %170, %200 : vector<6x4x32xbf16>
    "tpu.trace_start"() <{level = 10 : i32, message = "npd,nmd->npm"}> : () -> ()
    %cst_80 = arith.constant dense<0.000000e+00> : vector<6x4x4xf32>
    %202 = tpu.matmul %201, %171, %cst_80 {dimension_numbers = #tpu.dot_dimension_numbers<[2], [2], [1], [1], [0, 0, 0, 1, 1, 1], [0], [0]>} : vector<6x4x32xbf16>, vector<6x4x32xbf16>, vector<6x4x4xf32> -> vector<6x4x4xf32>
    "tpu.trace_stop"() : () -> ()
    %cst_81 = arith.constant 0.353553385 : f32
    %203 = vector.broadcast %cst_81 : f32 to vector<6x4x4xf32>
    %204 = arith.mulf %202, %203 : vector<6x4x4xf32>
    %cst_82 = arith.constant dense<0xFF800000> : vector<6x4xf32>
    %205 = vector.multi_reduction <maximumf>, %204, %cst_82 [2] : vector<6x4x4xf32> to vector<6x4xf32>
    %206 = vector.shape_cast %205 : vector<6x4xf32> to vector<6x4x1xf32>
    %207 = vector.broadcast %206 : vector<6x4x1xf32> to vector<6x4x4xf32>
    %208 = arith.subf %204, %207 : vector<6x4x4xf32>
    %209 = math.exp %208 : vector<6x4x4xf32>
    %cst_83 = arith.constant dense<0.000000e+00> : vector<6x4xf32>
    %210 = vector.multi_reduction <add>, %209, %cst_83 [2] : vector<6x4x4xf32> to vector<6x4xf32>
    %211 = vector.shape_cast %210 : vector<6x4xf32> to vector<6x4x1xf32>
    %212 = tpu.reciprocal %211 {approx = true} : vector<6x4x1xf32> -> vector<6x4x1xf32>
    %213 = vector.broadcast %212 : vector<6x4x1xf32> to vector<6x4x4xf32>
    %214 = arith.mulf %209, %213 : vector<6x4x4xf32>
    %215 = arith.truncf %214 : vector<6x4x4xf32> to vector<6x4x4xbf16>
    "tpu.trace_start"() <{level = 10 : i32, message = "npm,nmd->npd"}> : () -> ()
    %cst_84 = arith.constant dense<0.000000e+00> : vector<6x4x32xf32>
    %216 = tpu.matmul %215, %172, %cst_84 {dimension_numbers = #tpu.dot_dimension_numbers<[2], [1], [1], [2], [0, 0, 0, 1, 1, 2], [0], [0]>} : vector<6x4x4xbf16>, vector<6x4x32xbf16>, vector<6x4x32xf32> -> vector<6x4x32xf32>
    "tpu.trace_stop"() : () -> ()
    %217 = arith.extf %198 : vector<1x32xbf16> to vector<1x32xf32>
    %218 = vector.shape_cast %217 : vector<1x32xf32> to vector<1x1x32xf32>
    %219 = vector.broadcast %218 : vector<1x1x32xf32> to vector<6x4x32xf32>
    %220 = arith.mulf %216, %219 : vector<6x4x32xf32>
    %221 = arith.addf %197, %220 : vector<6x4x32xf32>
    %c2_85 = arith.constant 2 : index
    %c0_86 = arith.constant 0 : index
    %222 = vector.load %arg17[%c2_85, %c0_86] : memref<4x32xbf16, #tpu.memory_space<vmem>>, vector<1x32xbf16>
    %223 = vector.shape_cast %222 : vector<1x32xbf16> to vector<1x1x32xbf16>
    %224 = vector.broadcast %223 : vector<1x1x32xbf16> to vector<6x4x32xbf16>
    %225 = arith.mulf %170, %224 : vector<6x4x32xbf16>
    "tpu.trace_start"() <{level = 10 : i32, message = "npd,nmd->npm"}> : () -> ()
    %cst_87 = arith.constant dense<0.000000e+00> : vector<6x4x4xf32>
    %226 = tpu.matmul %225, %171, %cst_87 {dimension_numbers = #tpu.dot_dimension_numbers<[2], [2], [1], [1], [0, 0, 0, 1, 1, 1], [0], [0]>} : vector<6x4x32xbf16>, vector<6x4x32xbf16>, vector<6x4x4xf32> -> vector<6x4x4xf32>
    "tpu.trace_stop"() : () -> ()
    %cst_88 = arith.constant 0.353553385 : f32
    %227 = vector.broadcast %cst_88 : f32 to vector<6x4x4xf32>
    %228 = arith.mulf %226, %227 : vector<6x4x4xf32>
    %cst_89 = arith.constant dense<0xFF800000> : vector<6x4xf32>
    %229 = vector.multi_reduction <maximumf>, %228, %cst_89 [2] : vector<6x4x4xf32> to vector<6x4xf32>
    %230 = vector.shape_cast %229 : vector<6x4xf32> to vector<6x4x1xf32>
    %231 = vector.broadcast %230 : vector<6x4x1xf32> to vector<6x4x4xf32>
    %232 = arith.subf %228, %231 : vector<6x4x4xf32>
    %233 = math.exp %232 : vector<6x4x4xf32>
    %cst_90 = arith.constant dense<0.000000e+00> : vector<6x4xf32>
    %234 = vector.multi_reduction <add>, %233, %cst_90 [2] : vector<6x4x4xf32> to vector<6x4xf32>
    %235 = vector.shape_cast %234 : vector<6x4xf32> to vector<6x4x1xf32>
    %236 = tpu.reciprocal %235 {approx = true} : vector<6x4x1xf32> -> vector<6x4x1xf32>
    %237 = vector.broadcast %236 : vector<6x4x1xf32> to vector<6x4x4xf32>
    %238 = arith.mulf %233, %237 : vector<6x4x4xf32>
    %239 = arith.truncf %238 : vector<6x4x4xf32> to vector<6x4x4xbf16>
    "tpu.trace_start"() <{level = 10 : i32, message = "npm,nmd->npd"}> : () -> ()
    %cst_91 = arith.constant dense<0.000000e+00> : vector<6x4x32xf32>
    %240 = tpu.matmul %239, %172, %cst_91 {dimension_numbers = #tpu.dot_dimension_numbers<[2], [1], [1], [2], [0, 0, 0, 1, 1, 2], [0], [0]>} : vector<6x4x4xbf16>, vector<6x4x32xbf16>, vector<6x4x32xf32> -> vector<6x4x32xf32>
    "tpu.trace_stop"() : () -> ()
    %241 = arith.extf %222 : vector<1x32xbf16> to vector<1x32xf32>
    %242 = vector.shape_cast %241 : vector<1x32xf32> to vector<1x1x32xf32>
    %243 = vector.broadcast %242 : vector<1x1x32xf32> to vector<6x4x32xf32>
    %244 = arith.mulf %240, %243 : vector<6x4x32xf32>
    %245 = arith.addf %221, %244 : vector<6x4x32xf32>
    %c3_92 = arith.constant 3 : index
    %c0_93 = arith.constant 0 : index
    %246 = vector.load %arg17[%c3_92, %c0_93] : memref<4x32xbf16, #tpu.memory_space<vmem>>, vector<1x32xbf16>
    %247 = vector.shape_cast %246 : vector<1x32xbf16> to vector<1x1x32xbf16>
    %248 = vector.broadcast %247 : vector<1x1x32xbf16> to vector<6x4x32xbf16>
    %249 = arith.mulf %170, %248 : vector<6x4x32xbf16>
    "tpu.trace_start"() <{level = 10 : i32, message = "npd,nmd->npm"}> : () -> ()
    %cst_94 = arith.constant dense<0.000000e+00> : vector<6x4x4xf32>
    %250 = tpu.matmul %249, %171, %cst_94 {dimension_numbers = #tpu.dot_dimension_numbers<[2], [2], [1], [1], [0, 0, 0, 1, 1, 1], [0], [0]>} : vector<6x4x32xbf16>, vector<6x4x32xbf16>, vector<6x4x4xf32> -> vector<6x4x4xf32>
    "tpu.trace_stop"() : () -> ()
    %cst_95 = arith.constant 0.353553385 : f32
    %251 = vector.broadcast %cst_95 : f32 to vector<6x4x4xf32>
    %252 = arith.mulf %250, %251 : vector<6x4x4xf32>
    %cst_96 = arith.constant dense<0xFF800000> : vector<6x4xf32>
    %253 = vector.multi_reduction <maximumf>, %252, %cst_96 [2] : vector<6x4x4xf32> to vector<6x4xf32>
    %254 = vector.shape_cast %253 : vector<6x4xf32> to vector<6x4x1xf32>
    %255 = vector.broadcast %254 : vector<6x4x1xf32> to vector<6x4x4xf32>
    %256 = arith.subf %252, %255 : vector<6x4x4xf32>
    %257 = math.exp %256 : vector<6x4x4xf32>
    %cst_97 = arith.constant dense<0.000000e+00> : vector<6x4xf32>
    %258 = vector.multi_reduction <add>, %257, %cst_97 [2] : vector<6x4x4xf32> to vector<6x4xf32>
    %259 = vector.shape_cast %258 : vector<6x4xf32> to vector<6x4x1xf32>
    %260 = tpu.reciprocal %259 {approx = true} : vector<6x4x1xf32> -> vector<6x4x1xf32>
    %261 = vector.broadcast %260 : vector<6x4x1xf32> to vector<6x4x4xf32>
    %262 = arith.mulf %257, %261 : vector<6x4x4xf32>
    %263 = arith.truncf %262 : vector<6x4x4xf32> to vector<6x4x4xbf16>
    "tpu.trace_start"() <{level = 10 : i32, message = "npm,nmd->npd"}> : () -> ()
    %cst_98 = arith.constant dense<0.000000e+00> : vector<6x4x32xf32>
    %264 = tpu.matmul %263, %172, %cst_98 {dimension_numbers = #tpu.dot_dimension_numbers<[2], [1], [1], [2], [0, 0, 0, 1, 1, 2], [0], [0]>} : vector<6x4x4xbf16>, vector<6x4x32xbf16>, vector<6x4x32xf32> -> vector<6x4x32xf32>
    "tpu.trace_stop"() : () -> ()
    %265 = arith.extf %246 : vector<1x32xbf16> to vector<1x32xf32>
    %266 = vector.shape_cast %265 : vector<1x32xf32> to vector<1x1x32xf32>
    %267 = vector.broadcast %266 : vector<1x1x32xf32> to vector<6x4x32xf32>
    %268 = arith.mulf %264, %267 : vector<6x4x32xf32>
    %269 = arith.addf %245, %268 : vector<6x4x32xf32>
    %270 = vector.shape_cast %269 : vector<6x4x32xf32> to vector<24x32xf32>
    %271 = arith.truncf %270 : vector<24x32xf32> to vector<24x32xbf16>
    %c0_99 = arith.constant 0 : index
    %c0_100 = arith.constant 0 : index
    %272 = vector.load %arg9[%c0_99, %c0_100] : memref<32x32xbf16, #tpu.memory_space<vmem>>, vector<32x32xbf16>
    %cst_101 = arith.constant dense<0.000000e+00> : vector<24x32xf32>
    %273 = tpu.matmul %271, %272, %cst_101 {dimension_numbers = #tpu.dot_dimension_numbers<[1], [0], [0], [1], [0, 0, 1, 1], [], []>} : vector<24x32xbf16>, vector<32x32xbf16>, vector<24x32xf32> -> vector<24x32xf32>
    %c0_102 = arith.constant 0 : index
    %c0_103 = arith.constant 0 : index
    %274 = vector.load %arg10[%c0_102, %c0_103] : memref<1x32xf32, #tpu.memory_space<vmem>>, vector<1x32xf32>
    %275 = vector.broadcast %274 : vector<1x32xf32> to vector<24x32xf32>
    %276 = arith.addf %273, %275 : vector<24x32xf32>
    %277 = arith.addf %150, %276 : vector<24x32xf32>
    %c1_104 = arith.constant 1 : index
    %c0_105 = arith.constant 0 : index
    %278 = vector.load %arg15[%c1_104, %c0_105] : memref<3x32xf32, #tpu.memory_space<vmem>>, vector<1x32xf32>
    %c1_106 = arith.constant 1 : index
    %c0_107 = arith.constant 0 : index
    %279 = vector.load %arg16[%c1_106, %c0_107] : memref<3x32xf32, #tpu.memory_space<vmem>>, vector<1x32xf32>
    %cst_108 = arith.constant dense<0.000000e+00> : vector<24xf32>
    %280 = vector.multi_reduction <add>, %277, %cst_108 [1] : vector<24x32xf32> to vector<24xf32>
    %281 = vector.shape_cast %280 : vector<24xf32> to vector<24x1xf32>
    %cst_109 = arith.constant 3.200000e+01 : f32
    %282 = vector.broadcast %cst_109 : f32 to vector<24x1xf32>
    %283 = arith.divf %281, %282 : vector<24x1xf32>
    %284 = vector.broadcast %283 : vector<24x1xf32> to vector<24x32xf32>
    %285 = arith.subf %277, %284 : vector<24x32xf32>
    %286 = arith.mulf %285, %285 : vector<24x32xf32>
    %cst_110 = arith.constant dense<0.000000e+00> : vector<24xf32>
    %287 = vector.multi_reduction <add>, %286, %cst_110 [1] : vector<24x32xf32> to vector<24xf32>
    %288 = vector.shape_cast %287 : vector<24xf32> to vector<24x1xf32>
    %cst_111 = arith.constant 3.200000e+01 : f32
    %289 = vector.broadcast %cst_111 : f32 to vector<24x1xf32>
    %290 = arith.divf %288, %289 : vector<24x1xf32>
    %cst_112 = arith.constant 9.99999974E-6 : f32
    %291 = vector.broadcast %cst_112 : f32 to vector<24x1xf32>
    %292 = arith.addf %290, %291 : vector<24x1xf32>
    %293 = math.rsqrt %292 : vector<24x1xf32>
    %294 = vector.broadcast %293 : vector<24x1xf32> to vector<24x32xf32>
    %295 = arith.mulf %285, %294 : vector<24x32xf32>
    %296 = vector.broadcast %278 : vector<1x32xf32> to vector<24x32xf32>
    %297 = arith.mulf %295, %296 : vector<24x32xf32>
    %298 = vector.broadcast %279 : vector<1x32xf32> to vector<24x32xf32>
    %299 = arith.addf %297, %298 : vector<24x32xf32>
    %300 = arith.truncf %299 : vector<24x32xf32> to vector<24x32xbf16>
    %c0_113 = arith.constant 0 : index
    %c0_114 = arith.constant 0 : index
    %301 = vector.load %arg11[%c0_113, %c0_114] : memref<32x128xbf16, #tpu.memory_space<vmem>>, vector<32x128xbf16>
    %cst_115 = arith.constant dense<0.000000e+00> : vector<24x128xf32>
    %302 = tpu.matmul %300, %301, %cst_115 {dimension_numbers = #tpu.dot_dimension_numbers<[1], [0], [0], [1], [0, 0, 1, 1], [], []>} : vector<24x32xbf16>, vector<32x128xbf16>, vector<24x128xf32> -> vector<24x128xf32>
    %c0_116 = arith.constant 0 : index
    %c0_117 = arith.constant 0 : index
    %303 = vector.load %arg12[%c0_116, %c0_117] : memref<1x128xf32, #tpu.memory_space<vmem>>, vector<1x128xf32>
    %304 = vector.broadcast %303 : vector<1x128xf32> to vector<24x128xf32>
    %305 = arith.addf %302, %304 : vector<24x128xf32>
    %cst_118 = arith.constant 0.000000e+00 : f32
    %306 = vector.broadcast %cst_118 : f32 to vector<24x128xf32>
    %307 = arith.maximumf %305, %306 : vector<24x128xf32>
    %308 = arith.truncf %307 : vector<24x128xf32> to vector<24x128xbf16>
    %c0_119 = arith.constant 0 : index
    %c0_120 = arith.constant 0 : index
    %309 = vector.load %arg13[%c0_119, %c0_120] : memref<128x32xbf16, #tpu.memory_space<vmem>>, vector<128x32xbf16>
    %cst_121 = arith.constant dense<0.000000e+00> : vector<24x32xf32>
    %310 = tpu.matmul %308, %309, %cst_121 {dimension_numbers = #tpu.dot_dimension_numbers<[1], [0], [0], [1], [0, 0, 1, 1], [], []>} : vector<24x128xbf16>, vector<128x32xbf16>, vector<24x32xf32> -> vector<24x32xf32>
    %c0_122 = arith.constant 0 : index
    %c0_123 = arith.constant 0 : index
    %311 = vector.load %arg14[%c0_122, %c0_123] : memref<1x32xf32, #tpu.memory_space<vmem>>, vector<1x32xf32>
    %312 = vector.broadcast %311 : vector<1x32xf32> to vector<24x32xf32>
    %313 = arith.addf %310, %312 : vector<24x32xf32>
    %314 = arith.addf %299, %313 : vector<24x32xf32>
    %c2_124 = arith.constant 2 : index
    %c0_125 = arith.constant 0 : index
    %315 = vector.load %arg15[%c2_124, %c0_125] : memref<3x32xf32, #tpu.memory_space<vmem>>, vector<1x32xf32>
    %c2_126 = arith.constant 2 : index
    %c0_127 = arith.constant 0 : index
    %316 = vector.load %arg16[%c2_126, %c0_127] : memref<3x32xf32, #tpu.memory_space<vmem>>, vector<1x32xf32>
    %cst_128 = arith.constant dense<0.000000e+00> : vector<24xf32>
    %317 = vector.multi_reduction <add>, %314, %cst_128 [1] : vector<24x32xf32> to vector<24xf32>
    %318 = vector.shape_cast %317 : vector<24xf32> to vector<24x1xf32>
    %cst_129 = arith.constant 3.200000e+01 : f32
    %319 = vector.broadcast %cst_129 : f32 to vector<24x1xf32>
    %320 = arith.divf %318, %319 : vector<24x1xf32>
    %321 = vector.broadcast %320 : vector<24x1xf32> to vector<24x32xf32>
    %322 = arith.subf %314, %321 : vector<24x32xf32>
    %323 = arith.mulf %322, %322 : vector<24x32xf32>
    %cst_130 = arith.constant dense<0.000000e+00> : vector<24xf32>
    %324 = vector.multi_reduction <add>, %323, %cst_130 [1] : vector<24x32xf32> to vector<24xf32>
    %325 = vector.shape_cast %324 : vector<24xf32> to vector<24x1xf32>
    %cst_131 = arith.constant 3.200000e+01 : f32
    %326 = vector.broadcast %cst_131 : f32 to vector<24x1xf32>
    %327 = arith.divf %325, %326 : vector<24x1xf32>
    %cst_132 = arith.constant 9.99999974E-6 : f32
    %328 = vector.broadcast %cst_132 : f32 to vector<24x1xf32>
    %329 = arith.addf %327, %328 : vector<24x1xf32>
    %330 = math.rsqrt %329 : vector<24x1xf32>
    %331 = vector.broadcast %330 : vector<24x1xf32> to vector<24x32xf32>
    %332 = arith.mulf %322, %331 : vector<24x32xf32>
    %333 = vector.broadcast %315 : vector<1x32xf32> to vector<24x32xf32>
    %334 = arith.mulf %332, %333 : vector<24x32xf32>
    %335 = vector.broadcast %316 : vector<1x32xf32> to vector<24x32xf32>
    %336 = arith.addf %334, %335 : vector<24x32xf32>
    %337 = arith.truncf %336 : vector<24x32xf32> to vector<24x32xbf16>
    %c0_133 = arith.constant 0 : index
    %c0_134 = arith.constant 0 : index
    %338 = vector.load %arg18[%c0_133, %c0_134] : memref<24x32xbf16, #tpu.memory_space<vmem>>, vector<24x32xbf16>
    tpu.vector_store %arg18[%c0_133, %c0_134], %337 {strides = array<i32>} : memref<24x32xbf16, #tpu.memory_space<vmem>>, vector<24x32xbf16>,
    return
  }
  func.func @transform_0(%arg0: i32) -> (i32, i32) {
    %c0_i32 = arith.constant 0 : i32
    %c0_i32_0 = arith.constant 0 : i32
    return %arg0, %c0_i32 : i32, i32
  }
  func.func @transform_1(%arg0: i32) -> (i32, i32) {
    %c0_i32 = arith.constant 0 : i32
    %c0_i32_0 = arith.constant 0 : i32
    return %arg0, %c0_i32 : i32, i32
  }
  func.func @transform_2(%arg0: i32) -> (i32, i32) {
    %c0_i32 = arith.constant 0 : i32
    %c0_i32_0 = arith.constant 0 : i32
    %c0_i32_1 = arith.constant 0 : i32
    return %c0_i32, %c0_i32_0 : i32, i32
  }
  func.func @transform_3(%arg0: i32) -> (i32, i32) {
    %c0_i32 = arith.constant 0 : i32
    %c0_i32_0 = arith.constant 0 : i32
    %c0_i32_1 = arith.constant 0 : i32
    return %c0_i32, %c0_i32_0 : i32, i32
  }
  func.func @transform_4(%arg0: i32) -> (i32, i32) {
    %c0_i32 = arith.constant 0 : i32
    %c0_i32_0 = arith.constant 0 : i32
    %c0_i32_1 = arith.constant 0 : i32
    return %c0_i32, %c0_i32_0 : i32, i32
  }
  func.func @transform_5(%arg0: i32) -> (i32, i32) {
    %c0_i32 = arith.constant 0 : i32
    %c0_i32_0 = arith.constant 0 : i32
    %c0_i32_1 = arith.constant 0 : i32
    return %c0_i32, %c0_i32_0 : i32, i32
  }
  func.func @transform_6(%arg0: i32) -> (i32, i32) {
    %c0_i32 = arith.constant 0 : i32
    %c0_i32_0 = arith.constant 0 : i32
    %c0_i32_1 = arith.constant 0 : i32
    return %c0_i32, %c0_i32_0 : i32, i32
  }
  func.func @transform_7(%arg0: i32) -> (i32, i32) {
    %c0_i32 = arith.constant 0 : i32
    %c0_i32_0 = arith.constant 0 : i32
    %c0_i32_1 = arith.constant 0 : i32
    return %c0_i32, %c0_i32_0 : i32, i32
  }
  func.func @transform_8(%arg0: i32) -> (i32, i32) {
    %c0_i32 = arith.constant 0 : i32
    %c0_i32_0 = arith.constant 0 : i32
    %c0_i32_1 = arith.constant 0 : i32
    return %c0_i32, %c0_i32_0 : i32, i32
  }
  func.func @transform_9(%arg0: i32) -> (i32, i32) {
    %c0_i32 = arith.constant 0 : i32
    %c0_i32_0 = arith.constant 0 : i32
    %c0_i32_1 = arith.constant 0 : i32
    return %c0_i32, %c0_i32_0 : i32, i32
  }
  func.func @transform_10(%arg0: i32) -> (i32, i32) {
    %c0_i32 = arith.constant 0 : i32
    %c0_i32_0 = arith.constant 0 : i32
    %c0_i32_1 = arith.constant 0 : i32
    return %c0_i32, %c0_i32_0 : i32, i32
  }
  func.func @transform_11(%arg0: i32) -> (i32, i32) {
    %c0_i32 = arith.constant 0 : i32
    %c0_i32_0 = arith.constant 0 : i32
    %c0_i32_1 = arith.constant 0 : i32
    return %c0_i32, %c0_i32_0 : i32, i32
  }
  func.func @transform_12(%arg0: i32) -> (i32, i32) {
    %c0_i32 = arith.constant 0 : i32
    %c0_i32_0 = arith.constant 0 : i32
    %c0_i32_1 = arith.constant 0 : i32
    return %c0_i32, %c0_i32_0 : i32, i32
  }
  func.func @transform_13(%arg0: i32) -> (i32, i32) {
    %c0_i32 = arith.constant 0 : i32
    %c0_i32_0 = arith.constant 0 : i32
    %c0_i32_1 = arith.constant 0 : i32
    return %c0_i32, %c0_i32_0 : i32, i32
  }
  func.func @transform_14(%arg0: i32) -> (i32, i32) {
    %c0_i32 = arith.constant 0 : i32
    %c0_i32_0 = arith.constant 0 : i32
    %c0_i32_1 = arith.constant 0 : i32
    return %c0_i32, %c0_i32_0 : i32, i32
  }
  func.func @transform_15(%arg0: i32) -> (i32, i32) {
    %c0_i32 = arith.constant 0 : i32
    %c0_i32_0 = arith.constant 0 : i32
    %c0_i32_1 = arith.constant 0 : i32
    return %c0_i32, %c0_i32_0 : i32, i32
  }
  func.func @transform_16(%arg0: i32) -> (i32, i32) {
    %c0_i32 = arith.constant 0 : i32
    %c0_i32_0 = arith.constant 0 : i32
    %c0_i32_1 = arith.constant 0 : i32
    return %c0_i32, %c0_i32_0 : i32, i32
  }
  func.func @transform_17(%arg0: i32) -> (i32, i32) {
    %c0_i32 = arith.constant 0 : i32
    %c0_i32_0 = arith.constant 0 : i32
    return %arg0, %c0_i32 : i32, i32
  }
}

</mosaic_0001>

<bundles_post_ra>
// kernel: expansion_layer_forward.2
= control target key start
LH: loop header
LB: loop body
LE: loop exit
PB: predicated region body
PF: predicated region fallthrough
CT: control target
= control target key end

     0   :  { %s853_s15 = smov 0   ;;  %s940_s0 = inlined_call_operand.vmem [shape: bf16[2,10,8], index: 0, kind: input, shape index: {}]   ;;  %s941_s1 = inlined_call_operand.vmem [shape: bf16[4,12,10], index: 1, kind: input, shape index: {}]   ;;  %s942_s2 = inlined_call_operand.vmem [shape: bf16[4,8,32], index: 2, kind: input, shape index: {}]   ;;  %s943_s3 = inlined_call_operand.vmem [shape: f32[1,32], index: 3, kind: input, shape index: {}]   ;;  %s944_s4 = inlined_call_operand.vmem [shape: bf16[2,12,32], index: 4, kind: output, shape index: {}]  }
   0x1 LB: > { %s699_s16 = sadd.s32 4294967295, %s824_s15   ;;  %p703_p0 = scmp.ge.s32.totalorder %s824_s15, 1  ;;  %s824_s15 = sphi %s853_s15, %s14_s15  }
   0x2   : > { %p162_p1 = scmp.lt.s32.totalorder %s824_s15, 3 }
   0x4   : > { %p163_p2 = pnand %p703_p0, %p162_p1 }
   0x5   : > { %p188_p3 = scmp.lt.s32.totalorder (!%p163_p2), %s699_s16, 1  ;;  %v826_v0 = vmov (!%p163_p2), 0.0   ;;  %vm827_vm0 = vmmov (!%p163_p2), 0   ;;  %vm217_vm1 = vcmask (!%p163_p2), 1044480   ;;  %v715_v2 = vld [vmem:[%s942_s2 + $0x4] sm:$0xf] (!%p163_p2) }
   0x6   : > { %166 = sbr.rel (%p163_p2) target bundleno = 690 (0x2b2), region = 36  ;;  %755 = vmatprep.subr.bf16.mxu0 (!%p163_p2), %v826_v0  ;;  %761 = vmatprep.subr.bf16.mxu1 (!%p163_p2), %v826_v0  ;;  %vm323_vm2 = vcmask (!%p163_p2), 1043456   ;;  %v814_v4 = vld [vmem:[%s941_s1] sm:$0x3f] (!%p163_p2)   ;;  %v815_v5 = vld [vmem:[%s941_s1 + $0x8] sm:$0x3f] (!%p163_p2)  }
   0x7   : > { %757 = vmatprep.mubr.msk.bf16.mxu0 (!%p163_p2), %vm827_vm0, %v826_v0  ;;  %763 = vmatprep.mubr.msk.bf16.mxu1 (!%p163_p2), %vm827_vm0, %v826_v0  ;;  %vm213_vm3 = vcmask (!%p163_p2), 80896   ;;  %v325_v6 = vsel (!%p163_p2), %vm323_vm2, %v715_v2, 0  ;;  %v263_v7 = vld [vmem:[%s942_s2] sm:$0xf] (!%p163_p2)  ;;  %vm319_vm4 = vcmask (!%p163_p2), 64512   ;;  %vm640_vm5 = vcmask (!%p163_p2), 257024  }
   0x8   : > { %v372_v8 = vsel (!%p163_p2), %vm323_vm2, %v263_v7, 0  ;;  %v816_v19 = vld [vmem:[%s941_s1 + $0x10] sm:$0x3f] (!%p163_p2)   ;;  %v817_v20 = vld [vmem:[%s941_s1 + $0x18] sm:$0x3f] (!%p163_p2)   ;;  %vm642_vm6 = vcmask (!%p163_p2), 254976  }
   0x9   : > { %v722_v21 = vld [vmem:[%s942_s2 + $0x8] sm:$0xf] (!%p163_p2)  ;;  %v728_v34 = vld [vmem:[%s942_s2 + $0xc] sm:$0xf] (!%p163_p2)  ;;  %v730_v52 = vld [vmem:[%s943_s3] ss:$0 sm:$0xff] (!%p163_p2) }
   0xa   : > { %v474_v22 = vsel (!%p163_p2), %vm323_vm2, %v722_v21, 0  ;;  %v578_v39 = vsel (!%p163_p2), %vm323_vm2, %v728_v34, 0 }
   0xd   : > { %s946_s16 = smov (!%p188_p3, %s699_s16), 1 }
   0xe   : > { %s735_s17 = sshll.u32 %s946_s16, 3 }
   0xf   : > { %s192_s20 = scalar_lea.vmem %s940_s0, %s735_s17  ;;  %s197_s18 = scalar_lea.vmem %s944_s4, %s735_s17 }
  0x10   : > { %v813_v1 = vld [vmem:[%s192_s20] sm:$0x1f]  }
  0x11   : > { %v219_v3 = vsel %vm217_vm1, %v813_v1, 0 }
  0x12   : > { %756 = vmatpush3.bf16.msra.mxu0 %v219_v3  ;;  %762 = vmatpush3.bf16.msra.mxu1 %v219_v3 }
  0x13   : > { %767 = vmatprep.subr.bf16.mxu0 %v826_v0  ;;  %773 = vmatprep.subr.bf16.mxu1 %v826_v0 }
  0x15   : > { %758 = vmatmul.mubr.msk.bf16.vlgmr.msra.gmra.mrb[0].mxu0 %vm213_vm3, %v814_v4  ;;  %764 = vmatmul.mubr.msk.bf16.vlgmr.msra.gmra.mrb[0].mxu1 %vm213_vm3, %v815_v5 }
  0x16   : > { %768 = vmatpush3.bf16.msra.mxu0 %v325_v6  ;;  %769 = vmatprep.mubr.msk.bf16.mxu0 %vm827_vm0, %v826_v0 }
  0x17   : > { %775 = vmatprep.mubr.msk.bf16.mxu1 %vm827_vm0, %v826_v0  ;;  %779 = vmatprep.subr.bf16.mxu0 %v826_v0 }
  0x18   : > { %774 = vmatpush3.bf16.msra.mxu1 %v372_v8 }
  0x19   : > { %785 = vmatprep.subr.bf16.mxu1 %v826_v0 }
  0xe8   : > { %v255_v9 = vpop.f32.mrb[0].mxu0  ;;  %v309_v10 = vpop.f32.mrb[0].mxu1 }
  0xe9   : > { %v759_v11 = vpop.f32.mrb[1].mxu0  ;;  %v765_v12 = vpop.f32.mrb[1].mxu1 }
  0xea   : > { %v258_v13 = vpop.f32.mrb[2].mxu0  ;;  %v312_v14 = vpop.f32.mrb[2].mxu1 }
  0xeb   : > { %v262_v15 = vpack.c.bf16 %v258_v13, %v255_v9  ;;  %v316_v16 = vpack.c.bf16 %v312_v14, %v309_v10  ;;  %v766_v17 = vpop.f32.mrb[3].mxu1  ;;  %v760_v18 = vpop.f32.mrb[3].mxu0 }
  0xed   : > { %770 = vmatmul.mubr.msk.bf16.vlgmr.msra.gmra.mrb[4].mxu0 %vm319_vm4, %v316_v16  ;;  %776 = vmatmul.mubr.msk.bf16.vlgmr.msra.gmra.mrb[4].mxu1 %vm319_vm4, %v262_v15 }
  0xee   : > { %780 = vmatpush3.bf16.msra.mxu0 %v219_v3  ;;  %781 = vmatprep.mubr.msk.bf16.mxu0 %vm827_vm0, %v826_v0 }
  0xef   : > { %791 = vmatprep.subr.bf16.mxu0 %v826_v0  ;;  %787 = vmatprep.mubr.msk.bf16.mxu1 %vm827_vm0, %v826_v0 }
  0xf0   : > { %786 = vmatpush3.bf16.msra.mxu1 %v474_v22 }
  0xf1   : > { %797 = vmatprep.subr.bf16.mxu1 %v826_v0 }
  0xf5   : > { %782 = vmatmul.mubr.msk.bf16.vlgmr.msra.gmra.mrb[8].mxu0 %vm213_vm3, %v816_v19 }
  0xf6   : > { %792 = vmatpush3.bf16.msra.mxu0 %v219_v3  ;;  %793 = vmatprep.mubr.msk.bf16.mxu0 %vm827_vm0, %v826_v0 }
  0xfd   : > { %794 = vmatmul.mubr.msk.bf16.vlgmr.msra.gmra.mrb[12].mxu0 %vm213_vm3, %v817_v20 }
 0x1c0   : > { %v361_v23 = vpop.f32.mrb[4].mxu0  ;;  %v408_v24 = vpop.f32.mrb[4].mxu1 }
 0x1c1   : > { %v409_v25 = vadd.f32 %v408_v24, %v361_v23  ;;  %v771_v26 = vpop.f32.mrb[5].mxu0  ;;  %v777_v27 = vpop.f32.mrb[5].mxu1 }
 0x1c2   : > { %v364_v28 = vpop.f32.mrb[6].mxu0  ;;  %v411_v29 = vpop.f32.mrb[6].mxu1 }
 0x1c3   : > { %v412_v30 = vadd.f32 %v411_v29, %v364_v28  ;;  %v772_v31 = vpop.f32.mrb[7].mxu0  ;;  %v778_v32 = vpop.f32.mrb[7].mxu1 }
 0x1c8   : > { %v460_v33 = vpop.f32.mrb[8].mxu0 }
 0x1c9   : > { %v783_v35 = vpop.f32.mrb[9].mxu0 }
 0x1ca   : > { %v463_v36 = vpop.f32.mrb[10].mxu0 }
 0x1cb   : > { %v467_v37 = vpack.c.bf16 %v463_v36, %v460_v33  ;;  %v784_v38 = vpop.f32.mrb[11].mxu0 }
 0x1cd   : > { %788 = vmatmul.mubr.msk.bf16.vlgmr.msra.gmra.mrb[8].mxu1 %vm319_vm4, %v467_v37 }
 0x1ce   : > { %798 = vmatpush3.bf16.msra.mxu1 %v578_v39  ;;  %799 = vmatprep.mubr.msk.bf16.mxu1 %vm827_vm0, %v826_v0 }
 0x1d0   : > { %v564_v40 = vpop.f32.mrb[12].mxu0 }
 0x1d1   : > { %v795_v41 = vpop.f32.mrb[13].mxu0 }
 0x1d2   : > { %v567_v42 = vpop.f32.mrb[14].mxu0 }
 0x1d3   : > { %v571_v43 = vpack.c.bf16 %v567_v42, %v564_v40  ;;  %v796_v44 = vpop.f32.mrb[15].mxu0 }
 0x1d5   : > { %800 = vmatmul.mubr.msk.bf16.vlgmr.msra.gmra.mrb[12].mxu1 %vm319_vm4, %v571_v43 }
 0x2a0   : > { %v510_v45 = vpop.f32.mrb[8].mxu1 }
 0x2a1   : > { %v517_v46 = vadd.f32 %v510_v45, %v409_v25  ;;  %v789_v47 = vpop.f32.mrb[9].mxu1 }
 0x2a2   : > { %v513_v48 = vpop.f32.mrb[10].mxu1 }
 0x2a3   : > { %v518_v49 = vadd.f32 %v513_v48, %v412_v30  ;;  %v790_v50 = vpop.f32.mrb[11].mxu1 }
 0x2a8   : > { %v614_v51 = vpop.f32.mrb[12].mxu1 }
 0x2a9   : > { %v621_v53 = vadd.f32 %v614_v51, %v517_v46  ;;  %v801_v54 = vpop.f32.mrb[13].mxu1 }
 0x2aa   : > { %v617_v55 = vpop.f32.mrb[14].mxu1 }
 0x2ab   : > { %v630_v56 = vadd.f32 %v730_v52, %v621_v53  ;;  %v622_v57 = vadd.f32 %v617_v55, %v518_v49  ;;  %v802_v58 = vpop.f32.mrb[15].mxu1 }
 0x2ad   : > { %v737_v59 = vpack.c.bf16 %v630_v56, %v630_v56  ;;  %v631_v60 = vadd.f32 %v730_v52, %v622_v57 }
 0x2af   : > { %641 = vst.msk [vmem:[%s197_s18] sm:$0xf] %vm640_vm5, %v737_v59  ;;  %v738_v61 = vpack.c.bf16 %v631_v60, %v631_v60 }
 0x2b1   : > { %643 = vst.msk [vmem:[%s197_s18 + $0x4] sm:$0x3] %vm642_vm6, %v738_v61 }
 0x2b2 PF: > { %s14_s15 = sadd.s32 1, %s824_s15  }
 0x2b3   : > { %p11_p4 = scmp.ge.s32.totalorder %s14_s15, 4  }
 0x2b5   :  { %13 = sbr.rel (!%p11_p4) target bundleno = 1 (0x1), region = 72 }

// kernel: expansion_layer_forward.3
= control target key start
LH: loop header
LB: loop body
LE: loop exit
PB: predicated region body
PF: predicated region fallthrough
CT: control target
= control target key end

     0   :  { %s7625_s27 = smov 96   ;;  %vm94_vm0 = vcmask 261120   ;;  %s7626_s20 = smov 64   ;;  %v7627_v10 = vmov 0.0   ;;  %vm7628_vm1 = vmmov 0   ;;  %v275_v20 = vlaneseq  ;;  %s8897_s2 = inlined_call_operand.vmem [shape: bf16[32,96], index: 2, kind: input, shape index: {}]   ;;  %s8898_s0 = inlined_call_operand.vmem [shape: bf16[24,32], index: 0, kind: input, shape index: {}]   ;;  %s8899_s3 = inlined_call_operand.vmem [shape: f32[1,96], index: 3, kind: input, shape index: {}]   ;;  %s8900_s16 = inlined_call_operand.vmem [shape: bf16[4,32], index: 16, kind: input, shape index: {}]   ;;  %s8901_s4 = inlined_call_operand.vmem [shape: bf16[32,32], index: 4, kind: input, shape index: {}]   ;;  %s8902_s5 = inlined_call_operand.vmem [shape: f32[1,32], index: 5, kind: input, shape index: {}]   ;;  %s8903_s6 = inlined_call_operand.vmem [shape: bf16[32,96], index: 6, kind: input, shape index: {}]   ;;  %s8904_s1 = inlined_call_operand.vmem [shape: bf16[24,32], index: 1, kind: input, shape index: {}]   ;;  %s8905_s7 = inlined_call_operand.vmem [shape: f32[1,96], index: 7, kind: input, shape index: {}]   ;;  %s8906_s14 = inlined_call_operand.vmem [shape: f32[3,32], index: 14, kind: input, shape index: {}]   ;;  %s8907_s15 = inlined_call_operand.vmem [shape: f32[3,32], index: 15, kind: input, shape index: {}]   ;;  %s8908_s8 = inlined_call_operand.vmem [shape: bf16[32,32], index: 8, kind: input, shape index: {}]   ;;  %s8909_s9 = inlined_call_operand.vmem [shape: f32[1,32], index: 9, kind: input, shape index: {}]   ;;  %s8910_s10 = inlined_call_operand.vmem [shape: bf16[32,128], index: 10, kind: input, shape index: {}]   ;;  %s8911_s12 = inlined_call_operand.vmem [shape: bf16[128,32], index: 12, kind: input, shape index: {}]   ;;  %s8912_s11 = inlined_call_operand.vmem [shape: f32[1,128], index: 11, kind: input, shape index: {}]   ;;  %s8913_s13 = inlined_call_operand.vmem [shape: f32[1,32], index: 13, kind: input, shape index: {}]   ;;  %s8914_s17 = inlined_call_operand.vmem [shape: bf16[24,32], index: 17, kind: output, shape index: {}]  }
   0x1   :  { %8917 = sst [smem:[#allocation2_spill]] %s8897_s2  ;;  %v7739_v5 = vld [vmem:[%s8899_s3] ss:$0 sm:$0xff]  ;;  %6741 = vmatprep.subr.bf16.mxu1 %v7627_v10  ;;  %6743 = vmatprep.mubr.msk.bf16.mxu1 %vm7628_vm1, %v7627_v10  ;;  %v7629_v18 = vmov 1983009808   ;;  %vm652_vm2 = vcmask 27648  }
   0x2   :  { %8918 = sst [smem:[#allocation3_spill]] %s8898_s0  ;;  %s8919_s26 = sld [smem:[#allocation2_spill]]  ;;  %v273_v19 = vunpack.c.l.s4 %v7629_v18  ;;  %v7757_v25 = vshrl.u32 %v275_v20, 7  ;;  %v7762_v30 = vld [vmem:[%s8900_s16] sm:$0x1]  ;;  %vm729_vm3 = vcmask 1041408  }
   0x3   :  { %s8920_s18 = sld [smem:[#allocation3_spill]]  ;;  %v358_v35 = vpack.i.b16 %v7762_v30, %v7762_v30  ;;  %vm725_vm4 = vcmask 31744   ;;  %vm6311_vm5 = vcmask 257024  }
   0x4   :  { %v274_v24 = vunpack.c.0.s8 %v273_v19  ;;  %v7771_v36 = vsub.s32 0, %v7757_v25 }
   0x6   :  { %v7765_v31 = vsub.s32 %v274_v24, %v7757_v25  ;;  %v363_v43 = vrot.slane %v358_v35, %v7771_v36 }
   0x8   :  { %v7390_v0 = vld [vmem:[%s8919_s26] sm:$0xff]   ;;  %v7391_v1 = vld [vmem:[%s8919_s26 + $0x8] sm:$0xff]  }
   0x9   :  { %151 = vrot.lane.b32.xlu0 %v7390_v0, %s7625_s27  ;;  %6717 = vmatprep.subr.bf16.mxu0 %v7390_v0  ;;  %v57_v2 = vld [vmem:[%s8920_s18] sm:$0xff]   ;;  %v59_v3 = vld [vmem:[%s8920_s18 + $0x8] sm:$0xf] }
   0xa   :  { %6718 = vmatpush3.bf16.msra.mxu0 %v7390_v0  ;;  %210 = vrot.lane.b32.xlu1 %v7390_v0, %s7626_s20  ;;  %v6321_v4 = vcombine.low %v59_v3, %v59_v3 }
   0xb   :  { %6719 = vmatprep.subr.bf16.mxu0 %v7391_v1  ;;  %6721 = vmatprep.mubr.msk.bf16.mxu0 %vm94_vm0, %v57_v2 }
   0xd   :  { %153 = vrot.lane.b32.xlu0 %v7391_v1, %s7625_s27 }
   0xe   :  { %6720 = vmatpush3.bf16.msra.mxu0 %v7391_v1  ;;  %212 = vrot.lane.b32.xlu1 %v7391_v1, %s7626_s20 }
  0x11   :  { %6722 = vmatmul.mubr.msk.bf16.vlgmr.msra.gmra.mrb[0].mxu0 %vm94_vm0, %v6321_v4  ;;  %157 = vrot.lane.b32.xlu0 %v7739_v5, %s7625_s27 }
  0x12   :  { %6729 = vmatprep.mubr.msk.bf16.mxu0 %vm94_vm0, %v57_v2 }
  0x7b   :  { %v152_v6 = vpop.permute.xlu0 %151 }
  0x7c   :  { %6725 = vmatprep.subr.bf16.mxu0 %v152_v6  ;;  %v211_v8 = vpop.permute.xlu1 %210 }
  0x7d   :  { %6726 = vmatpush3.bf16.msra.mxu0 %v152_v6 }
  0x7f   :  { %v154_v7 = vpop.permute.xlu0 %153 }
  0x80   :  { %6727 = vmatprep.subr.bf16.mxu0 %v154_v7  ;;  %v213_v9 = vpop.permute.xlu1 %212 }
  0x81   :  { %6728 = vmatpush3.bf16.msra.mxu0 %v154_v7 }
  0x82   :  { %6733 = vmatprep.subr.bf16.mxu0 %v211_v8 }
  0x83   :  { %v158_v22 = vpop.permute.xlu0 %157 }
  0x84   :  { %6730 = vmatmul.mubr.msk.bf16.vlgmr.msra.gmra.mrb[4].mxu0 %vm94_vm0, %v6321_v4 }
  0x85   :  { %6734 = vmatpush3.bf16.msra.mxu0 %v211_v8  ;;  %6737 = vmatprep.mubr.msk.bf16.mxu0 %vm94_vm0, %v57_v2 }
  0x86   :  { %6735 = vmatprep.subr.bf16.mxu0 %v213_v9 }
  0x89   :  { %6736 = vmatpush3.bf16.msra.mxu0 %v213_v9 }
  0x8a   :  { %6747 = vmatprep.subr.bf16.mxu0 %v7627_v10 }
  0x8c   :  { %6738 = vmatmul.mubr.msk.bf16.vlgmr.msra.gmra.mrb[8].mxu0 %vm94_vm0, %v6321_v4 }
  0x8d   :  { %6749 = vmatprep.mubr.msk.bf16.mxu0 %vm7628_vm1, %v7627_v10 }
  0xe4   :  { %v6723_v11 = vpop.f32.mrb[0].mxu0 }
  0xe5   :  { %v135_v12 = vpop.f32.mrb[1].mxu0  ;;  %v144_v49 = vadd.f32 %v6723_v11, %v7739_v5 }
  0xe6   :  { %v136_v13 = vadd.f32 %v7739_v5, %v135_v12  ;;  %v6724_v14 = vpop.f32.mrb[2].mxu0 }
  0xe7   :  { %v138_v15 = vpop.f32.mrb[3].mxu0  ;;  %v150_v55 = vpack.c.bf16 %v144_v49, %v144_v49 }
  0xe8   :  { %v139_v16 = vadd.f32 %v7739_v5, %v138_v15 }
  0xe9   :  { %v7821_v59 = vrot.slane %v150_v55, %v7765_v31 }
  0xea   :  { %v149_v17 = vpack.c.bf16 %v139_v16, %v136_v13  ;;  %v6330_v44 = vpack.c.bf16 %v139_v16, %v139_v16 }
  0xeb   :  { %v7841_v63 = vcombine.high %v7821_v59, %v7821_v59  ;;  %v368_v0 = vmul.bf16 %v363_v43, %v7821_v59 }
  0xec   :  { %v7774_v37 = vrot.slane %v149_v17, %v7765_v31  ;;  %v7795_v50 = vrot.slane %v6330_v44, %v7765_v31 }
  0xed   :  { %v369_v1 = vmul.bf16 %v363_v43, %v7841_v63 }
  0xee   :  { %v7789_v45 = vcombine.high %v7774_v37, %v7774_v37  ;;  %v364_v47 = vmul.bf16 %v363_v43, %v7774_v37  ;;  %v7816_v56 = vcombine.high %v7795_v50, %v7795_v50  ;;  %v366_v58 = vmul.bf16 %v363_v43, %v7795_v50 }
  0xf0   :  { %v365_v52 = vmul.bf16 %v363_v43, %v7789_v45  ;;  %v367_v61 = vmul.bf16 %v363_v43, %v7816_v56 }
 0x157   :  { %v6731_v21 = vpop.f32.mrb[4].mxu0 }
 0x158   :  { %v194_v23 = vpop.f32.mrb[5].mxu0  ;;  %v203_v40 = vadd.f32 %v6731_v21, %v158_v22 }
 0x159   :  { %v6732_v26 = vpop.f32.mrb[6].mxu0  ;;  %v195_v28 = vadd.f32 %v194_v23, %v158_v22 }
 0x15a   :  { %v197_v27 = vpop.f32.mrb[7].mxu0  ;;  %v209_v46 = vpack.c.bf16 %v203_v40, %v203_v40 }
 0x15b   :  { %v198_v29 = vadd.f32 %v197_v27, %v158_v22 }
 0x15c   :  { %v327_v53 = vrot.slane %v209_v46, %v7765_v31 }
 0x15d   :  { %v208_v32 = vpack.c.bf16 %v198_v29, %v195_v28  ;;  %v6331_v33 = vpack.c.bf16 %v198_v29, %v198_v29 }
 0x15e   :  { %v328_v57 = vcombine.high %v327_v53, %v327_v53  ;;  %v7825_v60 = vsel %vm94_vm0, %v327_v53, 0 }
 0x15f   :  { %v311_v34 = vrot.slane %v208_v32, %v7765_v31  ;;  %v318_v41 = vrot.slane %v6331_v33, %v7765_v31  ;;  %v7852_v2 = vpop.f32.mrb[8].mxu0 }
 0x160   :  { %v7833_v62 = vsel %vm94_vm0, %v328_v57, 0  ;;  %v7854_v3 = vpop.f32.mrb[9].mxu0 }
 0x161   :  { %v7777_v38 = vsel %vm94_vm0, %v311_v34, 0  ;;  %v319_v39 = vcombine.high %v311_v34, %v311_v34  ;;  %v320_v48 = vcombine.high %v318_v41, %v318_v41  ;;  %v7799_v51 = vsel %vm94_vm0, %v318_v41, 0  ;;  %v6740_v4 = vpop.f32.mrb[10].mxu0 }
 0x162   :  { %6742 = vmatpush3.bf16.xpose.msra.mxu1 %v7777_v38  ;;  %v7856_v6 = vpop.f32.mrb[11].mxu0 }
 0x163   :  { %v7782_v42 = vsel %vm94_vm0, %v319_v39, 0  ;;  %6753 = vmatprep.subr.bf16.mxu1 %v7627_v10  ;;  %v7808_v54 = vsel %vm94_vm0, %v320_v48, 0 }
 0x164   :  { %6748 = vmatpush3.bf16.xpose.msra.mxu0 %v7782_v42 }
 0x165   :  { %6759 = vmatprep.subr.bf16.mxu0 %v7627_v10 }
 0x169   :  { %6744 = vmatmul.mubr.msk.bf16.vlgmr.msra.gmra.mrb[0].mxu1 %vm94_vm0, %v364_v47 }
 0x16a   :  { %6754 = vmatpush3.bf16.xpose.msra.mxu1 %v7799_v51  ;;  %6755 = vmatprep.mubr.msk.bf16.mxu1 %vm7628_vm1, %v7627_v10 }
 0x16b   :  { %6750 = vmatmul.mubr.msk.bf16.vlgmr.msra.gmra.mrb[12].mxu0 %vm94_vm0, %v365_v52  ;;  %6765 = vmatprep.subr.bf16.mxu1 %v7627_v10 }
 0x16c   :  { %6760 = vmatpush3.bf16.xpose.msra.mxu0 %v7808_v54  ;;  %6761 = vmatprep.mubr.msk.bf16.mxu0 %vm7628_vm1, %v7627_v10 }
 0x16d   :  { %6771 = vmatprep.subr.bf16.mxu0 %v7627_v10 }
 0x171   :  { %6756 = vmatmul.mubr.msk.bf16.vlgmr.msra.gmra.mrb[4].mxu1 %vm94_vm0, %v366_v58 }
 0x172   :  { %6766 = vmatpush3.bf16.xpose.msra.mxu1 %v7825_v60  ;;  %6767 = vmatprep.mubr.msk.bf16.mxu1 %vm7628_vm1, %v7627_v10 }
 0x173   :  { %6762 = vmatmul.mubr.msk.bf16.vlgmr.msra.gmra.mrb[16].mxu0 %vm94_vm0, %v367_v61  ;;  %6777 = vmatprep.subr.bf16.mxu1 %v7627_v10 }
 0x174   :  { %6772 = vmatpush3.bf16.xpose.msra.mxu0 %v7833_v62  ;;  %6773 = vmatprep.mubr.msk.bf16.mxu0 %vm7628_vm1, %v7627_v10 }
 0x175   :  { %6783 = vmatprep.subr.bf16.mxu0 %v7627_v10 }
 0x179   :  { %6768 = vmatmul.mubr.msk.bf16.vlgmr.msra.gmra.mrb[8].mxu1 %vm94_vm0, %v368_v0 }
 0x17a   :  { %6779 = vmatprep.mubr.msk.bf16.mxu1 %vm7628_vm1, %v7627_v10 }
 0x17b   :  { %6774 = vmatmul.mubr.msk.bf16.vlgmr.msra.gmra.mrb[20].mxu0 %vm94_vm0, %v369_v1 }
 0x17c   :  { %6785 = vmatprep.mubr.msk.bf16.mxu0 %vm7628_vm1, %v7627_v10 }
 0x23c   :  { %v410_v7 = vpop.f32.mrb[0].mxu1 }
 0x23d   :  { %v646_v8 = vmul.f32 0.35355338, %v410_v7  ;;  %v6745_v9 = vpop.f32.mrb[1].mxu1 }
 0x23e   :  { %v413_v11 = vpop.f32.mrb[2].mxu1  ;;  %v456_v12 = vpop.f32.mrb[12].mxu0 }
 0x23f   :  { %v647_v13 = vmul.f32 0.35355338, %v456_v12  ;;  %v6746_v14 = vpop.f32.mrb[3].mxu1  ;;  %v6751_v15 = vpop.f32.mrb[13].mxu0  ;;  %v653_v16 = vsel %vm652_vm2, %v646_v8, -inf }
 0x240   :  { %654 = vmax.xlane.f32.xlu1 %v653_v16  ;;  %v459_v17 = vpop.f32.mrb[14].mxu0 }
 0x241   :  { %v6752_v18 = vpop.f32.mrb[15].mxu0  ;;  %v656_v19 = vsel %vm652_vm2, %v647_v13, -inf }
 0x242   :  { %657 = vmax.xlane.f32.xlu0 %v656_v19 }
 0x244   :  { %v502_v20 = vpop.f32.mrb[4].mxu1 }
 0x245   :  { %v648_v21 = vmul.f32 0.35355338, %v502_v20  ;;  %v6757_v22 = vpop.f32.mrb[5].mxu1 }
 0x246   :  { %v505_v23 = vpop.f32.mrb[6].mxu1  ;;  %v548_v24 = vpop.f32.mrb[16].mxu0 }
 0x247   :  { %v649_v26 = vmul.f32 0.35355338, %v548_v24  ;;  %v6758_v27 = vpop.f32.mrb[7].mxu1  ;;  %v6763_v28 = vpop.f32.mrb[17].mxu0  ;;  %v659_v29 = vsel %vm652_vm2, %v648_v21, -inf }
 0x248   :  { %660 = vmax.xlane.f32.xlu0 %v659_v29  ;;  %v551_v32 = vpop.f32.mrb[18].mxu0 }
 0x249   :  { %v6764_v33 = vpop.f32.mrb[19].mxu0  ;;  %v662_v34 = vsel %vm652_vm2, %v649_v26, -inf }
 0x24a   :  { %663 = vmax.xlane.f32.xlu1 %v662_v34 }
 0x24c   :  { %v594_v35 = vpop.f32.mrb[8].mxu1 }
 0x24d   :  { %v650_v39 = vmul.f32 0.35355338, %v594_v35  ;;  %v6769_v40 = vpop.f32.mrb[9].mxu1 }
 0x24e   :  { %v597_v41 = vpop.f32.mrb[10].mxu1  ;;  %v640_v43 = vpop.f32.mrb[20].mxu0 }
 0x24f   :  { %v651_v44 = vmul.f32 0.35355338, %v640_v43  ;;  %v6770_v46 = vpop.f32.mrb[11].mxu1  ;;  %v6775_v47 = vpop.f32.mrb[21].mxu0  ;;  %v665_v48 = vsel %vm652_vm2, %v650_v39, -inf }
 0x250   :  { %666 = vmax.xlane.f32.xlu0 %v665_v48  ;;  %v643_v49 = vpop.f32.mrb[22].mxu0 }
 0x251   :  { %v6776_v52 = vpop.f32.mrb[23].mxu0  ;;  %v668_v53 = vsel %vm652_vm2, %v651_v44, -inf }
 0x252   :  { %669 = vmax.xlane.f32.xlu1 %v668_v53 }
 0x2cd   :  { %v655_v55 = vpop.xlane.xlu1 %654 }
 0x2ce   :  { %v671_v57 = vsub.f32 %v646_v8, %v655_v55 }
 0x2cf   :  { %v658_v58 = vpop.xlane.xlu0 %657 }
 0x2d0   :  { %v677_v61 = vmul.f32 1.442695, %v671_v57  ;;  %v672_v0 = vsub.f32 %v647_v13, %v658_v58 }
 0x2d2   :  { %7413 = vpow2.f32 %v677_v61  ;;  %v679_v1 = vmul.f32 1.442695, %v672_v0 }
 0x2d4   :  { %7415 = vpow2.f32 %v679_v1 }
 0x2d5   :  { %v661_v4 = vpop.xlane.xlu0 %660 }
 0x2d6   :  { %v673_v7 = vsub.f32 %v648_v21, %v661_v4 }
 0x2d7   :  { %v664_v9 = vpop.xlane.xlu1 %663 }
 0x2d8   :  { %v681_v11 = vmul.f32 1.442695, %v673_v7  ;;  %v674_v12 = vsub.f32 %v649_v26, %v664_v9 }
 0x2da   :  { %7417 = vpow2.f32 %v681_v11  ;;  %v683_v14 = vmul.f32 1.442695, %v674_v12 }
 0x2dc   :  { %v7414_v15 = vpop.eup %7413  ;;  %7419 = vpow2.f32 %v683_v14 }
 0x2dd   :  { %v667_v16 = vpop.xlane.xlu0 %666  ;;  %v689_v17 = vsel %vm652_vm2, %v7414_v15, 0.0 }
 0x2de   :  { %v7416_v18 = vpop.eup %7415  ;;  %v675_v8 = vsub.f32 %v650_v39, %v667_v16  ;;  %690 = vadd.xlane.f32.xlu0 %v689_v17 }
 0x2df   :  { %v670_v19 = vpop.xlane.xlu1 %669  ;;  %v692_v13 = vsel %vm652_vm2, %v7416_v18, 0.0 }
 0x2e0   :  { %v685_v20 = vmul.f32 1.442695, %v675_v8  ;;  %v676_v22 = vsub.f32 %v651_v44, %v670_v19  ;;  %693 = vadd.xlane.f32.xlu1 %v692_v13 }
 0x2e2   :  { %7421 = vpow2.f32 %v685_v20  ;;  %v687_v21 = vmul.f32 1.442695, %v676_v22  ;;  %v7917_v22 = vld [vmem:[%s8900_s16] sm:$0x1] }
 0x2e4   :  { %v7418_v23 = vpop.eup %7417  ;;  %7423 = vpow2.f32 %v687_v21 }
 0x2e5   :  { %v695_v24 = vsel %vm652_vm2, %v7418_v23, 0.0 }
 0x2e6   :  { %v7420_v26 = vpop.eup %7419  ;;  %696 = vadd.xlane.f32.xlu0 %v695_v24 }
 0x2e7   :  { %v698_v27 = vsel %vm652_vm2, %v7420_v26, 0.0 }
 0x2e8   :  { %699 = vadd.xlane.f32.xlu1 %v698_v27 }
 0x2ec   :  { %v7868_v28 = vpop.eup %7421 }
 0x2ed   :  { %v701_v29 = vsel %vm652_vm2, %v7868_v28, 0.0 }
 0x2ee   :  { %v7872_v32 = vpop.eup %7423  ;;  %702 = vadd.xlane.f32.xlu0 %v701_v29 }
 0x2ef   :  { %v704_v33 = vsel %vm652_vm2, %v7872_v32, 0.0 }
 0x2f0   :  { %705 = vadd.xlane.f32.xlu1 %v704_v33 }
 0x304   :  { %216 = vrot.lane.b32.xlu0 %v7739_v5, %s7626_s20 }
 0x36b   :  { %v691_v34 = vpop.xlane.xlu0 %690 }
 0x36c   :  { %7425 = vrcp.f32 %v691_v34 }
 0x36d   :  { %v694_v35 = vpop.xlane.xlu1 %693 }
 0x36e   :  { %7427 = vrcp.f32 %v694_v35 }
 0x373   :  { %v697_v39 = vpop.xlane.xlu0 %696 }
 0x374   :  { %7429 = vrcp.f32 %v697_v39 }
 0x375   :  { %v700_v41 = vpop.xlane.xlu1 %699 }
 0x376   :  { %v7426_v47 = vpop.eup %7425  ;;  %7431 = vrcp.f32 %v700_v41 }
 0x377   :  { %v713_v55 = vmul.f32 %v7426_v47, %v7414_v15 }
 0x378   :  { %v7428_v52 = vpop.eup %7427 }
 0x379   :  { %v714_v0 = vmul.f32 %v7428_v52, %v7416_v18 }
 0x37b   :  { %v703_v40 = vpop.xlane.xlu0 %702  ;;  %v720_v11 = vpack.c.bf16 %v714_v0, %v714_v0 }
 0x37c   :  { %7433 = vrcp.f32 %v703_v40 }
 0x37d   :  { %v706_v58 = vpop.xlane.xlu1 %705 }
 0x37e   :  { %v7430_v7 = vpop.eup %7429  ;;  %7435 = vrcp.f32 %v706_v58 }
 0x37f   :  { %v217_v43 = vpop.permute.xlu0 %216  ;;  %v715_v15 = vmul.f32 %v7430_v7, %v7418_v23 }
 0x380   :  { %v254_v44 = vadd.f32 %v7854_v3, %v217_v43  ;;  %v257_v46 = vadd.f32 %v7856_v6, %v217_v43  ;;  %v262_v5 = vadd.f32 %v7852_v2, %v217_v43  ;;  %v719_v2 = vpack.c.bf16 %v713_v55, %v713_v55  ;;  %v7432_v12 = vpop.eup %7431 }
 0x381   :  { %v716_v17 = vmul.f32 %v7432_v12, %v7420_v26  ;;  %v721_v18 = vpack.c.bf16 %v715_v15, %v715_v15  ;;  %v1022_v26 = vshrl.u32 %v7917_v22, 16 }
 0x382   :  { %v267_v48 = vpack.c.bf16 %v257_v46, %v254_v44  ;;  %v6332_v49 = vpack.c.bf16 %v257_v46, %v257_v46  ;;  %v268_v6 = vpack.c.bf16 %v262_v5, %v262_v5 }
 0x383   :  { %v722_v20 = vpack.c.bf16 %v716_v17, %v716_v17  ;;  %v1023_v33 = vpack.i.b16 %v1022_v26, %v1022_v26 }
 0x384   :  { %v338_v53 = vrot.slane %v267_v48, %v7765_v31  ;;  %v345_v57 = vrot.slane %v6332_v49, %v7765_v31  ;;  %v354_v16 = vrot.slane %v268_v6, %v7765_v31 }
 0x386   :  { %v7884_v61 = vsel %vm729_vm3, %v338_v53, 0  ;;  %v346_v3 = vcombine.high %v338_v53, %v338_v53  ;;  %v347_v4 = vcombine.high %v345_v57, %v345_v57  ;;  %v7894_v9 = vsel %vm729_vm3, %v345_v57, 0  ;;  %v7434_v19 = vpop.eup %7433 }
 0x387   :  { %6778 = vmatpush3.bf16.msra.mxu1 %v7884_v61  ;;  %v355_v8 = vcombine.high %v354_v16, %v354_v16  ;;  %v7912_v13 = vsel %vm729_vm3, %v354_v16, 0  ;;  %v717_v24 = vmul.f32 %v7434_v19, %v7868_v28  ;;  %v1028_v28 = vrot.slane %v1023_v33, %v7771_v36 }
 0x388   :  { %v7888_v1 = vsel %vm729_vm3, %v346_v3, 0  ;;  %6789 = vmatprep.subr.bf16.mxu1 %v7627_v10  ;;  %v7902_v14 = vsel %vm729_vm3, %v347_v4, 0  ;;  %v7436_v21 = vpop.eup %7435 }
 0x389   :  { %6784 = vmatpush3.bf16.msra.mxu0 %v7888_v1  ;;  %v7924_v23 = vsel %vm729_vm3, %v355_v8, 0  ;;  %v718_v27 = vmul.f32 %v7436_v21, %v7872_v32  ;;  %v723_v29 = vpack.c.bf16 %v717_v24, %v717_v24  ;;  %v1029_v32 = vmul.bf16 %v1028_v28, %v7774_v37 }
 0x38a   :  { %6780 = vmatmul.mubr.msk.bf16.vlgmr.msra.gmra.mrb[12].mxu1 %vm725_vm4, %v719_v2  ;;  %6795 = vmatprep.subr.bf16.mxu0 %v7627_v10  ;;  %v1030_v35 = vmul.bf16 %v1028_v28, %v7789_v45  ;;  %v1031_v39 = vmul.bf16 %v1028_v28, %v7795_v50  ;;  %v1032_v40 = vmul.bf16 %v1028_v28, %v7816_v56 }
 0x38b   :  { %6790 = vmatpush3.bf16.msra.mxu1 %v7894_v9  ;;  %6791 = vmatprep.mubr.msk.bf16.mxu1 %vm7628_vm1, %v7627_v10  ;;  %v724_v34 = vpack.c.bf16 %v718_v27, %v718_v27  ;;  %v1033_v41 = vmul.bf16 %v1028_v28, %v7821_v59  ;;  %v1034_v43 = vmul.bf16 %v1028_v28, %v7841_v63 }
 0x38c   :  { %6786 = vmatmul.mubr.msk.bf16.vlgmr.msra.gmra.mrb[24].mxu0 %vm725_vm4, %v720_v11  ;;  %6801 = vmatprep.subr.bf16.mxu1 %v7627_v10 }
 0x38d   :  { %6796 = vmatpush3.bf16.msra.mxu0 %v7902_v14  ;;  %6797 = vmatprep.mubr.msk.bf16.mxu0 %vm7628_vm1, %v7627_v10 }
 0x38e   :  { %6807 = vmatprep.subr.bf16.mxu0 %v7627_v10 }
 0x392   :  { %6792 = vmatmul.mubr.msk.bf16.vlgmr.msra.gmra.mrb[16].mxu1 %vm725_vm4, %v721_v18 }
 0x393   :  { %6802 = vmatpush3.bf16.msra.mxu1 %v7912_v13  ;;  %6803 = vmatprep.mubr.msk.bf16.mxu1 %vm7628_vm1, %v7627_v10 }
 0x394   :  { %6798 = vmatmul.mubr.msk.bf16.vlgmr.msra.gmra.mrb[28].mxu0 %vm725_vm4, %v722_v20  ;;  %6813 = vmatprep.subr.bf16.mxu1 %v7627_v10 }
 0x395   :  { %6808 = vmatpush3.bf16.msra.mxu0 %v7924_v23  ;;  %6809 = vmatprep.mubr.msk.bf16.mxu0 %vm7628_vm1, %v7627_v10 }
 0x396   :  { %6819 = vmatprep.subr.bf16.mxu0 %v7627_v10 }
 0x39a   :  { %6804 = vmatmul.mubr.msk.bf16.vlgmr.msra.gmra.mrb[20].mxu1 %vm725_vm4, %v723_v29 }
 0x39b   :  { %6815 = vmatprep.mubr.msk.bf16.mxu1 %vm7628_vm1, %v7627_v10 }
 0x39c   :  { %6814 = vmatpush3.bf16.xpose.msra.mxu1 %v7777_v38  ;;  %6810 = vmatmul.mubr.msk.bf16.vlgmr.msra.gmra.mrb[32].mxu0 %vm725_vm4, %v724_v34 }
 0x39d   :  { %6825 = vmatprep.subr.bf16.mxu1 %v7627_v10  ;;  %6821 = vmatprep.mubr.msk.bf16.mxu0 %vm7628_vm1, %v7627_v10 }
 0x39e   :  { %6820 = vmatpush3.bf16.xpose.msra.mxu0 %v7782_v42 }
 0x39f   :  { %6831 = vmatprep.subr.bf16.mxu0 %v7627_v10 }
 0x3a3   :  { %6816 = vmatmul.mubr.msk.bf16.vlgmr.msra.gmra.mrb[24].mxu1 %vm94_vm0, %v1029_v32 }
 0x3a4   :  { %6826 = vmatpush3.bf16.xpose.msra.mxu1 %v7799_v51  ;;  %6827 = vmatprep.mubr.msk.bf16.mxu1 %vm7628_vm1, %v7627_v10 }
 0x3a5   :  { %6822 = vmatmul.mubr.msk.bf16.vlgmr.msra.gmra.mrb[36].mxu0 %vm94_vm0, %v1030_v35  ;;  %6837 = vmatprep.subr.bf16.mxu1 %v7627_v10 }
 0x3a6   :  { %6832 = vmatpush3.bf16.xpose.msra.mxu0 %v7808_v54  ;;  %6833 = vmatprep.mubr.msk.bf16.mxu0 %vm7628_vm1, %v7627_v10 }
 0x3a7   :  { %6843 = vmatprep.subr.bf16.mxu0 %v7627_v10 }
 0x3ab   :  { %6828 = vmatmul.mubr.msk.bf16.vlgmr.msra.gmra.mrb[28].mxu1 %vm94_vm0, %v1031_v39 }
 0x3ac   :  { %6838 = vmatpush3.bf16.xpose.msra.mxu1 %v7825_v60  ;;  %6839 = vmatprep.mubr.msk.bf16.mxu1 %vm7628_vm1, %v7627_v10 }
 0x3ad   :  { %6834 = vmatmul.mubr.msk.bf16.vlgmr.msra.gmra.mrb[40].mxu0 %vm94_vm0, %v1032_v40  ;;  %6849 = vmatprep.subr.bf16.mxu1 %v7627_v10 }
 0x3ae   :  { %6844 = vmatpush3.bf16.xpose.msra.mxu0 %v7833_v62  ;;  %6845 = vmatprep.mubr.msk.bf16.mxu0 %vm7628_vm1, %v7627_v10 }
 0x3af   :  { %6855 = vmatprep.subr.bf16.mxu0 %v7627_v10 }
 0x3b3   :  { %6840 = vmatmul.mubr.msk.bf16.vlgmr.msra.gmra.mrb[32].mxu1 %vm94_vm0, %v1033_v41 }
 0x3b4   :  { %6850 = vmatpush3.bf16.msra.mxu1 %v7884_v61  ;;  %6851 = vmatprep.mubr.msk.bf16.mxu1 %vm7628_vm1, %v7627_v10 }
 0x3b5   :  { %6846 = vmatmul.mubr.msk.bf16.vlgmr.msra.gmra.mrb[44].mxu0 %vm94_vm0, %v1034_v43  ;;  %6861 = vmatprep.subr.bf16.mxu1 %v7627_v10 }
 0x3b6   :  { %6856 = vmatpush3.bf16.msra.mxu0 %v7888_v1  ;;  %6857 = vmatprep.mubr.msk.bf16.mxu0 %vm7628_vm1, %v7627_v10 }
 0x3b7   :  { %6867 = vmatprep.subr.bf16.mxu0 %v7627_v10 }
 0x45d   :  { %v7981_v44 = vpop.f32.mrb[12].mxu1 }
 0x45e   :  { %v6781_v46 = vpop.f32.mrb[13].mxu1 }
 0x45f   :  { %v770_v47 = vpop.f32.mrb[14].mxu1  ;;  %v7983_v48 = vpop.f32.mrb[24].mxu0 }
 0x460   :  { %v6782_v49 = vpop.f32.mrb[15].mxu1  ;;  %v6787_v52 = vpop.f32.mrb[25].mxu0 }
 0x461   :  { %v816_v5 = vpop.f32.mrb[26].mxu0 }
 0x462   :  { %v6788_v53 = vpop.f32.mrb[27].mxu0 }
 0x465   :  { %v7985_v55 = vpop.f32.mrb[16].mxu1 }
 0x466   :  { %v6793_v57 = vpop.f32.mrb[17].mxu1 }
 0x467   :  { %v862_v58 = vpop.f32.mrb[18].mxu1  ;;  %v7987_v3 = vpop.f32.mrb[28].mxu0 }
 0x468   :  { %v6794_v0 = vpop.f32.mrb[19].mxu1  ;;  %v6799_v6 = vpop.f32.mrb[29].mxu0 }
 0x469   :  { %v908_v2 = vpop.f32.mrb[30].mxu0 }
 0x46a   :  { %v6800_v4 = vpop.f32.mrb[31].mxu0 }
 0x46d   :  { %v7989_v7 = vpop.f32.mrb[20].mxu1 }
 0x46e   :  { %v6805_v11 = vpop.f32.mrb[21].mxu1 }
 0x46f   :  { %v954_v12 = vpop.f32.mrb[22].mxu1  ;;  %v7991_v15 = vpop.f32.mrb[32].mxu0 }
 0x470   :  { %v6806_v16 = vpop.f32.mrb[23].mxu1  ;;  %v6811_v17 = vpop.f32.mrb[33].mxu0 }
 0x471   :  { %v1000_v18 = vpop.f32.mrb[34].mxu0 }
 0x472   :  { %v6812_v8 = vpop.f32.mrb[35].mxu0 }
 0x476   :  { %v1072_v19 = vpop.f32.mrb[24].mxu1 }
 0x477   :  { %v1293_v20 = vmul.f32 0.35355338, %v1072_v19  ;;  %v6817_v21 = vpop.f32.mrb[25].mxu1 }
 0x478   :  { %v1075_v24 = vpop.f32.mrb[26].mxu1  ;;  %v1115_v26 = vpop.f32.mrb[36].mxu0 }
 0x479   :  { %v1294_v27 = vmul.f32 0.35355338, %v1115_v26  ;;  %v6818_v29 = vpop.f32.mrb[27].mxu1  ;;  %v6823_v33 = vpop.f32.mrb[37].mxu0  ;;  %v1299_v34 = vsel %vm652_vm2, %v1293_v20, -inf }
 0x47a   :  { %1300 = vmax.xlane.f32.xlu1 %v1299_v34  ;;  %v1118_v28 = vpop.f32.mrb[38].mxu0 }
 0x47b   :  { %v6824_v32 = vpop.f32.mrb[39].mxu0  ;;  %v1302_v35 = vsel %vm652_vm2, %v1294_v27, -inf }
 0x47e   :  { %v1158_v39 = vpop.f32.mrb[28].mxu1  ;;  %1303 = vmax.xlane.f32.xlu1 %v1302_v35 }
 0x47f   :  { %v1295_v40 = vmul.f32 0.35355338, %v1158_v39  ;;  %v6829_v41 = vpop.f32.mrb[29].mxu1 }
 0x480   :  { %v1161_v43 = vpop.f32.mrb[30].mxu1  ;;  %v1201_v46 = vpop.f32.mrb[40].mxu0 }
 0x481   :  { %v1296_v47 = vmul.f32 0.35355338, %v1201_v46  ;;  %v6830_v49 = vpop.f32.mrb[31].mxu1  ;;  %v6835_v52 = vpop.f32.mrb[41].mxu0  ;;  %v1305_v5 = vsel %vm652_vm2, %v1295_v40, -inf }
 0x482   :  { %1306 = vmax.xlane.f32.xlu1 %v1305_v5  ;;  %v1204_v53 = vpop.f32.mrb[42].mxu0 }
 0x483   :  { %v6836_v57 = vpop.f32.mrb[43].mxu0  ;;  %v1308_v58 = vsel %vm652_vm2, %v1296_v47, -inf }
 0x486   :  { %v1244_v0 = vpop.f32.mrb[32].mxu1  ;;  %1309 = vmax.xlane.f32.xlu1 %v1308_v58 }
 0x487   :  { %v1297_v6 = vmul.f32 0.35355338, %v1244_v0  ;;  %v6841_v2 = vpop.f32.mrb[33].mxu1 }
 0x488   :  { %v1247_v4 = vpop.f32.mrb[34].mxu1  ;;  %v1287_v11 = vpop.f32.mrb[44].mxu0 }
 0x489   :  { %v1298_v12 = vmul.f32 0.35355338, %v1287_v11  ;;  %v6842_v16 = vpop.f32.mrb[35].mxu1  ;;  %v6847_v17 = vpop.f32.mrb[45].mxu0  ;;  %v1311_v18 = vsel %vm652_vm2, %v1297_v6, -inf }
 0x48a   :  { %1312 = vmax.xlane.f32.xlu1 %v1311_v18  ;;  %v1290_v8 = vpop.f32.mrb[46].mxu0 }
 0x48b   :  { %v6848_v19 = vpop.f32.mrb[47].mxu0  ;;  %v1314_v21 = vsel %vm652_vm2, %v1298_v12, -inf }
 0x48e   :  { %1315 = vmax.xlane.f32.xlu1 %v1314_v21 }
 0x507   :  { %v1301_v24 = vpop.xlane.xlu1 %1300 }
 0x508   :  { %v1317_v26 = vsub.f32 %v1293_v20, %v1301_v24 }
 0x50a   :  { %v1323_v29 = vmul.f32 1.442695, %v1317_v26 }
 0x50b   :  { %v1304_v33 = vpop.xlane.xlu1 %1303 }
 0x50c   :  { %7437 = vpow2.f32 %v1323_v29  ;;  %v1318_v34 = vsub.f32 %v1294_v27, %v1304_v33 }
 0x50e   :  { %v1325_v28 = vmul.f32 1.442695, %v1318_v34 }
 0x50f   :  { %v1307_v32 = vpop.xlane.xlu1 %1306 }
 0x510   :  { %7439 = vpow2.f32 %v1325_v28  ;;  %v1319_v35 = vsub.f32 %v1295_v40, %v1307_v32 }
 0x512   :  { %v1327_v39 = vmul.f32 1.442695, %v1319_v35 }
 0x513   :  { %v1310_v41 = vpop.xlane.xlu1 %1309 }
 0x514   :  { %7441 = vpow2.f32 %v1327_v39  ;;  %v1320_v43 = vsub.f32 %v1296_v47, %v1310_v41 }
 0x516   :  { %v7438_v46 = vpop.eup %7437  ;;  %v1329_v49 = vmul.f32 1.442695, %v1320_v43 }
 0x517   :  { %v1313_v52 = vpop.xlane.xlu1 %1312  ;;  %v1335_v5 = vsel %vm652_vm2, %v7438_v46, 0.0 }
 0x518   :  { %7443 = vpow2.f32 %v1329_v49  ;;  %v1321_v53 = vsub.f32 %v1297_v6, %v1313_v52  ;;  %1336 = vadd.xlane.f32.xlu0 %v1335_v5 }
 0x51a   :  { %v7440_v20 = vpop.eup %7439  ;;  %v1331_v57 = vmul.f32 1.442695, %v1321_v53 }
 0x51b   :  { %v1316_v58 = vpop.xlane.xlu1 %1315  ;;  %v1338_v27 = vsel %vm652_vm2, %v7440_v20, 0.0 }
 0x51c   :  { %7445 = vpow2.f32 %v1331_v57  ;;  %v1322_v0 = vsub.f32 %v1298_v12, %v1316_v58  ;;  %1339 = vadd.xlane.f32.xlu1 %v1338_v27  ;;  %v8031_v27 = vsub.s32 1, %v7757_v25 }
 0x51e   :  { %v7442_v40 = vpop.eup %7441  ;;  %v1333_v2 = vmul.f32 1.442695, %v1322_v0 }
 0x51f   :  { %v1341_v47 = vsel %vm652_vm2, %v7442_v40, 0.0 }
 0x520   :  { %7447 = vpow2.f32 %v1333_v2  ;;  %1342 = vadd.xlane.f32.xlu1 %v1341_v47 }
 0x522   :  { %v7444_v4 = vpop.eup %7443 }
 0x523   :  { %v1344_v11 = vsel %vm652_vm2, %v7444_v4, 0.0 }
 0x524   :  { %1345 = vadd.xlane.f32.xlu1 %v1344_v11 }
 0x526   :  { %v7446_v6 = vpop.eup %7445 }
 0x527   :  { %v1347_v16 = vsel %vm652_vm2, %v7446_v6, 0.0 }
 0x528   :  { %1348 = vadd.xlane.f32.xlu1 %v1347_v16 }
 0x52a   :  { %v7448_v17 = vpop.eup %7447 }
 0x52b   :  { %v1350_v18 = vsel %vm652_vm2, %v7448_v17, 0.0 }
 0x52c   :  { %1351 = vadd.xlane.f32.xlu1 %v1350_v18 }
 0x5a5   :  { %v1337_v12 = vpop.xlane.xlu0 %1336 }
 0x5a6   :  { %7449 = vrcp.f32 %v1337_v12  ;;  %v1003_v12 = vunpack.c.l.bf16 %v7762_v30 }
 0x5a9   :  { %v1340_v8 = vpop.xlane.xlu1 %1339 }
 0x5aa   :  { %7451 = vrcp.f32 %v1340_v8  ;;  %v1629_v8 = vunpack.c.l.bf16 %v7917_v22 }
 0x5ad   :  { %v1343_v19 = vpop.xlane.xlu1 %1342 }
 0x5ae   :  { %7453 = vrcp.f32 %v1343_v19  ;;  %v1007_v19 = vrot.slane %v1003_v12, %v7771_v36 }
 0x5b0   :  { %v7450_v21 = vpop.eup %7449 }
 0x5b1   :  { %v1346_v24 = vpop.xlane.xlu1 %1345  ;;  %v1359_v26 = vmul.f32 %v7450_v21, %v7438_v46  ;;  %v1633_v21 = vrot.slane %v1629_v8, %v8031_v27 }
 0x5b2   :  { %7455 = vrcp.f32 %v1346_v24 }
 0x5b3   :  { %v1365_v29 = vpack.c.bf16 %v1359_v26, %v1359_v26  ;;  %v1008_v26 = vmul.f32 %v1007_v19, %v7981_v44 }
 0x5b4   :  { %v7452_v33 = vpop.eup %7451 }
 0x5b5   :  { %v1360_v34 = vmul.f32 %v7452_v33, %v7440_v20  ;;  %6852 = vmatmul.mubr.msk.bf16.vlgmr.msra.gmra.mrb[36].mxu1 %vm725_vm4, %v1365_v29  ;;  %v1349_v28 = vpop.xlane.xlu1 %1348  ;;  %v8024_v20 = vld [vmem:[%s8900_s16] sm:$0x2] }
 0x5b6   :  { %6862 = vmatpush3.bf16.msra.mxu1 %v7894_v9  ;;  %7457 = vrcp.f32 %v1349_v28  ;;  %6863 = vmatprep.mubr.msk.bf16.mxu1 %vm7628_vm1, %v7627_v10  ;;  %v1648_v0 = vpack.i.b16 %v8024_v20, %v8024_v20 }
 0x5b7   :  { %v1366_v32 = vpack.c.bf16 %v1360_v34, %v1360_v34  ;;  %6873 = vmatprep.subr.bf16.mxu1 %v7627_v10 }
 0x5b8   :  { %v7454_v35 = vpop.eup %7453  ;;  %v1653_v47 = vrot.slane %v1648_v0, %v8031_v27 }
 0x5b9   :  { %v1361_v39 = vmul.f32 %v7454_v35, %v7442_v40  ;;  %6858 = vmatmul.mubr.msk.bf16.vlgmr.msra.gmra.mrb[48].mxu0 %vm725_vm4, %v1366_v32  ;;  %v1352_v41 = vpop.xlane.xlu1 %1351 }
 0x5ba   :  { %6868 = vmatpush3.bf16.msra.mxu0 %v7902_v14  ;;  %7459 = vrcp.f32 %v1352_v41  ;;  %6869 = vmatprep.mubr.msk.bf16.mxu0 %vm7628_vm1, %v7627_v10  ;;  %v1655_v11 = vmul.bf16 %v1653_v47, %v7789_v45  ;;  %v1657_v16 = vmul.bf16 %v1653_v47, %v7816_v56  ;;  %v1659_v18 = vmul.bf16 %v1653_v47, %v7841_v63 }
 0x5bb   :  { %v1367_v43 = vpack.c.bf16 %v1361_v39, %v1361_v39  ;;  %6879 = vmatprep.subr.bf16.mxu0 %v7627_v10  ;;  %v1009_v39 = vmul.f32 %v1007_v19, %v7983_v48 }
 0x5bc   :  { %v7456_v46 = vpop.eup %7455 }
 0x5bd   :  { %v1362_v49 = vmul.f32 %v7456_v46, %v7444_v4  ;;  %6864 = vmatmul.mubr.msk.bf16.vlgmr.msra.gmra.mrb[40].mxu1 %vm725_vm4, %v1367_v43  ;;  %v1654_v4 = vmul.bf16 %v1653_v47, %v7774_v37 }
 0x5be   :  { %6874 = vmatpush3.bf16.msra.mxu1 %v7912_v13  ;;  %6875 = vmatprep.mubr.msk.bf16.mxu1 %vm7628_vm1, %v7627_v10 }
 0x5bf   :  { %v1368_v52 = vpack.c.bf16 %v1362_v49, %v1362_v49  ;;  %6885 = vmatprep.subr.bf16.mxu1 %v7627_v10 }
 0x5c0   :  { %v7458_v5 = vpop.eup %7457 }
 0x5c1   :  { %v1363_v53 = vmul.f32 %v7458_v5, %v7446_v6  ;;  %6870 = vmatmul.mubr.msk.bf16.vlgmr.msra.gmra.mrb[52].mxu0 %vm725_vm4, %v1368_v52  ;;  %v1656_v6 = vmul.bf16 %v1653_v47, %v7795_v50  ;;  %v1010_v52 = vmul.f32 %v1007_v19, %v7985_v55 }
 0x5c2   :  { %6880 = vmatpush3.bf16.msra.mxu0 %v7924_v23  ;;  %6881 = vmatprep.mubr.msk.bf16.mxu0 %vm7628_vm1, %v7627_v10 }
 0x5c3   :  { %v1369_v57 = vpack.c.bf16 %v1363_v53, %v1363_v53  ;;  %6891 = vmatprep.subr.bf16.mxu0 %v7627_v10 }
 0x5c4   :  { %v7460_v58 = vpop.eup %7459 }
 0x5c5   :  { %v1364_v40 = vmul.f32 %v7460_v58, %v7448_v17  ;;  %6876 = vmatmul.mubr.msk.bf16.vlgmr.msra.gmra.mrb[44].mxu1 %vm725_vm4, %v1369_v57  ;;  %v1658_v17 = vmul.bf16 %v1653_v47, %v7821_v59 }
 0x5c6   :  { %6887 = vmatprep.mubr.msk.bf16.mxu1 %vm7628_vm1, %v7627_v10 }
 0x5c7   :  { %6886 = vmatpush3.bf16.xpose.msra.mxu1 %v7777_v38  ;;  %v1370_v2 = vpack.c.bf16 %v1364_v40, %v1364_v40  ;;  %v1011_v40 = vmul.f32 %v1007_v19, %v7987_v3 }
 0x5c8   :  { %6897 = vmatprep.subr.bf16.mxu1 %v7627_v10 }
 0x5c9   :  { %6882 = vmatmul.mubr.msk.bf16.vlgmr.msra.gmra.mrb[56].mxu0 %vm725_vm4, %v1370_v2 }
 0x5ca   :  { %6893 = vmatprep.mubr.msk.bf16.mxu0 %vm7628_vm1, %v7627_v10 }
 0x5cb   :  { %6892 = vmatpush3.bf16.xpose.msra.mxu0 %v7782_v42 }
 0x5cc   :  { %6903 = vmatprep.subr.bf16.mxu0 %v7627_v10 }
 0x5ce   :  { %6888 = vmatmul.mubr.msk.bf16.vlgmr.msra.gmra.mrb[48].mxu1 %vm94_vm0, %v1654_v4 }
 0x5cf   :  { %6898 = vmatpush3.bf16.xpose.msra.mxu1 %v7799_v51  ;;  %6899 = vmatprep.mubr.msk.bf16.mxu1 %vm7628_vm1, %v7627_v10 }
 0x5d0   :  { %6909 = vmatprep.subr.bf16.mxu1 %v7627_v10 }
 0x5d2   :  { %6894 = vmatmul.mubr.msk.bf16.vlgmr.msra.gmra.mrb[60].mxu0 %vm94_vm0, %v1655_v11 }
 0x5d3   :  { %6904 = vmatpush3.bf16.xpose.msra.mxu0 %v7808_v54  ;;  %6905 = vmatprep.mubr.msk.bf16.mxu0 %vm7628_vm1, %v7627_v10 }
 0x5d4   :  { %6915 = vmatprep.subr.bf16.mxu0 %v7627_v10 }
 0x5d6   :  { %6900 = vmatmul.mubr.msk.bf16.vlgmr.msra.gmra.mrb[52].mxu1 %vm94_vm0, %v1656_v6 }
 0x5d7   :  { %6910 = vmatpush3.bf16.xpose.msra.mxu1 %v7825_v60  ;;  %6911 = vmatprep.mubr.msk.bf16.mxu1 %vm7628_vm1, %v7627_v10 }
 0x5d8   :  { %6921 = vmatprep.subr.bf16.mxu1 %v7627_v10 }
 0x5da   :  { %6906 = vmatmul.mubr.msk.bf16.vlgmr.msra.gmra.mrb[64].mxu0 %vm94_vm0, %v1657_v16  ;;  %v1012_v16 = vmul.f32 %v1007_v19, %v7989_v7 }
 0x5db   :  { %6916 = vmatpush3.bf16.xpose.msra.mxu0 %v7833_v62  ;;  %6917 = vmatprep.mubr.msk.bf16.mxu0 %vm7628_vm1, %v7627_v10 }
 0x5dc   :  { %6927 = vmatprep.subr.bf16.mxu0 %v7627_v10 }
 0x5de   :  { %6912 = vmatmul.mubr.msk.bf16.vlgmr.msra.gmra.mrb[56].mxu1 %vm94_vm0, %v1658_v17 }
 0x5df   :  { %6922 = vmatpush3.bf16.msra.mxu1 %v7884_v61  ;;  %6923 = vmatprep.mubr.msk.bf16.mxu1 %vm7628_vm1, %v7627_v10 }
 0x5e0   :  { %6933 = vmatprep.subr.bf16.mxu1 %v7627_v10 }
 0x5e2   :  { %6918 = vmatmul.mubr.msk.bf16.vlgmr.msra.gmra.mrb[68].mxu0 %vm94_vm0, %v1659_v18 }
 0x5e3   :  { %6928 = vmatpush3.bf16.msra.mxu0 %v7888_v1  ;;  %6929 = vmatprep.mubr.msk.bf16.mxu0 %vm7628_vm1, %v7627_v10 }
 0x5e4   :  { %6939 = vmatprep.subr.bf16.mxu0 %v7627_v10 }
 0x688   :  { %v1408_v24 = vpop.f32.mrb[36].mxu1 }
 0x689   :  { %v1634_v29 = vmul.f32 %v1633_v21, %v1408_v24  ;;  %v6853_v33 = vpop.f32.mrb[37].mxu1 }
 0x68a   :  { %v1411_v34 = vpop.f32.mrb[38].mxu1 }
 0x68b   :  { %v8087_v28 = vadd.f32 %v1634_v29, %v1008_v26  ;;  %v6854_v32 = vpop.f32.mrb[39].mxu1  ;;  %v1013_v26 = vmul.f32 %v1007_v19, %v7991_v15 }
 0x68c   :  { %v1451_v35 = vpop.f32.mrb[48].mxu0 }
 0x68d   :  { %v1635_v41 = vmul.f32 %v1633_v21, %v1451_v35  ;;  %v6859_v30 = vpop.f32.mrb[49].mxu0 }
 0x68e   :  { %v1454_v43 = vpop.f32.mrb[50].mxu0 }
 0x68f   :  { %v8090_v22 = vadd.f32 %v1635_v41, %v1009_v39  ;;  %v6860_v46 = vpop.f32.mrb[51].mxu0 }
 0x690   :  { %v1494_v49 = vpop.f32.mrb[40].mxu1 }
 0x691   :  { %v1636_v5 = vmul.f32 %v1633_v21, %v1494_v49  ;;  %v6865_v44 = vpop.f32.mrb[41].mxu1 }
 0x692   :  { %v1497_v53 = vpop.f32.mrb[42].mxu1 }
 0x693   :  { %v8093_v57 = vadd.f32 %v1636_v5, %v1010_v52  ;;  %v6866_v58 = vpop.f32.mrb[43].mxu1 }
 0x694   :  { %v1537_v0 = vpop.f32.mrb[52].mxu0 }
 0x695   :  { %v1637_v2 = vmul.f32 %v1633_v21, %v1537_v0  ;;  %v6871_v48 = vpop.f32.mrb[53].mxu0 }
 0x696   :  { %v1540_v47 = vpop.f32.mrb[54].mxu0 }
 0x697   :  { %v8096_v4 = vadd.f32 %v1637_v2, %v1011_v40  ;;  %v6872_v11 = vpop.f32.mrb[55].mxu0 }
 0x698   :  { %v1580_v6 = vpop.f32.mrb[44].mxu1 }
 0x699   :  { %v1638_v17 = vmul.f32 %v1633_v21, %v1580_v6  ;;  %v6877_v55 = vpop.f32.mrb[45].mxu1 }
 0x69a   :  { %v1583_v18 = vpop.f32.mrb[46].mxu1 }
 0x69b   :  { %v8099_v12 = vadd.f32 %v1638_v17, %v1012_v16  ;;  %v6878_v8 = vpop.f32.mrb[47].mxu1 }
 0x69c   :  { %v1623_v24 = vpop.f32.mrb[56].mxu0 }
 0x69d   :  { %v1639_v29 = vmul.f32 %v1633_v21, %v1623_v24  ;;  %v6883_v3 = vpop.f32.mrb[57].mxu0 }
 0x69e   :  { %v1626_v33 = vpop.f32.mrb[58].mxu0 }
 0x69f   :  { %v8102_v34 = vadd.f32 %v1639_v29, %v1013_v26  ;;  %v6884_v32 = vpop.f32.mrb[59].mxu0 }
 0x6a1   :  { %v1697_v35 = vpop.f32.mrb[48].mxu1 }
 0x6a2   :  { %v1918_v39 = vmul.f32 0.35355338, %v1697_v35  ;;  %v6889_v41 = vpop.f32.mrb[49].mxu1 }
 0x6a3   :  { %v1700_v30 = vpop.f32.mrb[50].mxu1 }
 0x6a4   :  { %v6890_v7 = vpop.f32.mrb[51].mxu1  ;;  %v1924_v43 = vsel %vm652_vm2, %v1918_v39, -inf }
 0x6a5   :  { %1925 = vmax.xlane.f32.xlu1 %v1924_v43  ;;  %v1740_v46 = vpop.f32.mrb[60].mxu0 }
 0x6a6   :  { %v1919_v49 = vmul.f32 0.35355338, %v1740_v46  ;;  %v6895_v52 = vpop.f32.mrb[61].mxu0 }
 0x6a7   :  { %v1743_v5 = vpop.f32.mrb[62].mxu0 }
 0x6a8   :  { %v6896_v44 = vpop.f32.mrb[63].mxu0  ;;  %v1927_v15 = vsel %vm652_vm2, %v1919_v49, -inf }
 0x6a9   :  { %v1783_v19 = vpop.f32.mrb[52].mxu1  ;;  %1928 = vmax.xlane.f32.xlu1 %v1927_v15 }
 0x6aa   :  { %v1920_v21 = vmul.f32 0.35355338, %v1783_v19  ;;  %v6901_v53 = vpop.f32.mrb[53].mxu1 }
 0x6ab   :  { %v1786_v58 = vpop.f32.mrb[54].mxu1 }
 0x6ac   :  { %v6902_v0 = vpop.f32.mrb[55].mxu1  ;;  %v1930_v40 = vsel %vm652_vm2, %v1920_v21, -inf }
 0x6ad   :  { %1931 = vmax.xlane.f32.xlu0 %v1930_v40  ;;  %v1826_v2 = vpop.f32.mrb[64].mxu0 }
 0x6ae   :  { %v1921_v48 = vmul.f32 0.35355338, %v1826_v2  ;;  %v6907_v47 = vpop.f32.mrb[65].mxu0 }
 0x6af   :  { %v1829_v11 = vpop.f32.mrb[66].mxu0 }
 0x6b0   :  { %v6908_v6 = vpop.f32.mrb[67].mxu0  ;;  %v1933_v16 = vsel %vm652_vm2, %v1921_v48, -inf }
 0x6b1   :  { %v1869_v17 = vpop.f32.mrb[56].mxu1  ;;  %1934 = vmax.xlane.f32.xlu1 %v1933_v16 }
 0x6b2   :  { %v1922_v55 = vmul.f32 0.35355338, %v1869_v17  ;;  %v6913_v18 = vpop.f32.mrb[57].mxu1 }
 0x6b3   :  { %v1872_v8 = vpop.f32.mrb[58].mxu1 }
 0x6b4   :  { %v6914_v24 = vpop.f32.mrb[59].mxu1  ;;  %v1936_v26 = vsel %vm652_vm2, %v1922_v55, -inf }
 0x6b5   :  { %1937 = vmax.xlane.f32.xlu0 %v1936_v26  ;;  %v1912_v29 = vpop.f32.mrb[68].mxu0 }
 0x6b6   :  { %v1923_v3 = vmul.f32 0.35355338, %v1912_v29  ;;  %v6919_v33 = vpop.f32.mrb[69].mxu0 }
 0x6b7   :  { %v1915_v32 = vpop.f32.mrb[70].mxu0 }
 0x6b8   :  { %v6920_v35 = vpop.f32.mrb[71].mxu0  ;;  %v1939_v41 = vsel %vm652_vm2, %v1923_v3, -inf }
 0x6b9   :  { %1940 = vmax.xlane.f32.xlu1 %v1939_v41 }
 0x732   :  { %v1926_v30 = vpop.xlane.xlu1 %1925 }
 0x733   :  { %v1942_v7 = vsub.f32 %v1918_v39, %v1926_v30 }
 0x735   :  { %v1948_v43 = vmul.f32 1.442695, %v1942_v7 }
 0x736   :  { %v1929_v46 = vpop.xlane.xlu1 %1928 }
 0x737   :  { %7461 = vpow2.f32 %v1948_v43  ;;  %v1943_v52 = vsub.f32 %v1919_v49, %v1929_v46 }
 0x739   :  { %v1950_v5 = vmul.f32 1.442695, %v1943_v52 }
 0x73a   :  { %v1932_v44 = vpop.xlane.xlu0 %1931 }
 0x73b   :  { %7463 = vpow2.f32 %v1950_v5  ;;  %v1944_v15 = vsub.f32 %v1920_v21, %v1932_v44 }
 0x73d   :  { %v1952_v19 = vmul.f32 1.442695, %v1944_v15 }
 0x73e   :  { %v1935_v53 = vpop.xlane.xlu1 %1934 }
 0x73f   :  { %7465 = vpow2.f32 %v1952_v19  ;;  %v1945_v58 = vsub.f32 %v1921_v48, %v1935_v53 }
 0x741   :  { %v7462_v0 = vpop.eup %7461  ;;  %v1954_v40 = vmul.f32 1.442695, %v1945_v58 }
 0x742   :  { %v1938_v2 = vpop.xlane.xlu0 %1937  ;;  %v1960_v47 = vsel %vm652_vm2, %v7462_v0, 0.0 }
 0x743   :  { %7467 = vpow2.f32 %v1954_v40  ;;  %v1946_v11 = vsub.f32 %v1922_v55, %v1938_v2  ;;  %1961 = vadd.xlane.f32.xlu0 %v1960_v47  ;;  %v8130_v2 = vld [vmem:[%s8900_s16] sm:$0x2] }
 0x745   :  { %v7464_v39 = vpop.eup %7463  ;;  %v1956_v6 = vmul.f32 1.442695, %v1946_v11 }
 0x746   :  { %v1941_v16 = vpop.xlane.xlu1 %1940  ;;  %v1963_v49 = vsel %vm652_vm2, %v7464_v39, 0.0 }
 0x747   :  { %7469 = vpow2.f32 %v1956_v6  ;;  %v1947_v17 = vsub.f32 %v1923_v3, %v1941_v16  ;;  %1964 = vadd.xlane.f32.xlu1 %v1963_v49 }
 0x749   :  { %v7466_v21 = vpop.eup %7465  ;;  %v1958_v18 = vmul.f32 1.442695, %v1947_v17 }
 0x74a   :  { %v1966_v48 = vsel %vm652_vm2, %v7466_v21, 0.0 }
 0x74b   :  { %7471 = vpow2.f32 %v1958_v18  ;;  %1967 = vadd.xlane.f32.xlu0 %v1966_v48 }
 0x74d   :  { %v7468_v8 = vpop.eup %7467 }
 0x74e   :  { %v1969_v24 = vsel %vm652_vm2, %v7468_v8, 0.0 }
 0x74f   :  { %1970 = vadd.xlane.f32.xlu1 %v1969_v24 }
 0x751   :  { %v7470_v55 = vpop.eup %7469 }
 0x752   :  { %v1972_v26 = vsel %vm652_vm2, %v7470_v55, 0.0 }
 0x753   :  { %1973 = vadd.xlane.f32.xlu0 %v1972_v26 }
 0x755   :  { %v7472_v29 = vpop.eup %7471 }
 0x756   :  { %v1975_v33 = vsel %vm652_vm2, %v7472_v29, 0.0 }
 0x757   :  { %1976 = vadd.xlane.f32.xlu1 %v1975_v33 }
 0x7d0   :  { %v1962_v3 = vpop.xlane.xlu0 %1961 }
 0x7d1   :  { %7473 = vrcp.f32 %v1962_v3 }
 0x7d4   :  { %v1965_v32 = vpop.xlane.xlu1 %1964 }
 0x7d5   :  { %7475 = vrcp.f32 %v1965_v32 }
 0x7d8   :  { %v1968_v35 = vpop.xlane.xlu0 %1967 }
 0x7d9   :  { %7477 = vrcp.f32 %v1968_v35 }
 0x7db   :  { %v7474_v41 = vpop.eup %7473 }
 0x7dc   :  { %v1971_v30 = vpop.xlane.xlu1 %1970  ;;  %v1984_v7 = vmul.f32 %v7474_v41, %v7462_v0 }
 0x7dd   :  { %7479 = vrcp.f32 %v1971_v30 }
 0x7de   :  { %v1990_v43 = vpack.c.bf16 %v1984_v7, %v1984_v7 }
 0x7df   :  { %v7476_v46 = vpop.eup %7475 }
 0x7e0   :  { %v1985_v52 = vmul.f32 %v7476_v46, %v7464_v39  ;;  %6924 = vmatmul.mubr.msk.bf16.vlgmr.msra.gmra.mrb[60].mxu1 %vm725_vm4, %v1990_v43  ;;  %v1974_v5 = vpop.xlane.xlu0 %1973  ;;  %v2273_v39 = vshrl.u32 %v8130_v2, 16 }
 0x7e1   :  { %6934 = vmatpush3.bf16.msra.mxu1 %v7894_v9  ;;  %7481 = vrcp.f32 %v1974_v5  ;;  %6935 = vmatprep.mubr.msk.bf16.mxu1 %vm7628_vm1, %v7627_v10 }
 0x7e2   :  { %v1991_v44 = vpack.c.bf16 %v1985_v52, %v1985_v52  ;;  %6945 = vmatprep.subr.bf16.mxu1 %v7627_v10  ;;  %v2274_v17 = vpack.i.b16 %v2273_v39, %v2273_v39 }
 0x7e3   :  { %v7478_v15 = vpop.eup %7477 }
 0x7e4   :  { %6930 = vmatmul.mubr.msk.bf16.vlgmr.msra.gmra.mrb[72].mxu0 %vm725_vm4, %v1991_v44  ;;  %v1977_v19 = vpop.xlane.xlu1 %1976  ;;  %v1986_v53 = vmul.f32 %v7478_v15, %v7466_v21  ;;  %v2279_v48 = vrot.slane %v2274_v17, %v8031_v27 }
 0x7e5   :  { %6940 = vmatpush3.bf16.msra.mxu0 %v7902_v14  ;;  %7483 = vrcp.f32 %v1977_v19  ;;  %6941 = vmatprep.mubr.msk.bf16.mxu0 %vm7628_vm1, %v7627_v10 }
 0x7e6   :  { %v1992_v58 = vpack.c.bf16 %v1986_v53, %v1986_v53  ;;  %6951 = vmatprep.subr.bf16.mxu0 %v7627_v10 }
 0x7e7   :  { %v7480_v0 = vpop.eup %7479 }
 0x7e8   :  { %v1987_v40 = vmul.f32 %v7480_v0, %v7468_v8  ;;  %6936 = vmatmul.mubr.msk.bf16.vlgmr.msra.gmra.mrb[64].mxu1 %vm725_vm4, %v1992_v58  ;;  %v2280_v8 = vmul.bf16 %v2279_v48, %v7774_v37  ;;  %v2282_v37 = vmul.bf16 %v2279_v48, %v7795_v50  ;;  %v2285_v50 = vmul.bf16 %v2279_v48, %v7841_v63 }
 0x7e9   :  { %6946 = vmatpush3.bf16.msra.mxu1 %v7912_v13  ;;  %6947 = vmatprep.mubr.msk.bf16.mxu1 %vm7628_vm1, %v7627_v10 }
 0x7ea   :  { %v1993_v47 = vpack.c.bf16 %v1987_v40, %v1987_v40  ;;  %6957 = vmatprep.subr.bf16.mxu1 %v7627_v10 }
 0x7eb   :  { %v7482_v11 = vpop.eup %7481 }
 0x7ec   :  { %v1988_v6 = vmul.f32 %v7482_v11, %v7470_v55  ;;  %6942 = vmatmul.mubr.msk.bf16.vlgmr.msra.gmra.mrb[76].mxu0 %vm725_vm4, %v1993_v47 }
 0x7ed   :  { %6952 = vmatpush3.bf16.msra.mxu0 %v7924_v23  ;;  %6953 = vmatprep.mubr.msk.bf16.mxu0 %vm7628_vm1, %v7627_v10 }
 0x7ee   :  { %v1994_v16 = vpack.c.bf16 %v1988_v6, %v1988_v6  ;;  %6963 = vmatprep.subr.bf16.mxu0 %v7627_v10 }
 0x7ef   :  { %v7484_v49 = vpop.eup %7483 }
 0x7f0   :  { %v1989_v21 = vmul.f32 %v7484_v49, %v7472_v29  ;;  %6948 = vmatmul.mubr.msk.bf16.vlgmr.msra.gmra.mrb[68].mxu1 %vm725_vm4, %v1994_v16 }
 0x7f1   :  { %6959 = vmatprep.mubr.msk.bf16.mxu1 %vm7628_vm1, %v7627_v10 }
 0x7f2   :  { %6958 = vmatpush3.bf16.xpose.msra.mxu1 %v7777_v38  ;;  %v1995_v18 = vpack.c.bf16 %v1989_v21, %v1989_v21  ;;  %v2281_v38 = vmul.bf16 %v2279_v48, %v7789_v45  ;;  %v2284_v45 = vmul.bf16 %v2279_v48, %v7821_v59 }
 0x7f3   :  { %6969 = vmatprep.subr.bf16.mxu1 %v7627_v10 }
 0x7f4   :  { %6954 = vmatmul.mubr.msk.bf16.vlgmr.msra.gmra.mrb[80].mxu0 %vm725_vm4, %v1995_v18 }
 0x7f5   :  { %6965 = vmatprep.mubr.msk.bf16.mxu0 %vm7628_vm1, %v7627_v10 }
 0x7f6   :  { %6964 = vmatpush3.bf16.xpose.msra.mxu0 %v7782_v42  ;;  %v2283_v42 = vmul.bf16 %v2279_v48, %v7816_v56 }
 0x7f7   :  { %6975 = vmatprep.subr.bf16.mxu0 %v7627_v10 }
 0x7f9   :  { %6960 = vmatmul.mubr.msk.bf16.vlgmr.msra.gmra.mrb[72].mxu1 %vm94_vm0, %v2280_v8 }
 0x7fa   :  { %6970 = vmatpush3.bf16.xpose.msra.mxu1 %v7799_v51  ;;  %6971 = vmatprep.mubr.msk.bf16.mxu1 %vm7628_vm1, %v7627_v10  ;;  %v2254_v51 = vunpack.c.l.bf16 %v8024_v20 }
 0x7fb   :  { %6981 = vmatprep.subr.bf16.mxu1 %v7627_v10 }
 0x7fd   :  { %6966 = vmatmul.mubr.msk.bf16.vlgmr.msra.gmra.mrb[84].mxu0 %vm94_vm0, %v2281_v38 }
 0x7fe   :  { %6976 = vmatpush3.bf16.xpose.msra.mxu0 %v7808_v54  ;;  %6977 = vmatprep.mubr.msk.bf16.mxu0 %vm7628_vm1, %v7627_v10  ;;  %v2257_v54 = vsub.s32 2, %v7757_v25 }
 0x7ff   :  { %6987 = vmatprep.subr.bf16.mxu0 %v7627_v10 }
 0x800   :  { %v2258_v56 = vrot.slane %v2254_v51, %v2257_v54 }
 0x801   :  { %6972 = vmatmul.mubr.msk.bf16.vlgmr.msra.gmra.mrb[76].mxu1 %vm94_vm0, %v2282_v37 }
 0x802   :  { %6982 = vmatpush3.bf16.xpose.msra.mxu1 %v7825_v60  ;;  %6983 = vmatprep.mubr.msk.bf16.mxu1 %vm7628_vm1, %v7627_v10 }
 0x803   :  { %6993 = vmatprep.subr.bf16.mxu1 %v7627_v10 }
 0x805   :  { %6978 = vmatmul.mubr.msk.bf16.vlgmr.msra.gmra.mrb[88].mxu0 %vm94_vm0, %v2283_v42 }
 0x806   :  { %6988 = vmatpush3.bf16.xpose.msra.mxu0 %v7833_v62  ;;  %6989 = vmatprep.mubr.msk.bf16.mxu0 %vm7628_vm1, %v7627_v10 }
 0x807   :  { %6999 = vmatprep.subr.bf16.mxu0 %v7627_v10 }
 0x809   :  { %6984 = vmatmul.mubr.msk.bf16.vlgmr.msra.gmra.mrb[80].mxu1 %vm94_vm0, %v2284_v45 }
 0x80a   :  { %6994 = vmatpush3.bf16.msra.mxu1 %v7884_v61  ;;  %6995 = vmatprep.mubr.msk.bf16.mxu1 %vm7628_vm1, %v7627_v10 }
 0x80b   :  { %7005 = vmatprep.subr.bf16.mxu1 %v7627_v10 }
 0x80d   :  { %6990 = vmatmul.mubr.msk.bf16.vlgmr.msra.gmra.mrb[92].mxu0 %vm94_vm0, %v2285_v50 }
 0x80e   :  { %7000 = vmatpush3.bf16.msra.mxu0 %v7888_v1  ;;  %7001 = vmatprep.mubr.msk.bf16.mxu0 %vm7628_vm1, %v7627_v10 }
 0x80f   :  { %7011 = vmatprep.subr.bf16.mxu0 %v7627_v10 }
 0x8b3   :  { %v2033_v59 = vpop.f32.mrb[60].mxu1 }
 0x8b4   :  { %v2259_v60 = vmul.f32 %v2258_v56, %v2033_v59  ;;  %v6925_v62 = vpop.f32.mrb[61].mxu1 }
 0x8b5   :  { %v2036_v63 = vpop.f32.mrb[62].mxu1 }
 0x8b6   :  { %v8194_v61 = vadd.f32 %v2259_v60, %v8087_v28  ;;  %v6926_v1 = vpop.f32.mrb[63].mxu1 }
 0x8b7   :  { %v2076_v24 = vpop.f32.mrb[72].mxu0 }
 0x8b8   :  { %v2260_v55 = vmul.f32 %v2258_v56, %v2076_v24  ;;  %v6931_v26 = vpop.f32.mrb[73].mxu0 }
 0x8b9   :  { %v2079_v29 = vpop.f32.mrb[74].mxu0 }
 0x8ba   :  { %v8197_v33 = vadd.f32 %v2260_v55, %v8090_v22  ;;  %v6932_v20 = vpop.f32.mrb[75].mxu0 }
 0x8bb   :  { %v2119_v3 = vpop.f32.mrb[64].mxu1 }
 0x8bc   :  { %v2261_v32 = vmul.f32 %v2258_v56, %v2119_v3  ;;  %v6937_v35 = vpop.f32.mrb[65].mxu1 }
 0x8bd   :  { %v2122_v41 = vpop.f32.mrb[66].mxu1 }
 0x8be   :  { %v8200_v30 = vadd.f32 %v2261_v32, %v8093_v57  ;;  %v6938_v7 = vpop.f32.mrb[67].mxu1 }
 0x8bf   :  { %v2162_v43 = vpop.f32.mrb[76].mxu0 }
 0x8c0   :  { %v2262_v28 = vmul.f32 %v2258_v56, %v2162_v43  ;;  %v6943_v46 = vpop.f32.mrb[77].mxu0 }
 0x8c1   :  { %v2165_v52 = vpop.f32.mrb[78].mxu0 }
 0x8c2   :  { %v8203_v5 = vadd.f32 %v2262_v28, %v8096_v4  ;;  %v6944_v44 = vpop.f32.mrb[79].mxu0 }
 0x8c3   :  { %v2205_v15 = vpop.f32.mrb[68].mxu1 }
 0x8c4   :  { %v2263_v22 = vmul.f32 %v2258_v56, %v2205_v15  ;;  %v6949_v19 = vpop.f32.mrb[69].mxu1 }
 0x8c5   :  { %v2208_v53 = vpop.f32.mrb[70].mxu1 }
 0x8c6   :  { %v8206_v58 = vadd.f32 %v2263_v22, %v8099_v12  ;;  %v6950_v0 = vpop.f32.mrb[71].mxu1 }
 0x8c7   :  { %v2248_v40 = vpop.f32.mrb[80].mxu0 }
 0x8c8   :  { %v2264_v57 = vmul.f32 %v2258_v56, %v2248_v40  ;;  %v6955_v47 = vpop.f32.mrb[81].mxu0 }
 0x8c9   :  { %v2251_v11 = vpop.f32.mrb[82].mxu0 }
 0x8ca   :  { %v8209_v39 = vadd.f32 %v2264_v57, %v8102_v34  ;;  %v6956_v6 = vpop.f32.mrb[83].mxu0 }
 0x8cc   :  { %v2323_v16 = vpop.f32.mrb[72].mxu1 }
 0x8cd   :  { %v2544_v4 = vmul.f32 0.35355338, %v2323_v16  ;;  %v6961_v49 = vpop.f32.mrb[73].mxu1 }
 0x8ce   :  { %v2326_v17 = vpop.f32.mrb[74].mxu1 }
 0x8cf   :  { %v6962_v21 = vpop.f32.mrb[75].mxu1  ;;  %v2550_v18 = vsel %vm652_vm2, %v2544_v4, -inf }
 0x8d0   :  { %2551 = vmax.xlane.f32.xlu0 %v2550_v18  ;;  %v2366_v48 = vpop.f32.mrb[84].mxu0 }
 0x8d1   :  { %v2545_v12 = vmul.f32 0.35355338, %v2366_v48  ;;  %v6967_v8 = vpop.f32.mrb[85].mxu0 }
 0x8d2   :  { %v2369_v38 = vpop.f32.mrb[86].mxu0 }
 0x8d3   :  { %v6968_v37 = vpop.f32.mrb[87].mxu0  ;;  %v2553_v42 = vsel %vm652_vm2, %v2545_v12, -inf }
 0x8d4   :  { %v2409_v45 = vpop.f32.mrb[76].mxu1  ;;  %2554 = vmax.xlane.f32.xlu1 %v2553_v42 }
 0x8d5   :  { %v2546_v34 = vmul.f32 0.35355338, %v2409_v45  ;;  %v6973_v50 = vpop.f32.mrb[77].mxu1 }
 0x8d6   :  { %v2412_v51 = vpop.f32.mrb[78].mxu1 }
 0x8d7   :  { %v6974_v56 = vpop.f32.mrb[79].mxu1  ;;  %v2556_v59 = vsel %vm652_vm2, %v2546_v34, -inf }
 0x8d8   :  { %2557 = vmax.xlane.f32.xlu0 %v2556_v59  ;;  %v2452_v60 = vpop.f32.mrb[88].mxu0 }
 0x8d9   :  { %v2547_v62 = vmul.f32 0.35355338, %v2452_v60  ;;  %v6979_v63 = vpop.f32.mrb[89].mxu0 }
 0x8da   :  { %v2455_v1 = vpop.f32.mrb[90].mxu0 }
 0x8db   :  { %v6980_v24 = vpop.f32.mrb[91].mxu0  ;;  %v2559_v55 = vsel %vm652_vm2, %v2547_v62, -inf }
 0x8dc   :  { %v2495_v26 = vpop.f32.mrb[80].mxu1  ;;  %2560 = vmax.xlane.f32.xlu1 %v2559_v55 }
 0x8dd   :  { %v2548_v29 = vmul.f32 0.35355338, %v2495_v26  ;;  %v6985_v20 = vpop.f32.mrb[81].mxu1 }
 0x8de   :  { %v2498_v3 = vpop.f32.mrb[82].mxu1 }
 0x8df   :  { %v6986_v32 = vpop.f32.mrb[83].mxu1  ;;  %v2562_v35 = vsel %vm652_vm2, %v2548_v29, -inf }
 0x8e0   :  { %2563 = vmax.xlane.f32.xlu0 %v2562_v35  ;;  %v2538_v41 = vpop.f32.mrb[92].mxu0 }
 0x8e1   :  { %v2549_v7 = vmul.f32 0.35355338, %v2538_v41  ;;  %v6991_v43 = vpop.f32.mrb[93].mxu0 }
 0x8e2   :  { %v2541_v28 = vpop.f32.mrb[94].mxu0 }
 0x8e3   :  { %v6992_v46 = vpop.f32.mrb[95].mxu0  ;;  %v2565_v52 = vsel %vm652_vm2, %v2549_v7, -inf }
 0x8e4   :  { %2566 = vmax.xlane.f32.xlu1 %v2565_v52 }
 0x95d   :  { %v2552_v44 = vpop.xlane.xlu0 %2551 }
 0x95e   :  { %v2568_v15 = vsub.f32 %v2544_v4, %v2552_v44 }
 0x960   :  { %v2574_v22 = vmul.f32 1.442695, %v2568_v15 }
 0x961   :  { %v2555_v19 = vpop.xlane.xlu1 %2554 }
 0x962   :  { %7485 = vpow2.f32 %v2574_v22  ;;  %v2569_v53 = vsub.f32 %v2545_v12, %v2555_v19 }
 0x964   :  { %v2576_v0 = vmul.f32 1.442695, %v2569_v53 }
 0x965   :  { %v2558_v40 = vpop.xlane.xlu0 %2557 }
 0x966   :  { %7487 = vpow2.f32 %v2576_v0  ;;  %v2570_v57 = vsub.f32 %v2546_v34, %v2558_v40  ;;  %v2880_v0 = vunpack.c.l.bf16 %v8130_v2  ;;  %v2883_v40 = vsub.s32 3, %v7757_v25 }
 0x968   :  { %v2578_v47 = vmul.f32 1.442695, %v2570_v57  ;;  %v2884_v57 = vrot.slane %v2880_v0, %v2883_v40 }
 0x969   :  { %v2561_v11 = vpop.xlane.xlu1 %2560 }
 0x96a   :  { %7489 = vpow2.f32 %v2578_v47  ;;  %v2571_v6 = vsub.f32 %v2547_v62, %v2561_v11 }
 0x96c   :  { %v7486_v16 = vpop.eup %7485  ;;  %v2580_v49 = vmul.f32 1.442695, %v2571_v6 }
 0x96d   :  { %v2564_v17 = vpop.xlane.xlu0 %2563  ;;  %v2586_v21 = vsel %vm652_vm2, %v7486_v16, 0.0 }
 0x96e   :  { %7491 = vpow2.f32 %v2580_v49  ;;  %v2572_v18 = vsub.f32 %v2548_v29, %v2564_v17  ;;  %2587 = vadd.xlane.f32.xlu0 %v2586_v21 }
 0x970   :  { %v7488_v4 = vpop.eup %7487  ;;  %v2582_v48 = vmul.f32 1.442695, %v2572_v18 }
 0x971   :  { %v2567_v8 = vpop.xlane.xlu1 %2566  ;;  %v2589_v12 = vsel %vm652_vm2, %v7488_v4, 0.0 }
 0x972   :  { %7493 = vpow2.f32 %v2582_v48  ;;  %v2573_v38 = vsub.f32 %v2549_v7, %v2567_v8  ;;  %2590 = vadd.xlane.f32.xlu1 %v2589_v12 }
 0x974   :  { %v7490_v37 = vpop.eup %7489  ;;  %v2584_v42 = vmul.f32 1.442695, %v2573_v38 }
 0x975   :  { %v2592_v45 = vsel %vm652_vm2, %v7490_v37, 0.0 }
 0x976   :  { %7495 = vpow2.f32 %v2584_v42  ;;  %2593 = vadd.xlane.f32.xlu0 %v2592_v45 }
 0x978   :  { %v7492_v34 = vpop.eup %7491 }
 0x979   :  { %v2595_v50 = vsel %vm652_vm2, %v7492_v34, 0.0 }
 0x97a   :  { %2596 = vadd.xlane.f32.xlu1 %v2595_v50 }
 0x97c   :  { %v7494_v51 = vpop.eup %7493 }
 0x97d   :  { %v2598_v56 = vsel %vm652_vm2, %v7494_v51, 0.0 }
 0x97e   :  { %2599 = vadd.xlane.f32.xlu0 %v2598_v56 }
 0x980   :  { %v7496_v59 = vpop.eup %7495 }
 0x981   :  { %v2601_v60 = vsel %vm652_vm2, %v7496_v59, 0.0 }
 0x982   :  { %2602 = vadd.xlane.f32.xlu1 %v2601_v60 }
 0x9fb   :  { %v2588_v62 = vpop.xlane.xlu0 %2587 }
 0x9fc   :  { %7497 = vrcp.f32 %v2588_v62 }
 0x9ff   :  { %v2591_v63 = vpop.xlane.xlu1 %2590 }
 0xa00   :  { %7499 = vrcp.f32 %v2591_v63 }
 0xa03   :  { %v2594_v1 = vpop.xlane.xlu0 %2593 }
 0xa04   :  { %7501 = vrcp.f32 %v2594_v1 }
 0xa06   :  { %v7498_v24 = vpop.eup %7497 }
 0xa07   :  { %v2610_v55 = vmul.f32 %v7498_v24, %v7486_v16  ;;  %v2597_v26 = vpop.xlane.xlu1 %2596 }
 0xa08   :  { %7503 = vrcp.f32 %v2597_v26 }
 0xa09   :  { %v2616_v29 = vpack.c.bf16 %v2610_v55, %v2610_v55 }
 0xa0a   :  { %v7500_v20 = vpop.eup %7499 }
 0xa0b   :  { %v2611_v3 = vmul.f32 %v7500_v20, %v7488_v4  ;;  %6996 = vmatmul.mubr.msk.bf16.vlgmr.msra.gmra.mrb[84].mxu1 %vm725_vm4, %v2616_v29  ;;  %v2600_v32 = vpop.xlane.xlu0 %2599 }
 0xa0c   :  { %7006 = vmatpush3.bf16.msra.mxu1 %v7894_v9  ;;  %7505 = vrcp.f32 %v2600_v32  ;;  %7007 = vmatprep.mubr.msk.bf16.mxu1 %vm7628_vm1, %v7627_v10 }
 0xa0d   :  { %v2617_v35 = vpack.c.bf16 %v2611_v3, %v2611_v3  ;;  %7017 = vmatprep.subr.bf16.mxu1 %v7627_v10 }
 0xa0e   :  { %v7502_v41 = vpop.eup %7501 }
 0xa0f   :  { %v2612_v7 = vmul.f32 %v7502_v41, %v7490_v37  ;;  %7002 = vmatmul.mubr.msk.bf16.vlgmr.msra.gmra.mrb[96].mxu0 %vm725_vm4, %v2617_v35  ;;  %v2603_v43 = vpop.xlane.xlu1 %2602 }
 0xa10   :  { %7012 = vmatpush3.bf16.msra.mxu0 %v7902_v14  ;;  %7507 = vrcp.f32 %v2603_v43  ;;  %7013 = vmatprep.mubr.msk.bf16.mxu0 %vm7628_vm1, %v7627_v10 }
 0xa11   :  { %v2618_v28 = vpack.c.bf16 %v2612_v7, %v2612_v7  ;;  %7023 = vmatprep.subr.bf16.mxu0 %v7627_v10 }
 0xa12   :  { %v7504_v9 = vpop.eup %7503 }
 0xa13   :  { %v2613_v46 = vmul.f32 %v7504_v9, %v7492_v34  ;;  %7008 = vmatmul.mubr.msk.bf16.vlgmr.msra.gmra.mrb[88].mxu1 %vm725_vm4, %v2618_v28  ;;  %v6381_v28 = vld [vmem:[%s8902_s5] ss:$0 sm:$0xff] }
 0xa14   :  { %7018 = vmatpush3.bf16.msra.mxu1 %v7912_v13  ;;  %7019 = vmatprep.mubr.msk.bf16.mxu1 %vm7628_vm1, %v7627_v10  ;;  %v7394_v13 = vld [vmem:[%s8901_s4] sm:$0xff]  }
 0xa15   :  { %v2619_v52 = vpack.c.bf16 %v2613_v46, %v2613_v46  ;;  %7029 = vmatprep.subr.bf16.mxu1 %v7394_v13 }
 0xa16   :  { %v7506_v44 = vpop.eup %7505 }
 0xa17   :  { %v2614_v15 = vmul.f32 %v7506_v44, %v7494_v51  ;;  %7014 = vmatmul.mubr.msk.bf16.vlgmr.msra.gmra.mrb[100].mxu0 %vm725_vm4, %v2619_v52 }
 0xa18   :  { %7024 = vmatpush3.bf16.msra.mxu0 %v7924_v23  ;;  %7025 = vmatprep.mubr.msk.bf16.mxu0 %vm7628_vm1, %v7627_v10  ;;  %v7395_v23 = vld [vmem:[%s8901_s4 + $0x8] sm:$0xff]  }
 0xa19   :  { %v2620_v14 = vpack.c.bf16 %v2614_v15, %v2614_v15 }
 0xa1a   :  { %v7508_v22 = vpop.eup %7507 }
 0xa1b   :  { %v2615_v19 = vmul.f32 %v7508_v22, %v7496_v59  ;;  %7020 = vmatmul.mubr.msk.bf16.vlgmr.msra.gmra.mrb[92].mxu1 %vm725_vm4, %v2620_v14  ;;  %v7624_v22 = vld [vmem:[%s8920_s18 + $0x8] sm:$0xf] }
 0xa1c   :  { %7030 = vmatpush3.bf16.msra.mxu1 %v7394_v13 }
 0xa1d   :  { %v2621_v53 = vpack.c.bf16 %v2615_v19, %v2615_v19  ;;  %7031 = vmatprep.subr.bf16.mxu1 %v7395_v23  ;;  %v2990_v19 = vunpack.c.l.bf16 %v7624_v22 }
 0xa1f   :  { %7026 = vmatmul.mubr.msk.bf16.vlgmr.msra.gmra.mrb[104].mxu0 %vm725_vm4, %v2621_v53 }
 0xa20   :  { %7032 = vmatpush3.bf16.msra.mxu1 %v7395_v23 }
 0xade   :  { %v2659_v47 = vpop.f32.mrb[84].mxu1 }
 0xadf   :  { %v2885_v11 = vmul.f32 %v2884_v57, %v2659_v47  ;;  %v6997_v6 = vpop.f32.mrb[85].mxu1 }
 0xae0   :  { %v2662_v16 = vpop.f32.mrb[86].mxu1 }
 0xae1   :  { %v2891_v49 = vadd.f32 %v2885_v11, %v8194_v61  ;;  %v6998_v17 = vpop.f32.mrb[87].mxu1  ;;  %v7396_v16 = vld [vmem:[%s8903_s6] sm:$0xff]  }
 0xae2   :  { %v2702_v21 = vpop.f32.mrb[96].mxu0  ;;  %7037 = vmatprep.subr.bf16.mxu0 %v7396_v16 }
 0xae3   :  { %v2886_v18 = vmul.f32 %v2884_v57, %v2702_v21  ;;  %v7003_v4 = vpop.f32.mrb[97].mxu0  ;;  %7038 = vmatpush3.bf16.msra.mxu0 %v7396_v16 }
 0xae4   :  { %v2705_v48 = vpop.f32.mrb[98].mxu0 }
 0xae5   :  { %v2892_v8 = vadd.f32 %v2886_v18, %v8197_v33  ;;  %v7004_v12 = vpop.f32.mrb[99].mxu0 }
 0xae6   :  { %v2745_v2 = vpop.f32.mrb[88].mxu1 }
 0xae7   :  { %v2903_v38 = vcombine.low %v2891_v49, %v2892_v8  ;;  %v2887_v37 = vmul.f32 %v2884_v57, %v2745_v2  ;;  %v7009_v42 = vpop.f32.mrb[89].mxu1  ;;  %v7397_v49 = vld [vmem:[%s8903_s6 + $0x8] sm:$0xff]  }
 0xae8   :  { %v2748_v45 = vpop.f32.mrb[90].mxu1  ;;  %7039 = vmatprep.subr.bf16.mxu0 %v7397_v49 }
 0xae9   :  { %v2893_v34 = vadd.f32 %v2887_v37, %v8200_v30  ;;  %v7010_v50 = vpop.f32.mrb[91].mxu1  ;;  %7040 = vmatpush3.bf16.msra.mxu0 %v7397_v49 }
 0xaea   :  { %v2788_v51 = vpop.f32.mrb[100].mxu0 }
 0xaeb   :  { %v2888_v56 = vmul.f32 %v2884_v57, %v2788_v51  ;;  %v7015_v59 = vpop.f32.mrb[101].mxu0 }
 0xaec   :  { %v2791_v61 = vpop.f32.mrb[102].mxu0  ;;  %v8293_v59 = vld [vmem:[%s8905_s7] ss:$0 sm:$0xff] }
 0xaed   :  { %v2894_v60 = vadd.f32 %v2888_v56, %v8203_v5  ;;  %v7016_v62 = vpop.f32.mrb[103].mxu0  ;;  %v7398_v56 = vld [vmem:[%s8904_s1] sm:$0xff]  }
 0xaee   :  { %v2831_v63 = vpop.f32.mrb[92].mxu1 }
 0xaef   :  { %v2904_v1 = vcombine.low %v2893_v34, %v2894_v60  ;;  %v2889_v24 = vmul.f32 %v2884_v57, %v2831_v63  ;;  %v7021_v33 = vpop.f32.mrb[93].mxu1 }
 0xaf0   :  { %v2834_v55 = vpop.f32.mrb[94].mxu1 }
 0xaf1   :  { %v2909_v26 = vpack.c.bf16 %v2904_v1, %v2903_v38  ;;  %v2895_v29 = vadd.f32 %v2889_v24, %v8206_v58  ;;  %v7022_v20 = vpop.f32.mrb[95].mxu1  ;;  %v7623_v58 = vld [vmem:[%s8920_s18] sm:$0xff]  }
 0xaf2   :  { %v2874_v3 = vpop.f32.mrb[104].mxu0  ;;  %v2988_v46 = vunpack.c.l.bf16 %v7623_v58 }
 0xaf3   :  { %v2890_v32 = vmul.f32 %v2884_v57, %v2874_v3  ;;  %v7027_v30 = vpop.f32.mrb[105].mxu0  ;;  %7033 = vmatprep.mubr.msk.bf16.mxu1 %vm94_vm0, %v2909_v26  ;;  %v7399_v3 = vld [vmem:[%s8904_s1 + $0x8] ss:$0 sps:$4 sm:$0xff]  }
 0xaf4   :  { %v2877_v35 = vpop.f32.mrb[106].mxu0 }
 0xaf5   :  { %v2896_v41 = vadd.f32 %v2890_v32, %v8209_v39  ;;  %v7028_v7 = vpop.f32.mrb[107].mxu0  ;;  %v2989_v39 = vunpack.c.h.bf16 %v7623_v58 }
 0xaf7   :  { %v2905_v5 = vcombine.low %v2895_v29, %v2896_v41 }
 0xaf9   :  { %v2910_v43 = vpack.c.bf16 %v2905_v5, %v2905_v5  ;;  %v6386_v5 = vld [vmem:[%s8906_s14] ss:$0 sm:$0xff] }
 0xafb   :  { %7034 = vmatmul.mubr.msk.bf16.vlgmr.msra.gmra.mrb[96].mxu1 %vm94_vm0, %v2910_v43 }
 0xafc   :  { %7049 = vmatprep.mubr.msk.bf16.mxu1 %vm94_vm0, %v7398_v56 }
 0xbce   :  { %v7035_v9 = vpop.f32.mrb[96].mxu1 }
 0xbcf   :  { %v2974_v52 = vpop.f32.mrb[97].mxu1  ;;  %v2983_v44 = vadd.f32 %v7035_v9, %v6381_v28 }
 0xbd0   :  { %v2975_v15 = vadd.f32 %v6381_v28, %v2974_v52  ;;  %v7036_v14 = vpop.f32.mrb[98].mxu1 }
 0xbd1   :  { %v2977_v53 = vpop.f32.mrb[99].mxu1  ;;  %v2993_v47 = vadd.f32 %v2990_v19, %v2983_v44 }
 0xbd2   :  { %v2978_v13 = vadd.f32 %v6381_v28, %v2977_v53  ;;  %v2991_v23 = vadd.f32 %v2988_v46, %v2975_v15  ;;  %v6387_v46 = vld [vmem:[%s8907_s15] ss:$0 sm:$0xff] }
 0xbd3   :  { %v3002_v6 = vsel %vm94_vm0, %v2993_v47, 0.0 }
 0xbd4   :  { %v2996_v0 = vsel %vm94_vm0, %v2991_v23, 0.0  ;;  %v2992_v57 = vadd.f32 %v2989_v39, %v2978_v13 }
 0xbd5   :  { %2997 = vadd.xlane.f32.xlu0 %v2996_v0 }
 0xbd6   :  { %v2999_v11 = vsel %vm94_vm0, %v2992_v57, 0.0 }
 0xbd7   :  { %3000 = vadd.xlane.f32.xlu1 %v2999_v11 }
 0xbd9   :  { %3003 = vadd.xlane.f32.xlu0 %v3002_v6 }
 0xc62   :  { %v2998_v17 = vpop.xlane.xlu0 %2997 }
 0xc63   :  { %v3006_v18 = vmul.f32 0.03125, %v2998_v17 }
 0xc64   :  { %v3001_v21 = vpop.xlane.xlu1 %3000 }
 0xc65   :  { %v3007_v4 = vmul.f32 0.03125, %v3001_v21  ;;  %v3009_v2 = vsub.f32 %v2991_v23, %v3006_v18 }
 0xc66   :  { %v3004_v48 = vpop.xlane.xlu0 %3003 }
 0xc67   :  { %v3010_v8 = vsub.f32 %v2992_v57, %v3007_v4  ;;  %v3008_v12 = vmul.f32 0.03125, %v3004_v48  ;;  %v3012_v50 = vmul.f32 %v3009_v2, %v3009_v2  ;;  %v8341_v48 = vld [vmem:[%s8900_s16] sm:$0x1] }
 0xc69   :  { %v3011_v38 = vsub.f32 %v2993_v47, %v3008_v12  ;;  %v3013_v37 = vmul.f32 %v3010_v8, %v3010_v8  ;;  %v3015_v51 = vsel %vm94_vm0, %v3012_v50, 0.0 }
 0xc6b   :  { %v3018_v42 = vsel %vm94_vm0, %v3013_v37, 0.0  ;;  %v3014_v45 = vmul.f32 %v3011_v38, %v3011_v38 }
 0xc6c   :  { %3019 = vadd.xlane.f32.xlu0 %v3018_v42  ;;  %v3352_v42 = vpack.i.b16 %v8341_v48, %v8341_v48 }
 0xc6d   :  { %v3021_v34 = vsel %vm94_vm0, %v3014_v45, 0.0 }
 0xc6e   :  { %3022 = vadd.xlane.f32.xlu1 %v3021_v34 }
 0xc72   :  { %3016 = vadd.xlane.f32.xlu1 %v3015_v51 }
 0xc82   :  { %3139 = vrot.lane.b32.xlu0 %v7396_v16, %s7625_s27 }
 0xc83   :  { %3141 = vrot.lane.b32.xlu1 %v7397_v49, %s7625_s27 }
 0xc86   :  { %3145 = vrot.lane.b32.xlu0 %v8293_v59, %s7625_s27 }
 0xc87   :  { %3204 = vrot.lane.b32.xlu1 %v7396_v16, %s7626_s20 }
 0xc8b   :  { %3206 = vrot.lane.b32.xlu1 %v7397_v49, %s7626_s20 }
 0xcf9   :  { %v3020_v61 = vpop.xlane.xlu0 %3019 }
 0xcfa   :  { %v3025_v60 = vmul.f32 0.03125, %v3020_v61  ;;  %v3357_v61 = vrot.slane %v3352_v42, %v7771_v36 }
 0xcfb   :  { %v3023_v62 = vpop.xlane.xlu1 %3022 }
 0xcfc   :  { %v3028_v63 = vadd.f32 1e-05, %v3025_v60  ;;  %v3026_v1 = vmul.f32 0.03125, %v3023_v62 }
 0xcfd   :  { %v3140_v24 = vpop.permute.xlu0 %3139 }
 0xcfe   :  { %7509 = vrsqrt.f32 %v3028_v63  ;;  %v3029_v33 = vadd.f32 1e-05, %v3026_v1  ;;  %7045 = vmatprep.subr.bf16.mxu1 %v3140_v24 }
 0xcff   :  { %v3017_v55 = vpop.xlane.xlu1 %3016  ;;  %7046 = vmatpush3.bf16.msra.mxu1 %v3140_v24 }
 0xd00   :  { %7511 = vrsqrt.f32 %v3029_v33  ;;  %v3024_v26 = vmul.f32 0.03125, %v3017_v55 }
 0xd01   :  { %v3146_v53 = vpop.permute.xlu0 %3145 }
 0xd02   :  { %v3027_v29 = vadd.f32 1e-05, %v3024_v26 }
 0xd03   :  { %v3142_v20 = vpop.permute.xlu1 %3141 }
 0xd04   :  { %7513 = vrsqrt.f32 %v3027_v29  ;;  %7047 = vmatprep.subr.bf16.mxu1 %v3142_v20 }
 0xd05   :  { %7048 = vmatpush3.bf16.msra.mxu1 %v3142_v20 }
 0xd06   :  { %7061 = vmatprep.subr.bf16.mxu1 %v7627_v10 }
 0xd07   :  { %v3205_v32 = vpop.permute.xlu1 %3204 }
 0xd08   :  { %v7510_v30 = vpop.eup %7509  ;;  %7050 = vmatmul.mubr.msk.bf16.vlgmr.msra.gmra.mrb[100].mxu1 %vm94_vm0, %v7399_v3  ;;  %7053 = vmatprep.subr.bf16.mxu0 %v3205_v32 }
 0xd09   :  { %7063 = vmatprep.mubr.msk.bf16.mxu1 %vm7628_vm1, %v7627_v10  ;;  %v3034_v41 = vmul.f32 %v7510_v30, %v3010_v8 }
 0xd0a   :  { %v7512_v35 = vpop.eup %7511 }
 0xd0b   :  { %v3035_v7 = vmul.f32 %v7512_v35, %v3011_v38  ;;  %v3041_v58 = vmul.f32 %v6386_v5, %v3034_v41  ;;  %v3207_v19 = vpop.permute.xlu1 %3206 }
 0xd0d   :  { %v3042_v28 = vmul.f32 %v6386_v5, %v3035_v7  ;;  %v8314_v14 = vadd.f32 %v6387_v46, %v3041_v58 }
 0xd0e   :  { %v7514_v43 = vpop.eup %7513 }
 0xd0f   :  { %v3033_v9 = vmul.f32 %v7514_v43, %v3009_v2  ;;  %v8310_v44 = vadd.f32 %v6387_v46, %v3042_v28 }
 0xd11   :  { %v3040_v52 = vmul.f32 %v6386_v5, %v3033_v9  ;;  %v3051_v22 = vpack.c.bf16 %v8310_v44, %v8310_v44 }
 0xd13   :  { %v8312_v15 = vadd.f32 %v6387_v46, %v3040_v52 }
 0xd15   :  { %v3050_v39 = vpack.c.bf16 %v8314_v14, %v8312_v15 }
 0xd17   :  { %7041 = vmatprep.mubr.msk.bf16.mxu0 %vm94_vm0, %v3050_v39 }
 0xd18   :  { %7042 = vmatmul.mubr.msk.bf16.vlgmr.msra.gmra.mrb[108].mxu0 %vm94_vm0, %v3051_v22 }
 0xd19   :  { %7054 = vmatpush3.bf16.msra.mxu0 %v3205_v32  ;;  %7057 = vmatprep.mubr.msk.bf16.mxu0 %vm94_vm0, %v7398_v56 }
 0xd1a   :  { %7055 = vmatprep.subr.bf16.mxu0 %v3207_v19 }
 0xd1d   :  { %7056 = vmatpush3.bf16.msra.mxu0 %v3207_v19 }
 0xd1e   :  { %7067 = vmatprep.subr.bf16.mxu0 %v7627_v10 }
 0xd20   :  { %7058 = vmatmul.mubr.msk.bf16.vlgmr.msra.gmra.mrb[112].mxu0 %vm94_vm0, %v7399_v3 }
 0xd21   :  { %7069 = vmatprep.mubr.msk.bf16.mxu0 %vm7628_vm1, %v7627_v10 }
 0xddb   :  { %v7051_v13 = vpop.f32.mrb[100].mxu1 }
 0xddc   :  { %v3188_v23 = vpop.f32.mrb[101].mxu1  ;;  %v3197_v45 = vadd.f32 %v7051_v13, %v3146_v53 }
 0xddd   :  { %v7052_v0 = vpop.f32.mrb[102].mxu1  ;;  %v3189_v57 = vadd.f32 %v3188_v23, %v3146_v53 }
 0xdde   :  { %v3191_v47 = vpop.f32.mrb[103].mxu1  ;;  %v3203_v60 = vpack.c.bf16 %v3197_v45, %v3197_v45 }
 0xddf   :  { %v3192_v11 = vadd.f32 %v3191_v47, %v3146_v53 }
 0xde0   :  { %v3321_v20 = vrot.slane %v3203_v60, %v7765_v31 }
 0xde1   :  { %v3202_v6 = vpack.c.bf16 %v3192_v11, %v3189_v57  ;;  %v6400_v8 = vpack.c.bf16 %v3192_v11, %v3192_v11 }
 0xde2   :  { %v3322_v35 = vcombine.high %v3321_v20, %v3321_v20  ;;  %v8389_v7 = vsel %vm94_vm0, %v3321_v20, 0 }
 0xde3   :  { %v3305_v16 = vrot.slane %v3202_v6, %v7765_v31  ;;  %v3312_v50 = vrot.slane %v6400_v8, %v7765_v31 }
 0xde4   :  { %v8397_v43 = vsel %vm94_vm0, %v3322_v35, 0 }
 0xde5   :  { %v8329_v49 = vsel %vm94_vm0, %v3305_v16, 0  ;;  %v3313_v17 = vcombine.high %v3305_v16, %v3305_v16  ;;  %v3314_v1 = vcombine.high %v3312_v50, %v3312_v50  ;;  %v8363_v55 = vsel %vm94_vm0, %v3312_v50, 0 }
 0xde6   :  { %7062 = vmatpush3.bf16.xpose.msra.mxu1 %v8329_v49 }
 0xde7   :  { %v8333_v21 = vsel %vm94_vm0, %v3313_v17, 0  ;;  %7073 = vmatprep.subr.bf16.mxu1 %v7627_v10  ;;  %v8371_v29 = vsel %vm94_vm0, %v3314_v1, 0 }
 0xde8   :  { %7068 = vmatpush3.bf16.xpose.msra.mxu0 %v8333_v21 }
 0xde9   :  { %7079 = vmatprep.subr.bf16.mxu0 %v7627_v10 }
 0xdeb   :  { %v7043_v18 = vpop.f32.mrb[108].mxu0 }
 0xdec   :  { %v3115_v4 = vpop.f32.mrb[109].mxu0  ;;  %v3124_v24 = vadd.f32 %v7043_v18, %v8293_v59 }
 0xded   :  { %v7044_v12 = vpop.f32.mrb[110].mxu0  ;;  %v3116_v38 = vadd.f32 %v8293_v59, %v3115_v4 }
 0xdee   :  { %v3118_v2 = vpop.f32.mrb[111].mxu0  ;;  %v3130_v3 = vpack.c.bf16 %v3124_v24, %v3124_v24 }
 0xdef   :  { %v3119_v37 = vadd.f32 %v8293_v59, %v3118_v2 }
 0xdf0   :  { %v8385_v41 = vrot.slane %v3130_v3, %v7765_v31 }
 0xdf1   :  { %v3129_v34 = vpack.c.bf16 %v3119_v37, %v3116_v38  ;;  %v6399_v51 = vpack.c.bf16 %v3119_v37, %v3119_v37 }
 0xdf2   :  { %v8405_v28 = vcombine.high %v8385_v41, %v8385_v41  ;;  %v3362_v9 = vmul.bf16 %v3357_v61, %v8385_v41 }
 0xdf3   :  { %v8349_v56 = vrot.slane %v3129_v34, %v7765_v31  ;;  %v8359_v33 = vrot.slane %v6399_v51, %v7765_v31  ;;  %v8416_v46 = vpop.f32.mrb[112].mxu0 }
 0xdf4   :  { %v3363_v58 = vmul.bf16 %v3357_v61, %v8405_v28  ;;  %v8418_v52 = vpop.f32.mrb[113].mxu0 }
 0xdf5   :  { %v8354_v62 = vcombine.high %v8349_v56, %v8349_v56  ;;  %v3358_v63 = vmul.bf16 %v3357_v61, %v8349_v56  ;;  %v8380_v32 = vcombine.high %v8359_v33, %v8359_v33  ;;  %v3360_v30 = vmul.bf16 %v3357_v61, %v8359_v33  ;;  %v7060_v39 = vpop.f32.mrb[114].mxu0 }
 0xdf6   :  { %v8420_v22 = vpop.f32.mrb[115].mxu0 }
 0xdf7   :  { %7064 = vmatmul.mubr.msk.bf16.vlgmr.msra.gmra.mrb[104].mxu1 %vm94_vm0, %v3358_v63  ;;  %v3359_v26 = vmul.bf16 %v3357_v61, %v8354_v62  ;;  %v3361_v5 = vmul.bf16 %v3357_v61, %v8380_v32 }
 0xdf8   :  { %7074 = vmatpush3.bf16.xpose.msra.mxu1 %v8363_v55  ;;  %7075 = vmatprep.mubr.msk.bf16.mxu1 %vm7628_vm1, %v7627_v10 }
 0xdf9   :  { %7070 = vmatmul.mubr.msk.bf16.vlgmr.msra.gmra.mrb[116].mxu0 %vm94_vm0, %v3359_v26  ;;  %7085 = vmatprep.subr.bf16.mxu1 %v7627_v10 }
 0xdfa   :  { %7080 = vmatpush3.bf16.xpose.msra.mxu0 %v8371_v29  ;;  %7081 = vmatprep.mubr.msk.bf16.mxu0 %vm7628_vm1, %v7627_v10 }
 0xdfb   :  { %7091 = vmatprep.subr.bf16.mxu0 %v7627_v10 }
 0xdff   :  { %7076 = vmatmul.mubr.msk.bf16.vlgmr.msra.gmra.mrb[108].mxu1 %vm94_vm0, %v3360_v30 }
 0xe00   :  { %7086 = vmatpush3.bf16.xpose.msra.mxu1 %v8389_v7  ;;  %7087 = vmatprep.mubr.msk.bf16.mxu1 %vm7628_vm1, %v7627_v10 }
 0xe01   :  { %7082 = vmatmul.mubr.msk.bf16.vlgmr.msra.gmra.mrb[120].mxu0 %vm94_vm0, %v3361_v5  ;;  %7097 = vmatprep.subr.bf16.mxu1 %v7627_v10 }
 0xe02   :  { %7092 = vmatpush3.bf16.xpose.msra.mxu0 %v8397_v43  ;;  %7093 = vmatprep.mubr.msk.bf16.mxu0 %vm7628_vm1, %v7627_v10 }
 0xe03   :  { %7103 = vmatprep.subr.bf16.mxu0 %v7627_v10 }
 0xe07   :  { %7088 = vmatmul.mubr.msk.bf16.vlgmr.msra.gmra.mrb[112].mxu1 %vm94_vm0, %v3362_v9 }
 0xe08   :  { %7099 = vmatprep.mubr.msk.bf16.mxu1 %vm7628_vm1, %v7627_v10 }
 0xe09   :  { %7094 = vmatmul.mubr.msk.bf16.vlgmr.msra.gmra.mrb[124].mxu0 %vm94_vm0, %v3363_v58 }
 0xe0a   :  { %7105 = vmatprep.mubr.msk.bf16.mxu0 %vm7628_vm1, %v7627_v10 }
 0xeca   :  { %v3404_v19 = vpop.f32.mrb[104].mxu1 }
 0xecb   :  { %v3640_v53 = vmul.f32 0.35355338, %v3404_v19  ;;  %v7065_v13 = vpop.f32.mrb[105].mxu1 }
 0xecc   :  { %v3407_v23 = vpop.f32.mrb[106].mxu1  ;;  %v3450_v0 = vpop.f32.mrb[116].mxu0 }
 0xecd   :  { %v3641_v57 = vmul.f32 0.35355338, %v3450_v0  ;;  %v7066_v47 = vpop.f32.mrb[107].mxu1  ;;  %v7071_v11 = vpop.f32.mrb[117].mxu0  ;;  %v3646_v6 = vsel %vm652_vm2, %v3640_v53, -inf }
 0xece   :  { %3647 = vmax.xlane.f32.xlu1 %v3646_v6  ;;  %v3453_v16 = vpop.f32.mrb[118].mxu0 }
 0xecf   :  { %v7072_v17 = vpop.f32.mrb[119].mxu0  ;;  %v3649_v18 = vsel %vm652_vm2, %v3641_v57, -inf }
 0xed0   :  { %3650 = vmax.xlane.f32.xlu0 %v3649_v18 }
 0xed2   :  { %v3496_v4 = vpop.f32.mrb[108].mxu1 }
 0xed3   :  { %v3642_v8 = vmul.f32 0.35355338, %v3496_v4  ;;  %v7077_v12 = vpop.f32.mrb[109].mxu1 }
 0xed4   :  { %v3499_v2 = vpop.f32.mrb[110].mxu1  ;;  %v3542_v38 = vpop.f32.mrb[120].mxu0 }
 0xed5   :  { %v3643_v37 = vmul.f32 0.35355338, %v3542_v38  ;;  %v7078_v42 = vpop.f32.mrb[111].mxu1  ;;  %v7083_v45 = vpop.f32.mrb[121].mxu0  ;;  %v3652_v34 = vsel %vm652_vm2, %v3642_v8, -inf }
 0xed6   :  { %3653 = vmax.xlane.f32.xlu0 %v3652_v34  ;;  %v3545_v50 = vpop.f32.mrb[122].mxu0 }
 0xed7   :  { %v7084_v51 = vpop.f32.mrb[123].mxu0  ;;  %v3655_v61 = vsel %vm652_vm2, %v3643_v37, -inf }
 0xeda   :  { %v3588_v60 = vpop.f32.mrb[112].mxu1  ;;  %3656 = vmax.xlane.f32.xlu0 %v3655_v61 }
 0xedb   :  { %v3644_v63 = vmul.f32 0.35355338, %v3588_v60  ;;  %v7089_v1 = vpop.f32.mrb[113].mxu1 }
 0xedc   :  { %v3591_v24 = vpop.f32.mrb[114].mxu1  ;;  %v3634_v26 = vpop.f32.mrb[124].mxu0 }
 0xedd   :  { %v3645_v20 = vmul.f32 0.35355338, %v3634_v26  ;;  %v7090_v3 = vpop.f32.mrb[115].mxu1  ;;  %v7095_v30 = vpop.f32.mrb[125].mxu0  ;;  %v3658_v35 = vsel %vm652_vm2, %v3644_v63, -inf }
 0xede   :  { %3659 = vmax.xlane.f32.xlu1 %v3658_v35  ;;  %v3637_v5 = vpop.f32.mrb[126].mxu0 }
 0xedf   :  { %v7096_v9 = vpop.f32.mrb[127].mxu0  ;;  %v3661_v58 = vsel %vm652_vm2, %v3645_v20, -inf }
 0xee0   :  { %3662 = vmax.xlane.f32.xlu0 %v3661_v58 }
 0xf5b   :  { %v3648_v39 = vpop.xlane.xlu1 %3647 }
 0xf5c   :  { %v3664_v19 = vsub.f32 %v3640_v53, %v3648_v39 }
 0xf5d   :  { %v3651_v13 = vpop.xlane.xlu0 %3650 }
 0xf5e   :  { %v3670_v23 = vmul.f32 1.442695, %v3664_v19  ;;  %v3665_v0 = vsub.f32 %v3641_v57, %v3651_v13 }
 0xf60   :  { %7515 = vpow2.f32 %v3670_v23  ;;  %v3672_v47 = vmul.f32 1.442695, %v3665_v0 }
 0xf62   :  { %7517 = vpow2.f32 %v3672_v47 }
 0xf63   :  { %v3654_v11 = vpop.xlane.xlu0 %3653 }
 0xf64   :  { %v3666_v6 = vsub.f32 %v3642_v8, %v3654_v11 }
 0xf66   :  { %v3674_v16 = vmul.f32 1.442695, %v3666_v6 }
 0xf67   :  { %v3657_v17 = vpop.xlane.xlu0 %3656 }
 0xf68   :  { %7519 = vpow2.f32 %v3674_v16  ;;  %v3667_v18 = vsub.f32 %v3643_v37, %v3657_v17 }
 0xf6a   :  { %v7516_v4 = vpop.eup %7515  ;;  %v3676_v12 = vmul.f32 1.442695, %v3667_v18 }
 0xf6b   :  { %v3660_v2 = vpop.xlane.xlu1 %3659  ;;  %v3682_v38 = vsel %vm652_vm2, %v7516_v4, 0.0 }
 0xf6c   :  { %v7518_v42 = vpop.eup %7517  ;;  %7521 = vpow2.f32 %v3676_v12  ;;  %v3668_v53 = vsub.f32 %v3644_v63, %v3660_v2  ;;  %3683 = vadd.xlane.f32.xlu1 %v3682_v38 }
 0xf6d   :  { %v3663_v45 = vpop.xlane.xlu0 %3662  ;;  %v3685_v57 = vsel %vm652_vm2, %v7518_v42, 0.0 }
 0xf6e   :  { %v3678_v34 = vmul.f32 1.442695, %v3668_v53  ;;  %v3669_v50 = vsub.f32 %v3645_v20, %v3663_v45  ;;  %3686 = vadd.xlane.f32.xlu0 %v3685_v57 }
 0xf70   :  { %7523 = vpow2.f32 %v3678_v34  ;;  %v3680_v8 = vmul.f32 1.442695, %v3669_v50 }
 0xf72   :  { %v7520_v51 = vpop.eup %7519  ;;  %7525 = vpow2.f32 %v3680_v8 }
 0xf73   :  { %v3688_v37 = vsel %vm652_vm2, %v7520_v51, 0.0 }
 0xf74   :  { %3689 = vadd.xlane.f32.xlu1 %v3688_v37 }
 0xf76   :  { %v7522_v61 = vpop.eup %7521 }
 0xf77   :  { %v3691_v60 = vsel %vm652_vm2, %v7522_v61, 0.0 }
 0xf78   :  { %3692 = vadd.xlane.f32.xlu0 %v3691_v60 }
 0xf7a   :  { %v8432_v1 = vpop.eup %7523 }
 0xf7b   :  { %v3694_v63 = vsel %vm652_vm2, %v8432_v1, 0.0 }
 0xf7c   :  { %v8436_v24 = vpop.eup %7525  ;;  %3695 = vadd.xlane.f32.xlu1 %v3694_v63 }
 0xf7d   :  { %v3697_v26 = vsel %vm652_vm2, %v8436_v24, 0.0 }
 0xf7e   :  { %3698 = vadd.xlane.f32.xlu0 %v3697_v26 }
 0xf8d   :  { %3210 = vrot.lane.b32.xlu1 %v8293_v59, %s7626_s20 }
 0xff9   :  { %v3684_v20 = vpop.xlane.xlu1 %3683 }
 0xffa   :  { %7527 = vrcp.f32 %v3684_v20  ;;  %v8490_v20 = vld [vmem:[%s8900_s16] sm:$0x1] }
 0xffb   :  { %v3687_v3 = vpop.xlane.xlu0 %3686 }
 0xffc   :  { %7529 = vrcp.f32 %v3687_v3 }
0x1001   :  { %v3690_v30 = vpop.xlane.xlu1 %3689 }
0x1002   :  { %7531 = vrcp.f32 %v3690_v30 }
0x1004   :  { %v7528_v19 = vpop.eup %7527 }
0x1005   :  { %v3693_v5 = vpop.xlane.xlu0 %3692  ;;  %v3706_v47 = vmul.f32 %v7528_v19, %v7516_v4 }
0x1006   :  { %7533 = vrcp.f32 %v3693_v5  ;;  %v7530_v0 = vpop.eup %7529 }
0x1007   :  { %v3707_v16 = vmul.f32 %v7530_v0, %v7518_v42  ;;  %v3712_v4 = vpack.c.bf16 %v3706_v47, %v3706_v47 }
0x1009   :  { %v3696_v35 = vpop.xlane.xlu1 %3695  ;;  %v3713_v42 = vpack.c.bf16 %v3707_v16, %v3707_v16 }
0x100a   :  { %7535 = vrcp.f32 %v3696_v35 }
0x100b   :  { %v3699_v17 = vpop.xlane.xlu0 %3698 }
0x100c   :  { %v7532_v2 = vpop.eup %7531  ;;  %7537 = vrcp.f32 %v3699_v17 }
0x100d   :  { %v3211_v9 = vpop.permute.xlu1 %3210  ;;  %v3708_v45 = vmul.f32 %v7532_v2, %v7520_v51 }
0x100e   :  { %v3248_v58 = vadd.f32 %v8418_v52, %v3211_v9  ;;  %v3251_v39 = vadd.f32 %v8420_v22, %v3211_v9  ;;  %v3256_v59 = vadd.f32 %v8416_v46, %v3211_v9 }
0x100f   :  { %v3714_v8 = vpack.c.bf16 %v3708_v45, %v3708_v45 }
0x1010   :  { %v3261_v13 = vpack.c.bf16 %v3251_v39, %v3248_v58  ;;  %v6401_v23 = vpack.c.bf16 %v3251_v39, %v3251_v39  ;;  %v3262_v22 = vpack.c.bf16 %v3256_v59, %v3256_v59  ;;  %v7534_v53 = vpop.eup %7533 }
0x1011   :  { %v3709_v50 = vmul.f32 %v7534_v53, %v7522_v61 }
0x1012   :  { %v3332_v11 = vrot.slane %v3261_v13, %v7765_v31  ;;  %v3339_v6 = vrot.slane %v6401_v23, %v7765_v31  ;;  %v3348_v34 = vrot.slane %v3262_v22, %v7765_v31 }
0x1013   :  { %v3715_v63 = vpack.c.bf16 %v3709_v50, %v3709_v50 }
0x1014   :  { %v8448_v18 = vsel %vm729_vm3, %v3332_v11, 0  ;;  %v3340_v52 = vcombine.high %v3332_v11, %v3332_v11  ;;  %v3341_v46 = vcombine.high %v3339_v6, %v3339_v6  ;;  %v8458_v38 = vsel %vm729_vm3, %v3339_v6, 0  ;;  %v7536_v51 = vpop.eup %7535 }
0x1015   :  { %7098 = vmatpush3.bf16.msra.mxu1 %v8448_v18  ;;  %v3349_v37 = vcombine.high %v3348_v34, %v3348_v34  ;;  %v8476_v60 = vsel %vm729_vm3, %v3348_v34, 0  ;;  %v3710_v31 = vmul.f32 %v7536_v51, %v8432_v1  ;;  %v4013_v1 = vshrl.u32 %v8490_v20, 16 }
0x1016   :  { %v8452_v12 = vsel %vm729_vm3, %v3340_v52, 0  ;;  %7109 = vmatprep.subr.bf16.mxu1 %v7627_v10  ;;  %v8466_v57 = vsel %vm729_vm3, %v3341_v46, 0  ;;  %v7538_v26 = vpop.eup %7537 }
0x1017   :  { %7104 = vmatpush3.bf16.msra.mxu0 %v8452_v12  ;;  %v8484_v61 = vsel %vm729_vm3, %v3349_v37, 0  ;;  %v3711_v3 = vmul.f32 %v7538_v26, %v8436_v24  ;;  %v3716_v30 = vpack.c.bf16 %v3710_v31, %v3710_v31  ;;  %v4014_v5 = vpack.i.b16 %v4013_v1, %v4013_v1 }
0x1018   :  { %7100 = vmatmul.mubr.msk.bf16.vlgmr.msra.gmra.mrb[116].mxu1 %vm725_vm4, %v3712_v4  ;;  %7115 = vmatprep.subr.bf16.mxu0 %v7627_v10 }
0x1019   :  { %7110 = vmatpush3.bf16.msra.mxu1 %v8458_v38  ;;  %7111 = vmatprep.mubr.msk.bf16.mxu1 %vm7628_vm1, %v7627_v10  ;;  %v3717_v35 = vpack.c.bf16 %v3711_v3, %v3711_v3  ;;  %v4019_v24 = vrot.slane %v4014_v5, %v7771_v36 }
0x101a   :  { %7106 = vmatmul.mubr.msk.bf16.vlgmr.msra.gmra.mrb[128].mxu0 %vm725_vm4, %v3713_v42  ;;  %7121 = vmatprep.subr.bf16.mxu1 %v7627_v10 }
0x101b   :  { %7116 = vmatpush3.bf16.msra.mxu0 %v8466_v57  ;;  %7117 = vmatprep.mubr.msk.bf16.mxu0 %vm7628_vm1, %v7627_v10  ;;  %v4020_v9 = vmul.bf16 %v4019_v24, %v8349_v56  ;;  %v4021_v58 = vmul.bf16 %v4019_v24, %v8354_v62  ;;  %v4022_v39 = vmul.bf16 %v4019_v24, %v8359_v33 }
0x101c   :  { %7127 = vmatprep.subr.bf16.mxu0 %v7627_v10  ;;  %v4023_v19 = vmul.bf16 %v4019_v24, %v8380_v32  ;;  %v4024_v13 = vmul.bf16 %v4019_v24, %v8385_v41  ;;  %v4025_v23 = vmul.bf16 %v4019_v24, %v8405_v28 }
0x1020   :  { %7112 = vmatmul.mubr.msk.bf16.vlgmr.msra.gmra.mrb[120].mxu1 %vm725_vm4, %v3714_v8 }
0x1021   :  { %7122 = vmatpush3.bf16.msra.mxu1 %v8476_v60  ;;  %7123 = vmatprep.mubr.msk.bf16.mxu1 %vm7628_vm1, %v7627_v10 }
0x1022   :  { %7118 = vmatmul.mubr.msk.bf16.vlgmr.msra.gmra.mrb[132].mxu0 %vm725_vm4, %v3715_v63  ;;  %7133 = vmatprep.subr.bf16.mxu1 %v7627_v10 }
0x1023   :  { %7128 = vmatpush3.bf16.msra.mxu0 %v8484_v61  ;;  %7129 = vmatprep.mubr.msk.bf16.mxu0 %vm7628_vm1, %v7627_v10 }
0x1024   :  { %7139 = vmatprep.subr.bf16.mxu0 %v7627_v10 }
0x1028   :  { %7124 = vmatmul.mubr.msk.bf16.vlgmr.msra.gmra.mrb[124].mxu1 %vm725_vm4, %v3716_v30 }
0x1029   :  { %7135 = vmatprep.mubr.msk.bf16.mxu1 %vm7628_vm1, %v7627_v10 }
0x102a   :  { %7134 = vmatpush3.bf16.xpose.msra.mxu1 %v8329_v49  ;;  %7130 = vmatmul.mubr.msk.bf16.vlgmr.msra.gmra.mrb[136].mxu0 %vm725_vm4, %v3717_v35 }
0x102b   :  { %7145 = vmatprep.subr.bf16.mxu1 %v7627_v10  ;;  %7141 = vmatprep.mubr.msk.bf16.mxu0 %vm7628_vm1, %v7627_v10 }
0x102c   :  { %7140 = vmatpush3.bf16.xpose.msra.mxu0 %v8333_v21 }
0x102d   :  { %7151 = vmatprep.subr.bf16.mxu0 %v7627_v10 }
0x1031   :  { %7136 = vmatmul.mubr.msk.bf16.vlgmr.msra.gmra.mrb[128].mxu1 %vm94_vm0, %v4020_v9 }
0x1032   :  { %7146 = vmatpush3.bf16.xpose.msra.mxu1 %v8363_v55  ;;  %7147 = vmatprep.mubr.msk.bf16.mxu1 %vm7628_vm1, %v7627_v10 }
0x1033   :  { %7142 = vmatmul.mubr.msk.bf16.vlgmr.msra.gmra.mrb[140].mxu0 %vm94_vm0, %v4021_v58  ;;  %7157 = vmatprep.subr.bf16.mxu1 %v7627_v10 }
0x1034   :  { %7152 = vmatpush3.bf16.xpose.msra.mxu0 %v8371_v29  ;;  %7153 = vmatprep.mubr.msk.bf16.mxu0 %vm7628_vm1, %v7627_v10 }
0x1035   :  { %7163 = vmatprep.subr.bf16.mxu0 %v7627_v10 }
0x1039   :  { %7148 = vmatmul.mubr.msk.bf16.vlgmr.msra.gmra.mrb[132].mxu1 %vm94_vm0, %v4022_v39 }
0x103a   :  { %7158 = vmatpush3.bf16.xpose.msra.mxu1 %v8389_v7  ;;  %7159 = vmatprep.mubr.msk.bf16.mxu1 %vm7628_vm1, %v7627_v10 }
0x103b   :  { %7154 = vmatmul.mubr.msk.bf16.vlgmr.msra.gmra.mrb[144].mxu0 %vm94_vm0, %v4023_v19  ;;  %7169 = vmatprep.subr.bf16.mxu1 %v7627_v10 }
0x103c   :  { %7164 = vmatpush3.bf16.xpose.msra.mxu0 %v8397_v43  ;;  %7165 = vmatprep.mubr.msk.bf16.mxu0 %vm7628_vm1, %v7627_v10 }
0x103d   :  { %7175 = vmatprep.subr.bf16.mxu0 %v7627_v10 }
0x1041   :  { %7160 = vmatmul.mubr.msk.bf16.vlgmr.msra.gmra.mrb[136].mxu1 %vm94_vm0, %v4024_v13 }
0x1042   :  { %7170 = vmatpush3.bf16.msra.mxu1 %v8448_v18  ;;  %7171 = vmatprep.mubr.msk.bf16.mxu1 %vm7628_vm1, %v7627_v10 }
0x1043   :  { %7166 = vmatmul.mubr.msk.bf16.vlgmr.msra.gmra.mrb[148].mxu0 %vm94_vm0, %v4025_v23  ;;  %7181 = vmatprep.subr.bf16.mxu1 %v7627_v10 }
0x1044   :  { %7176 = vmatpush3.bf16.msra.mxu0 %v8452_v12  ;;  %7177 = vmatprep.mubr.msk.bf16.mxu0 %vm7628_vm1, %v7627_v10 }
0x1045   :  { %7187 = vmatprep.subr.bf16.mxu0 %v7627_v10 }
0x10eb   :  { %v8545_v0 = vpop.f32.mrb[116].mxu1 }
0x10ec   :  { %v7101_v47 = vpop.f32.mrb[117].mxu1 }
0x10ed   :  { %v3761_v59 = vpop.f32.mrb[118].mxu1  ;;  %v8547_v11 = vpop.f32.mrb[128].mxu0 }
0x10ee   :  { %v7102_v6 = vpop.f32.mrb[119].mxu1  ;;  %v7107_v16 = vpop.f32.mrb[129].mxu0 }
0x10ef   :  { %v3807_v17 = vpop.f32.mrb[130].mxu0 }
0x10f0   :  { %v7108_v52 = vpop.f32.mrb[131].mxu0 }
0x10f3   :  { %v8549_v22 = vpop.f32.mrb[120].mxu1 }
0x10f4   :  { %v7113_v4 = vpop.f32.mrb[121].mxu1 }
0x10f5   :  { %v3853_v46 = vpop.f32.mrb[122].mxu1  ;;  %v8551_v2 = vpop.f32.mrb[132].mxu0 }
0x10f6   :  { %v7114_v42 = vpop.f32.mrb[123].mxu1  ;;  %v7119_v53 = vpop.f32.mrb[133].mxu0 }
0x10f7   :  { %v3899_v45 = vpop.f32.mrb[134].mxu0 }
0x10f8   :  { %v7120_v34 = vpop.f32.mrb[135].mxu0 }
0x10fb   :  { %v8553_v50 = vpop.f32.mrb[124].mxu1 }
0x10fc   :  { %v7125_v8 = vpop.f32.mrb[125].mxu1 }
0x10fd   :  { %v3945_v37 = vpop.f32.mrb[126].mxu1  ;;  %v8555_v51 = vpop.f32.mrb[136].mxu0 }
0x10fe   :  { %v7126_v63 = vpop.f32.mrb[127].mxu1  ;;  %v7131_v26 = vpop.f32.mrb[137].mxu0 }
0x10ff   :  { %v3991_v31 = vpop.f32.mrb[138].mxu0 }
0x1100   :  { %v7132_v3 = vpop.f32.mrb[139].mxu0 }
0x1104   :  { %v4063_v1 = vpop.f32.mrb[128].mxu1 }
0x1105   :  { %v4284_v30 = vmul.f32 0.35355338, %v4063_v1  ;;  %v7137_v35 = vpop.f32.mrb[129].mxu1 }
0x1106   :  { %v4066_v5 = vpop.f32.mrb[130].mxu1  ;;  %v4106_v24 = vpop.f32.mrb[140].mxu0 }
0x1107   :  { %v4285_v9 = vmul.f32 0.35355338, %v4106_v24  ;;  %v7138_v58 = vpop.f32.mrb[131].mxu1  ;;  %v7143_v39 = vpop.f32.mrb[141].mxu0  ;;  %v4290_v19 = vsel %vm652_vm2, %v4284_v30, -inf }
0x1108   :  { %4291 = vmax.xlane.f32.xlu0 %v4290_v19  ;;  %v4109_v13 = vpop.f32.mrb[142].mxu0 }
0x1109   :  { %v7144_v23 = vpop.f32.mrb[143].mxu0  ;;  %v4293_v47 = vsel %vm652_vm2, %v4285_v9, -inf }
0x110c   :  { %v4149_v59 = vpop.f32.mrb[132].mxu1  ;;  %4294 = vmax.xlane.f32.xlu0 %v4293_v47 }
0x110d   :  { %v4286_v6 = vmul.f32 0.35355338, %v4149_v59  ;;  %v7149_v16 = vpop.f32.mrb[133].mxu1 }
0x110e   :  { %v4152_v17 = vpop.f32.mrb[134].mxu1  ;;  %v4192_v52 = vpop.f32.mrb[144].mxu0 }
0x110f   :  { %v4287_v4 = vmul.f32 0.35355338, %v4192_v52  ;;  %v7150_v46 = vpop.f32.mrb[135].mxu1  ;;  %v7155_v42 = vpop.f32.mrb[145].mxu0  ;;  %v4296_v53 = vsel %vm652_vm2, %v4286_v6, -inf }
0x1110   :  { %4297 = vmax.xlane.f32.xlu0 %v4296_v53  ;;  %v4195_v45 = vpop.f32.mrb[146].mxu0 }
0x1111   :  { %v7156_v34 = vpop.f32.mrb[147].mxu0  ;;  %v4299_v8 = vsel %vm652_vm2, %v4287_v4, -inf }
0x1114   :  { %v4235_v37 = vpop.f32.mrb[136].mxu1  ;;  %4300 = vmax.xlane.f32.xlu0 %v4299_v8 }
0x1115   :  { %v4288_v63 = vmul.f32 0.35355338, %v4235_v37  ;;  %v7161_v26 = vpop.f32.mrb[137].mxu1 }
0x1116   :  { %v4238_v31 = vpop.f32.mrb[138].mxu1  ;;  %v4278_v3 = vpop.f32.mrb[148].mxu0 }
0x1117   :  { %v4289_v1 = vmul.f32 0.35355338, %v4278_v3  ;;  %v7162_v35 = vpop.f32.mrb[139].mxu1  ;;  %v7167_v5 = vpop.f32.mrb[149].mxu0  ;;  %v4302_v24 = vsel %vm652_vm2, %v4288_v63, -inf }
0x1118   :  { %4303 = vmax.xlane.f32.xlu1 %v4302_v24  ;;  %v4281_v58 = vpop.f32.mrb[150].mxu0 }
0x1119   :  { %v7168_v39 = vpop.f32.mrb[151].mxu0  ;;  %v4305_v19 = vsel %vm652_vm2, %v4289_v1, -inf }
0x111a   :  { %4306 = vmax.xlane.f32.xlu0 %v4305_v19 }
0x1195   :  { %v4292_v13 = vpop.xlane.xlu0 %4291 }
0x1196   :  { %v4308_v23 = vsub.f32 %v4284_v30, %v4292_v13 }
0x1198   :  { %v4314_v47 = vmul.f32 1.442695, %v4308_v23 }
0x1199   :  { %v4295_v59 = vpop.xlane.xlu0 %4294 }
0x119a   :  { %7539 = vpow2.f32 %v4314_v47  ;;  %v4309_v16 = vsub.f32 %v4285_v9, %v4295_v59 }
0x119c   :  { %v4316_v17 = vmul.f32 1.442695, %v4309_v16 }
0x119d   :  { %v4298_v52 = vpop.xlane.xlu0 %4297 }
0x119e   :  { %7541 = vpow2.f32 %v4316_v17  ;;  %v4310_v46 = vsub.f32 %v4286_v6, %v4298_v52 }
0x11a0   :  { %v4318_v42 = vmul.f32 1.442695, %v4310_v46 }
0x11a1   :  { %v4301_v53 = vpop.xlane.xlu0 %4300 }
0x11a2   :  { %7543 = vpow2.f32 %v4318_v42  ;;  %v4311_v45 = vsub.f32 %v4287_v4, %v4301_v53 }
0x11a4   :  { %v7540_v34 = vpop.eup %7539  ;;  %v4320_v8 = vmul.f32 1.442695, %v4311_v45 }
0x11a5   :  { %v4304_v37 = vpop.xlane.xlu1 %4303  ;;  %v4326_v26 = vsel %vm652_vm2, %v7540_v34, 0.0 }
0x11a6   :  { %7545 = vpow2.f32 %v4320_v8  ;;  %v4312_v31 = vsub.f32 %v4288_v63, %v4304_v37  ;;  %4327 = vadd.xlane.f32.xlu0 %v4326_v26 }
0x11a7   :  { %v4307_v30 = vpop.xlane.xlu0 %4306 }
0x11a8   :  { %v7542_v3 = vpop.eup %7541  ;;  %v4322_v35 = vmul.f32 1.442695, %v4312_v31  ;;  %v4313_v9 = vsub.f32 %v4289_v1, %v4307_v30 }
0x11a9   :  { %v4329_v5 = vsel %vm652_vm2, %v7542_v3, 0.0 }
0x11aa   :  { %7547 = vpow2.f32 %v4322_v35  ;;  %v4324_v6 = vmul.f32 1.442695, %v4313_v9  ;;  %4330 = vadd.xlane.f32.xlu0 %v4329_v5 }
0x11ac   :  { %v7544_v24 = vpop.eup %7543  ;;  %7549 = vpow2.f32 %v4324_v6 }
0x11ad   :  { %v4332_v4 = vsel %vm652_vm2, %v7544_v24, 0.0 }
0x11ae   :  { %4333 = vadd.xlane.f32.xlu0 %v4332_v4 }
0x11b0   :  { %v7546_v58 = vpop.eup %7545 }
0x11b1   :  { %v4335_v39 = vsel %vm652_vm2, %v7546_v58, 0.0 }
0x11b2   :  { %4336 = vadd.xlane.f32.xlu0 %v4335_v39 }
0x11b4   :  { %v7548_v63 = vpop.eup %7547 }
0x11b5   :  { %v4338_v19 = vsel %vm652_vm2, %v7548_v63, 0.0 }
0x11b6   :  { %v7550_v13 = vpop.eup %7549  ;;  %4339 = vadd.xlane.f32.xlu0 %v4338_v19 }
0x11b7   :  { %v4341_v1 = vsel %vm652_vm2, %v7550_v13, 0.0 }
0x11ba   :  { %4342 = vadd.xlane.f32.xlu0 %v4341_v1 }
0x1233   :  { %v4328_v23 = vpop.xlane.xlu0 %4327 }
0x1234   :  { %7551 = vrcp.f32 %v4328_v23 }
0x1237   :  { %v4331_v47 = vpop.xlane.xlu0 %4330 }
0x1238   :  { %7553 = vrcp.f32 %v4331_v47 }
0x123b   :  { %v4334_v59 = vpop.xlane.xlu0 %4333 }
0x123c   :  { %7555 = vrcp.f32 %v4334_v59 }
0x123e   :  { %v7552_v16 = vpop.eup %7551 }
0x123f   :  { %v4350_v17 = vmul.f32 %v7552_v16, %v7540_v34  ;;  %v4337_v52 = vpop.xlane.xlu0 %4336 }
0x1240   :  { %7557 = vrcp.f32 %v4337_v52  ;;  %v4620_v52 = vunpack.c.l.bf16 %v8490_v20 }
0x1241   :  { %v4356_v46 = vpack.c.bf16 %v4350_v17, %v4350_v17  ;;  %v3994_v17 = vunpack.c.l.bf16 %v8341_v48 }
0x1242   :  { %v7554_v42 = vpop.eup %7553 }
0x1243   :  { %v4351_v53 = vmul.f32 %v7554_v42, %v7542_v3  ;;  %7172 = vmatmul.mubr.msk.bf16.vlgmr.msra.gmra.mrb[140].mxu1 %vm725_vm4, %v4356_v46  ;;  %v4340_v45 = vpop.xlane.xlu0 %4339  ;;  %v3998_v46 = vrot.slane %v3994_v17, %v7771_v36  ;;  %v4624_v42 = vrot.slane %v4620_v52, %v8031_v27 }
0x1244   :  { %7182 = vmatpush3.bf16.msra.mxu1 %v8458_v38  ;;  %7559 = vrcp.f32 %v4340_v45  ;;  %7183 = vmatprep.mubr.msk.bf16.mxu1 %vm7628_vm1, %v7627_v10 }
0x1245   :  { %v4357_v8 = vpack.c.bf16 %v4351_v53, %v4351_v53  ;;  %7193 = vmatprep.subr.bf16.mxu1 %v7627_v10  ;;  %v3999_v45 = vmul.f32 %v3998_v46, %v8545_v0  ;;  %v4003_v17 = vmul.f32 %v3998_v46, %v8553_v50 }
0x1246   :  { %v7556_v37 = vpop.eup %7555 }
0x1247   :  { %v4352_v26 = vmul.f32 %v7556_v37, %v7544_v24  ;;  %7178 = vmatmul.mubr.msk.bf16.vlgmr.msra.gmra.mrb[152].mxu0 %vm725_vm4, %v4357_v8  ;;  %v4343_v34 = vpop.xlane.xlu0 %4342  ;;  %v8592_v24 = vld [vmem:[%s8900_s16] sm:$0x2] }
0x1248   :  { %7188 = vmatpush3.bf16.msra.mxu0 %v8466_v57  ;;  %7561 = vrcp.f32 %v4343_v34  ;;  %7189 = vmatprep.mubr.msk.bf16.mxu0 %vm7628_vm1, %v7627_v10  ;;  %v4639_v39 = vpack.i.b16 %v8592_v24, %v8592_v24 }
0x1249   :  { %v4358_v31 = vpack.c.bf16 %v4352_v26, %v4352_v26  ;;  %7199 = vmatprep.subr.bf16.mxu0 %v7627_v10 }
0x124a   :  { %v7558_v30 = vpop.eup %7557  ;;  %v4644_v19 = vrot.slane %v4639_v39, %v8031_v27 }
0x124b   :  { %v4353_v3 = vmul.f32 %v7558_v30, %v7546_v58  ;;  %7184 = vmatmul.mubr.msk.bf16.vlgmr.msra.gmra.mrb[144].mxu1 %vm725_vm4, %v4358_v31 }
0x124c   :  { %7194 = vmatpush3.bf16.msra.mxu1 %v8476_v60  ;;  %7195 = vmatprep.mubr.msk.bf16.mxu1 %vm7628_vm1, %v7627_v10  ;;  %v4646_v1 = vmul.bf16 %v4644_v19, %v8354_v62  ;;  %v4647_v23 = vmul.bf16 %v4644_v19, %v8359_v33  ;;  %v4648_v47 = vmul.bf16 %v4644_v19, %v8380_v32 }
0x124d   :  { %v4359_v35 = vpack.c.bf16 %v4353_v3, %v4353_v3  ;;  %7205 = vmatprep.subr.bf16.mxu1 %v7627_v10  ;;  %v4649_v59 = vmul.bf16 %v4644_v19, %v8385_v41  ;;  %v4650_v16 = vmul.bf16 %v4644_v19, %v8405_v28  ;;  %v4000_v3 = vmul.f32 %v3998_v46, %v8547_v11 }
0x124e   :  { %v7560_v9 = vpop.eup %7559 }
0x124f   :  { %v4354_v5 = vmul.f32 %v7560_v9, %v7548_v63  ;;  %7190 = vmatmul.mubr.msk.bf16.vlgmr.msra.gmra.mrb[156].mxu0 %vm725_vm4, %v4359_v35 }
0x1250   :  { %7200 = vmatpush3.bf16.msra.mxu0 %v8484_v61  ;;  %7201 = vmatprep.mubr.msk.bf16.mxu0 %vm7628_vm1, %v7627_v10 }
0x1251   :  { %v4360_v6 = vpack.c.bf16 %v4354_v5, %v4354_v5  ;;  %7211 = vmatprep.subr.bf16.mxu0 %v7627_v10 }
0x1252   :  { %v7562_v4 = vpop.eup %7561 }
0x1253   :  { %v4355_v58 = vmul.f32 %v7562_v4, %v7550_v13  ;;  %7196 = vmatmul.mubr.msk.bf16.vlgmr.msra.gmra.mrb[148].mxu1 %vm725_vm4, %v4360_v6  ;;  %v4645_v13 = vmul.bf16 %v4644_v19, %v8349_v56  ;;  %v4001_v6 = vmul.f32 %v3998_v46, %v8549_v22 }
0x1254   :  { %7207 = vmatprep.mubr.msk.bf16.mxu1 %vm7628_vm1, %v7627_v10 }
0x1255   :  { %7206 = vmatpush3.bf16.xpose.msra.mxu1 %v8329_v49  ;;  %v4361_v63 = vpack.c.bf16 %v4355_v58, %v4355_v58 }
0x1256   :  { %7217 = vmatprep.subr.bf16.mxu1 %v7627_v10 }
0x1257   :  { %7202 = vmatmul.mubr.msk.bf16.vlgmr.msra.gmra.mrb[160].mxu0 %vm725_vm4, %v4361_v63 }
0x1258   :  { %7213 = vmatprep.mubr.msk.bf16.mxu0 %vm7628_vm1, %v7627_v10 }
0x1259   :  { %7212 = vmatpush3.bf16.xpose.msra.mxu0 %v8333_v21 }
0x125a   :  { %7223 = vmatprep.subr.bf16.mxu0 %v7627_v10 }
0x125c   :  { %7208 = vmatmul.mubr.msk.bf16.vlgmr.msra.gmra.mrb[152].mxu1 %vm94_vm0, %v4645_v13  ;;  %v4002_v13 = vmul.f32 %v3998_v46, %v8551_v2 }
0x125d   :  { %7218 = vmatpush3.bf16.xpose.msra.mxu1 %v8363_v55  ;;  %7219 = vmatprep.mubr.msk.bf16.mxu1 %vm7628_vm1, %v7627_v10 }
0x125e   :  { %7229 = vmatprep.subr.bf16.mxu1 %v7627_v10 }
0x1260   :  { %7214 = vmatmul.mubr.msk.bf16.vlgmr.msra.gmra.mrb[164].mxu0 %vm94_vm0, %v4646_v1 }
0x1261   :  { %7224 = vmatpush3.bf16.xpose.msra.mxu0 %v8371_v29  ;;  %7225 = vmatprep.mubr.msk.bf16.mxu0 %vm7628_vm1, %v7627_v10 }
0x1262   :  { %7235 = vmatprep.subr.bf16.mxu0 %v7627_v10 }
0x1264   :  { %7220 = vmatmul.mubr.msk.bf16.vlgmr.msra.gmra.mrb[156].mxu1 %vm94_vm0, %v4647_v23 }
0x1265   :  { %7230 = vmatpush3.bf16.xpose.msra.mxu1 %v8389_v7  ;;  %7231 = vmatprep.mubr.msk.bf16.mxu1 %vm7628_vm1, %v7627_v10 }
0x1266   :  { %7241 = vmatprep.subr.bf16.mxu1 %v7627_v10 }
0x1268   :  { %7226 = vmatmul.mubr.msk.bf16.vlgmr.msra.gmra.mrb[168].mxu0 %vm94_vm0, %v4648_v47 }
0x1269   :  { %7236 = vmatpush3.bf16.xpose.msra.mxu0 %v8397_v43  ;;  %7237 = vmatprep.mubr.msk.bf16.mxu0 %vm7628_vm1, %v7627_v10 }
0x126a   :  { %7247 = vmatprep.subr.bf16.mxu0 %v7627_v10 }
0x126c   :  { %7232 = vmatmul.mubr.msk.bf16.vlgmr.msra.gmra.mrb[160].mxu1 %vm94_vm0, %v4649_v59 }
0x126d   :  { %7242 = vmatpush3.bf16.msra.mxu1 %v8448_v18  ;;  %7243 = vmatprep.mubr.msk.bf16.mxu1 %vm7628_vm1, %v7627_v10 }
0x126e   :  { %7253 = vmatprep.subr.bf16.mxu1 %v7627_v10 }
0x1270   :  { %7238 = vmatmul.mubr.msk.bf16.vlgmr.msra.gmra.mrb[172].mxu0 %vm94_vm0, %v4650_v16 }
0x1271   :  { %7248 = vmatpush3.bf16.msra.mxu0 %v8452_v12  ;;  %7249 = vmatprep.mubr.msk.bf16.mxu0 %vm7628_vm1, %v7627_v10 }
0x1272   :  { %7259 = vmatprep.subr.bf16.mxu0 %v7627_v10 }
0x1316   :  { %v4399_v53 = vpop.f32.mrb[140].mxu1 }
0x1317   :  { %v4625_v8 = vmul.f32 %v4624_v42, %v4399_v53  ;;  %v7173_v37 = vpop.f32.mrb[141].mxu1 }
0x1318   :  { %v4402_v26 = vpop.f32.mrb[142].mxu1 }
0x1319   :  { %v8648_v34 = vadd.f32 %v4625_v8, %v3999_v45  ;;  %v7174_v31 = vpop.f32.mrb[143].mxu1  ;;  %v4004_v26 = vmul.f32 %v3998_v46, %v8555_v51 }
0x131a   :  { %v4442_v30 = vpop.f32.mrb[152].mxu0 }
0x131b   :  { %v4626_v35 = vmul.f32 %v4624_v42, %v4442_v30  ;;  %v7179_v48 = vpop.f32.mrb[153].mxu0 }
0x131c   :  { %v4445_v9 = vpop.f32.mrb[154].mxu0 }
0x131d   :  { %v8651_v20 = vadd.f32 %v4626_v35, %v4000_v3  ;;  %v7180_v36 = vpop.f32.mrb[155].mxu0 }
0x131e   :  { %v4485_v5 = vpop.f32.mrb[144].mxu1 }
0x131f   :  { %v4627_v4 = vmul.f32 %v4624_v42, %v4485_v5  ;;  %v7185_v0 = vpop.f32.mrb[145].mxu1 }
0x1320   :  { %v4488_v58 = vpop.f32.mrb[146].mxu1 }
0x1321   :  { %v8654_v39 = vadd.f32 %v4627_v4, %v4001_v6  ;;  %v7186_v63 = vpop.f32.mrb[147].mxu1 }
0x1322   :  { %v4528_v19 = vpop.f32.mrb[156].mxu0 }
0x1323   :  { %v4628_v1 = vmul.f32 %v4624_v42, %v4528_v19  ;;  %v7191_v11 = vpop.f32.mrb[157].mxu0 }
0x1324   :  { %v4531_v23 = vpop.f32.mrb[158].mxu0 }
0x1325   :  { %v8657_v47 = vadd.f32 %v4628_v1, %v4002_v13  ;;  %v7192_v59 = vpop.f32.mrb[159].mxu0 }
0x1326   :  { %v4571_v16 = vpop.f32.mrb[148].mxu1 }
0x1327   :  { %v4629_v52 = vmul.f32 %v4624_v42, %v4571_v16  ;;  %v7197_v22 = vpop.f32.mrb[149].mxu1 }
0x1328   :  { %v4574_v53 = vpop.f32.mrb[150].mxu1 }
0x1329   :  { %v8660_v45 = vadd.f32 %v4629_v52, %v4003_v17  ;;  %v7198_v8 = vpop.f32.mrb[151].mxu1 }
0x132a   :  { %v4614_v37 = vpop.f32.mrb[160].mxu0 }
0x132b   :  { %v4630_v31 = vmul.f32 %v4624_v42, %v4614_v37  ;;  %v7203_v2 = vpop.f32.mrb[161].mxu0 }
0x132c   :  { %v4617_v30 = vpop.f32.mrb[162].mxu0 }
0x132d   :  { %v8663_v3 = vadd.f32 %v4630_v31, %v4004_v26  ;;  %v7204_v35 = vpop.f32.mrb[163].mxu0 }
0x132f   :  { %v4688_v48 = vpop.f32.mrb[152].mxu1 }
0x1330   :  { %v4909_v9 = vmul.f32 0.35355338, %v4688_v48  ;;  %v7209_v36 = vpop.f32.mrb[153].mxu1 }
0x1331   :  { %v4691_v5 = vpop.f32.mrb[154].mxu1 }
0x1332   :  { %v7210_v50 = vpop.f32.mrb[155].mxu1  ;;  %v4915_v6 = vsel %vm652_vm2, %v4909_v9, -inf }
0x1333   :  { %4916 = vmax.xlane.f32.xlu0 %v4915_v6  ;;  %v4731_v4 = vpop.f32.mrb[164].mxu0 }
0x1334   :  { %v4910_v0 = vmul.f32 0.35355338, %v4731_v4  ;;  %v7215_v58 = vpop.f32.mrb[165].mxu0 }
0x1335   :  { %v4734_v63 = vpop.f32.mrb[166].mxu0 }
0x1336   :  { %v7216_v19 = vpop.f32.mrb[167].mxu0  ;;  %v4918_v51 = vsel %vm652_vm2, %v4910_v0, -inf }
0x1337   :  { %v4774_v46 = vpop.f32.mrb[156].mxu1  ;;  %4919 = vmax.xlane.f32.xlu0 %v4918_v51 }
0x1338   :  { %v4911_v42 = vmul.f32 0.35355338, %v4774_v46  ;;  %v7221_v13 = vpop.f32.mrb[157].mxu1 }
0x1339   :  { %v4777_v1 = vpop.f32.mrb[158].mxu1 }
0x133a   :  { %v7222_v11 = vpop.f32.mrb[159].mxu1  ;;  %v4921_v23 = vsel %vm652_vm2, %v4911_v42, -inf }
0x133b   :  { %4922 = vmax.xlane.f32.xlu1 %v4921_v23  ;;  %v4817_v59 = vpop.f32.mrb[168].mxu0 }
0x133c   :  { %v4912_v16 = vmul.f32 0.35355338, %v4817_v59  ;;  %v7227_v17 = vpop.f32.mrb[169].mxu0 }
0x133d   :  { %v4820_v52 = vpop.f32.mrb[170].mxu0 }
0x133e   :  { %v7228_v22 = vpop.f32.mrb[171].mxu0  ;;  %v4924_v53 = vsel %vm652_vm2, %v4912_v16, -inf }
0x133f   :  { %v4860_v8 = vpop.f32.mrb[160].mxu1  ;;  %4925 = vmax.xlane.f32.xlu0 %v4924_v53 }
0x1340   :  { %v4913_v37 = vmul.f32 0.35355338, %v4860_v8  ;;  %v7233_v26 = vpop.f32.mrb[161].mxu1 }
0x1341   :  { %v4863_v31 = vpop.f32.mrb[162].mxu1 }
0x1342   :  { %v7234_v2 = vpop.f32.mrb[163].mxu1  ;;  %v4927_v30 = vsel %vm652_vm2, %v4913_v37, -inf }
0x1343   :  { %4928 = vmax.xlane.f32.xlu1 %v4927_v30  ;;  %v4903_v35 = vpop.f32.mrb[172].mxu0 }
0x1344   :  { %v4914_v48 = vmul.f32 0.35355338, %v4903_v35  ;;  %v7239_v36 = vpop.f32.mrb[173].mxu0 }
0x1345   :  { %v4906_v5 = vpop.f32.mrb[174].mxu0 }
0x1346   :  { %v7240_v50 = vpop.f32.mrb[175].mxu0  ;;  %v4930_v6 = vsel %vm652_vm2, %v4914_v48, -inf }
0x1347   :  { %4931 = vmax.xlane.f32.xlu0 %v4930_v6 }
0x13c0   :  { %v4917_v4 = vpop.xlane.xlu0 %4916 }
0x13c1   :  { %v4933_v58 = vsub.f32 %v4909_v9, %v4917_v4 }
0x13c3   :  { %v4939_v63 = vmul.f32 1.442695, %v4933_v58 }
0x13c4   :  { %v4920_v19 = vpop.xlane.xlu0 %4919 }
0x13c5   :  { %7563 = vpow2.f32 %v4939_v63  ;;  %v4934_v51 = vsub.f32 %v4910_v0, %v4920_v19 }
0x13c7   :  { %v4941_v46 = vmul.f32 1.442695, %v4934_v51 }
0x13c8   :  { %v4923_v13 = vpop.xlane.xlu1 %4922 }
0x13c9   :  { %7565 = vpow2.f32 %v4941_v46  ;;  %v4935_v1 = vsub.f32 %v4911_v42, %v4923_v13 }
0x13cb   :  { %v4943_v11 = vmul.f32 1.442695, %v4935_v1 }
0x13cc   :  { %v4926_v23 = vpop.xlane.xlu0 %4925 }
0x13cd   :  { %7567 = vpow2.f32 %v4943_v11  ;;  %v4936_v59 = vsub.f32 %v4912_v16, %v4926_v23 }
0x13cf   :  { %v7564_v17 = vpop.eup %7563  ;;  %v4945_v52 = vmul.f32 1.442695, %v4936_v59 }
0x13d0   :  { %v4929_v22 = vpop.xlane.xlu1 %4928  ;;  %v4951_v53 = vsel %vm652_vm2, %v7564_v17, 0.0 }
0x13d1   :  { %7569 = vpow2.f32 %v4945_v52  ;;  %v4937_v8 = vsub.f32 %v4913_v37, %v4929_v22  ;;  %4952 = vadd.xlane.f32.xlu1 %v4951_v53 }
0x13d3   :  { %v7566_v9 = vpop.eup %7565  ;;  %v4947_v26 = vmul.f32 1.442695, %v4937_v8 }
0x13d4   :  { %v4932_v31 = vpop.xlane.xlu0 %4931  ;;  %v4954_v0 = vsel %vm652_vm2, %v7566_v9, 0.0 }
0x13d5   :  { %7571 = vpow2.f32 %v4947_v26  ;;  %v4938_v2 = vsub.f32 %v4914_v48, %v4932_v31  ;;  %4955 = vadd.xlane.f32.xlu0 %v4954_v0  ;;  %v8695_v26 = vld [vmem:[%s8900_s16] sm:$0x2] }
0x13d7   :  { %v7568_v42 = vpop.eup %7567  ;;  %v4949_v30 = vmul.f32 1.442695, %v4938_v2  ;;  %v5264_v2 = vshrl.u32 %v8695_v26, 16 }
0x13d8   :  { %v4957_v16 = vsel %vm652_vm2, %v7568_v42, 0.0 }
0x13d9   :  { %7573 = vpow2.f32 %v4949_v30  ;;  %4958 = vadd.xlane.f32.xlu1 %v4957_v16 }
0x13db   :  { %v7570_v35 = vpop.eup %7569 }
0x13dc   :  { %v4960_v36 = vsel %vm652_vm2, %v7570_v35, 0.0 }
0x13dd   :  { %4961 = vadd.xlane.f32.xlu0 %v4960_v36 }
0x13df   :  { %v7572_v37 = vpop.eup %7571 }
0x13e0   :  { %v4963_v5 = vsel %vm652_vm2, %v7572_v37, 0.0 }
0x13e1   :  { %4964 = vadd.xlane.f32.xlu1 %v4963_v5 }
0x13e3   :  { %v7574_v50 = vpop.eup %7573 }
0x13e4   :  { %v4966_v6 = vsel %vm652_vm2, %v7574_v50, 0.0 }
0x13e5   :  { %4967 = vadd.xlane.f32.xlu0 %v4966_v6 }
0x145e   :  { %v4953_v48 = vpop.xlane.xlu1 %4952 }
0x145f   :  { %7575 = vrcp.f32 %v4953_v48 }
0x1462   :  { %v4956_v4 = vpop.xlane.xlu0 %4955 }
0x1463   :  { %7577 = vrcp.f32 %v4956_v4 }
0x1466   :  { %v4959_v58 = vpop.xlane.xlu1 %4958 }
0x1467   :  { %7579 = vrcp.f32 %v4959_v58 }
0x1469   :  { %v7576_v63 = vpop.eup %7575 }
0x146a   :  { %v4975_v19 = vmul.f32 %v7576_v63, %v7564_v17  ;;  %v4962_v51 = vpop.xlane.xlu0 %4961 }
0x146b   :  { %7581 = vrcp.f32 %v4962_v51 }
0x146c   :  { %v4981_v46 = vpack.c.bf16 %v4975_v19, %v4975_v19 }
0x146d   :  { %v7578_v13 = vpop.eup %7577 }
0x146e   :  { %v4976_v1 = vmul.f32 %v7578_v13, %v7566_v9  ;;  %7244 = vmatmul.mubr.msk.bf16.vlgmr.msra.gmra.mrb[164].mxu1 %vm725_vm4, %v4981_v46  ;;  %v4965_v11 = vpop.xlane.xlu1 %4964 }
0x146f   :  { %7254 = vmatpush3.bf16.msra.mxu1 %v8458_v38  ;;  %7583 = vrcp.f32 %v4965_v11  ;;  %7255 = vmatprep.mubr.msk.bf16.mxu1 %vm7628_vm1, %v7627_v10 }
0x1470   :  { %v4982_v23 = vpack.c.bf16 %v4976_v1, %v4976_v1  ;;  %7265 = vmatprep.subr.bf16.mxu1 %v7627_v10 }
0x1471   :  { %v7580_v59 = vpop.eup %7579 }
0x1472   :  { %v4977_v52 = vmul.f32 %v7580_v59, %v7568_v42  ;;  %7250 = vmatmul.mubr.msk.bf16.vlgmr.msra.gmra.mrb[176].mxu0 %vm725_vm4, %v4982_v23  ;;  %v4968_v17 = vpop.xlane.xlu0 %4967 }
0x1473   :  { %7260 = vmatpush3.bf16.msra.mxu0 %v8466_v57  ;;  %7585 = vrcp.f32 %v4968_v17  ;;  %7261 = vmatprep.mubr.msk.bf16.mxu0 %vm7628_vm1, %v7627_v10 }
0x1474   :  { %v4983_v22 = vpack.c.bf16 %v4977_v52, %v4977_v52  ;;  %7271 = vmatprep.subr.bf16.mxu0 %v7627_v10 }
0x1475   :  { %v7582_v53 = vpop.eup %7581 }
0x1476   :  { %v4978_v8 = vmul.f32 %v7582_v53, %v7570_v35  ;;  %7256 = vmatmul.mubr.msk.bf16.vlgmr.msra.gmra.mrb[168].mxu1 %vm725_vm4, %v4983_v22  ;;  %v5265_v35 = vpack.i.b16 %v5264_v2, %v5264_v2 }
0x1477   :  { %7266 = vmatpush3.bf16.msra.mxu1 %v8476_v60  ;;  %7267 = vmatprep.mubr.msk.bf16.mxu1 %vm7628_vm1, %v7627_v10 }
0x1478   :  { %v4984_v9 = vpack.c.bf16 %v4978_v8, %v4978_v8  ;;  %7277 = vmatprep.subr.bf16.mxu1 %v7627_v10 }
0x1479   :  { %v7584_v31 = vpop.eup %7583 }
0x147a   :  { %v4979_v0 = vmul.f32 %v7584_v31, %v7572_v37  ;;  %7262 = vmatmul.mubr.msk.bf16.vlgmr.msra.gmra.mrb[180].mxu0 %vm725_vm4, %v4984_v9  ;;  %v5270_v37 = vrot.slane %v5265_v35, %v8031_v27 }
0x147b   :  { %7272 = vmatpush3.bf16.msra.mxu0 %v8484_v61  ;;  %7273 = vmatprep.mubr.msk.bf16.mxu0 %vm7628_vm1, %v7627_v10 }
0x147c   :  { %v4985_v42 = vpack.c.bf16 %v4979_v0, %v4979_v0  ;;  %7283 = vmatprep.subr.bf16.mxu0 %v7627_v10  ;;  %v5271_v5 = vmul.bf16 %v5270_v37, %v8349_v56  ;;  %v5273_v27 = vmul.bf16 %v5270_v37, %v8359_v33  ;;  %v5275_v56 = vmul.bf16 %v5270_v37, %v8385_v41 }
0x147d   :  { %v7586_v30 = vpop.eup %7585  ;;  %v5245_v33 = vunpack.c.l.bf16 %v8592_v24 }
0x147e   :  { %v4980_v16 = vmul.f32 %v7586_v30, %v7574_v50  ;;  %7268 = vmatmul.mubr.msk.bf16.vlgmr.msra.gmra.mrb[172].mxu1 %vm725_vm4, %v4985_v42 }
0x147f   :  { %7279 = vmatprep.mubr.msk.bf16.mxu1 %vm7628_vm1, %v7627_v10 }
0x1480   :  { %7278 = vmatpush3.bf16.xpose.msra.mxu1 %v8329_v49  ;;  %v4986_v36 = vpack.c.bf16 %v4980_v16, %v4980_v16  ;;  %v5272_v49 = vmul.bf16 %v5270_v37, %v8354_v62  ;;  %v5276_v62 = vmul.bf16 %v5270_v37, %v8405_v28 }
0x1481   :  { %7289 = vmatprep.subr.bf16.mxu1 %v7627_v10 }
0x1482   :  { %7274 = vmatmul.mubr.msk.bf16.vlgmr.msra.gmra.mrb[184].mxu0 %vm725_vm4, %v4986_v36 }
0x1483   :  { %7285 = vmatprep.mubr.msk.bf16.mxu0 %vm7628_vm1, %v7627_v10 }
0x1484   :  { %7284 = vmatpush3.bf16.xpose.msra.mxu0 %v8333_v21  ;;  %v5274_v21 = vmul.bf16 %v5270_v37, %v8380_v32 }
0x1485   :  { %7295 = vmatprep.subr.bf16.mxu0 %v7627_v10 }
0x1487   :  { %7280 = vmatmul.mubr.msk.bf16.vlgmr.msra.gmra.mrb[176].mxu1 %vm94_vm0, %v5271_v5 }
0x1488   :  { %7290 = vmatpush3.bf16.xpose.msra.mxu1 %v8363_v55  ;;  %7291 = vmatprep.mubr.msk.bf16.mxu1 %vm7628_vm1, %v7627_v10  ;;  %v5249_v55 = vrot.slane %v5245_v33, %v2257_v54 }
0x1489   :  { %7301 = vmatprep.subr.bf16.mxu1 %v7627_v10 }
0x148b   :  { %7286 = vmatmul.mubr.msk.bf16.vlgmr.msra.gmra.mrb[188].mxu0 %vm94_vm0, %v5272_v49 }
0x148c   :  { %7296 = vmatpush3.bf16.xpose.msra.mxu0 %v8371_v29  ;;  %7297 = vmatprep.mubr.msk.bf16.mxu0 %vm7628_vm1, %v7627_v10 }
0x148d   :  { %7307 = vmatprep.subr.bf16.mxu0 %v7627_v10 }
0x148f   :  { %7292 = vmatmul.mubr.msk.bf16.vlgmr.msra.gmra.mrb[180].mxu1 %vm94_vm0, %v5273_v27 }
0x1490   :  { %7302 = vmatpush3.bf16.xpose.msra.mxu1 %v8389_v7  ;;  %7303 = vmatprep.mubr.msk.bf16.mxu1 %vm7628_vm1, %v7627_v10 }
0x1491   :  { %7313 = vmatprep.subr.bf16.mxu1 %v7627_v10 }
0x1493   :  { %7298 = vmatmul.mubr.msk.bf16.vlgmr.msra.gmra.mrb[192].mxu0 %vm94_vm0, %v5274_v21 }
0x1494   :  { %7308 = vmatpush3.bf16.xpose.msra.mxu0 %v8397_v43  ;;  %7309 = vmatprep.mubr.msk.bf16.mxu0 %vm7628_vm1, %v7627_v10 }
0x1495   :  { %7319 = vmatprep.subr.bf16.mxu0 %v7627_v10 }
0x1497   :  { %7304 = vmatmul.mubr.msk.bf16.vlgmr.msra.gmra.mrb[184].mxu1 %vm94_vm0, %v5275_v56 }
0x1498   :  { %7314 = vmatpush3.bf16.msra.mxu1 %v8448_v18  ;;  %7315 = vmatprep.mubr.msk.bf16.mxu1 %vm7628_vm1, %v7627_v10 }
0x1499   :  { %7325 = vmatprep.subr.bf16.mxu1 %v7627_v10 }
0x149b   :  { %7310 = vmatmul.mubr.msk.bf16.vlgmr.msra.gmra.mrb[196].mxu0 %vm94_vm0, %v5276_v62 }
0x149c   :  { %7320 = vmatpush3.bf16.msra.mxu0 %v8452_v12  ;;  %7321 = vmatprep.mubr.msk.bf16.mxu0 %vm7628_vm1, %v7627_v10 }
0x149d   :  { %7331 = vmatprep.subr.bf16.mxu0 %v7627_v10 }
0x1541   :  { %v5024_v29 = vpop.f32.mrb[164].mxu1 }
0x1542   :  { %v5250_v32 = vmul.f32 %v5249_v55, %v5024_v29  ;;  %v7245_v41 = vpop.f32.mrb[165].mxu1 }
0x1543   :  { %v5027_v7 = vpop.f32.mrb[166].mxu1 }
0x1544   :  { %v8754_v43 = vadd.f32 %v5250_v32, %v8648_v34  ;;  %v7246_v28 = vpop.f32.mrb[167].mxu1 }
0x1545   :  { %v5067_v18 = vpop.f32.mrb[176].mxu0 }
0x1546   :  { %v5251_v12 = vmul.f32 %v5249_v55, %v5067_v18  ;;  %v7251_v50 = vpop.f32.mrb[177].mxu0 }
0x1547   :  { %v5070_v6 = vpop.f32.mrb[178].mxu0 }
0x1548   :  { %v8757_v48 = vadd.f32 %v5251_v12, %v8651_v20  ;;  %v7252_v4 = vpop.f32.mrb[179].mxu0 }
0x1549   :  { %v5110_v24 = vpop.f32.mrb[168].mxu1 }
0x154a   :  { %v5252_v58 = vmul.f32 %v5249_v55, %v5110_v24  ;;  %v7257_v63 = vpop.f32.mrb[169].mxu1 }
0x154b   :  { %v5113_v54 = vpop.f32.mrb[170].mxu1 }
0x154c   :  { %v8760_v19 = vadd.f32 %v5252_v58, %v8654_v39  ;;  %v7258_v51 = vpop.f32.mrb[171].mxu1 }
0x154d   :  { %v5153_v46 = vpop.f32.mrb[180].mxu0 }
0x154e   :  { %v5253_v34 = vmul.f32 %v5249_v55, %v5153_v46  ;;  %v7263_v13 = vpop.f32.mrb[181].mxu0 }
0x154f   :  { %v5156_v1 = vpop.f32.mrb[182].mxu0 }
0x1550   :  { %v8763_v11 = vadd.f32 %v5253_v34, %v8657_v47  ;;  %v7264_v23 = vpop.f32.mrb[183].mxu0 }
0x1551   :  { %v5196_v59 = vpop.f32.mrb[172].mxu1 }
0x1552   :  { %v5254_v20 = vmul.f32 %v5249_v55, %v5196_v59  ;;  %v7269_v52 = vpop.f32.mrb[173].mxu1 }
0x1553   :  { %v5199_v17 = vpop.f32.mrb[174].mxu1 }
0x1554   :  { %v8766_v22 = vadd.f32 %v5254_v20, %v8660_v45  ;;  %v7270_v53 = vpop.f32.mrb[175].mxu1 }
0x1555   :  { %v5239_v8 = vpop.f32.mrb[184].mxu0 }
0x1556   :  { %v5255_v39 = vmul.f32 %v5249_v55, %v5239_v8  ;;  %v7275_v9 = vpop.f32.mrb[185].mxu0 }
0x1557   :  { %v5242_v31 = vpop.f32.mrb[186].mxu0 }
0x1558   :  { %v8769_v0 = vadd.f32 %v5255_v39, %v8663_v3  ;;  %v7276_v2 = vpop.f32.mrb[187].mxu0 }
0x155a   :  { %v5314_v42 = vpop.f32.mrb[176].mxu1 }
0x155b   :  { %v5535_v47 = vmul.f32 0.35355338, %v5314_v42  ;;  %v7281_v30 = vpop.f32.mrb[177].mxu1 }
0x155c   :  { %v5317_v16 = vpop.f32.mrb[178].mxu1 }
0x155d   :  { %v7282_v35 = vpop.f32.mrb[179].mxu1  ;;  %v5541_v36 = vsel %vm652_vm2, %v5535_v47, -inf }
0x155e   :  { %5542 = vmax.xlane.f32.xlu1 %v5541_v36  ;;  %v5357_v37 = vpop.f32.mrb[188].mxu0 }
0x155f   :  { %v5536_v45 = vmul.f32 0.35355338, %v5357_v37  ;;  %v7287_v5 = vpop.f32.mrb[189].mxu0 }
0x1560   :  { %v5360_v49 = vpop.f32.mrb[190].mxu0 }
0x1561   :  { %v7288_v27 = vpop.f32.mrb[191].mxu0  ;;  %v5544_v21 = vsel %vm652_vm2, %v5536_v45, -inf }
0x1562   :  { %v5400_v56 = vpop.f32.mrb[180].mxu1  ;;  %5545 = vmax.xlane.f32.xlu0 %v5544_v21 }
0x1563   :  { %v5537_v3 = vmul.f32 0.35355338, %v5400_v56  ;;  %v7293_v62 = vpop.f32.mrb[181].mxu1 }
0x1564   :  { %v5403_v33 = vpop.f32.mrb[182].mxu1 }
0x1565   :  { %v7294_v55 = vpop.f32.mrb[183].mxu1  ;;  %v5547_v29 = vsel %vm652_vm2, %v5537_v3, -inf }
0x1566   :  { %5548 = vmax.xlane.f32.xlu1 %v5547_v29  ;;  %v5443_v32 = vpop.f32.mrb[192].mxu0 }
0x1567   :  { %v5538_v41 = vmul.f32 0.35355338, %v5443_v32  ;;  %v7299_v7 = vpop.f32.mrb[193].mxu0 }
0x1568   :  { %v5446_v28 = vpop.f32.mrb[194].mxu0 }
0x1569   :  { %v7300_v18 = vpop.f32.mrb[195].mxu0  ;;  %v5550_v12 = vsel %vm652_vm2, %v5538_v41, -inf }
0x156a   :  { %v5486_v50 = vpop.f32.mrb[184].mxu1  ;;  %5551 = vmax.xlane.f32.xlu0 %v5550_v12 }
0x156b   :  { %v5539_v6 = vmul.f32 0.35355338, %v5486_v50  ;;  %v7305_v4 = vpop.f32.mrb[185].mxu1 }
0x156c   :  { %v5489_v24 = vpop.f32.mrb[186].mxu1 }
0x156d   :  { %v7306_v58 = vpop.f32.mrb[187].mxu1  ;;  %v5553_v63 = vsel %vm652_vm2, %v5539_v6, -inf }
0x156e   :  { %5554 = vmax.xlane.f32.xlu1 %v5553_v63  ;;  %v5529_v54 = vpop.f32.mrb[196].mxu0 }
0x156f   :  { %v5540_v51 = vmul.f32 0.35355338, %v5529_v54  ;;  %v7311_v46 = vpop.f32.mrb[197].mxu0 }
0x1570   :  { %v5532_v34 = vpop.f32.mrb[198].mxu0 }
0x1571   :  { %v7312_v13 = vpop.f32.mrb[199].mxu0  ;;  %v5556_v1 = vsel %vm652_vm2, %v5540_v51, -inf }
0x1572   :  { %5557 = vmax.xlane.f32.xlu0 %v5556_v1 }
0x15eb   :  { %v5543_v23 = vpop.xlane.xlu1 %5542 }
0x15ec   :  { %v5559_v59 = vsub.f32 %v5535_v47, %v5543_v23 }
0x15ee   :  { %v5565_v20 = vmul.f32 1.442695, %v5559_v59 }
0x15ef   :  { %v5546_v52 = vpop.xlane.xlu0 %5545 }
0x15f0   :  { %7587 = vpow2.f32 %v5565_v20  ;;  %v5560_v17 = vsub.f32 %v5536_v45, %v5546_v52 }
0x15f2   :  { %v5567_v53 = vmul.f32 1.442695, %v5560_v17 }
0x15f3   :  { %v5549_v8 = vpop.xlane.xlu1 %5548 }
0x15f4   :  { %7589 = vpow2.f32 %v5567_v53  ;;  %v5561_v39 = vsub.f32 %v5537_v3, %v5549_v8 }
0x15f6   :  { %v5569_v9 = vmul.f32 1.442695, %v5561_v39 }
0x15f7   :  { %v5552_v31 = vpop.xlane.xlu0 %5551 }
0x15f8   :  { %7591 = vpow2.f32 %v5569_v9  ;;  %v5562_v2 = vsub.f32 %v5538_v41, %v5552_v31 }
0x15fa   :  { %v7588_v42 = vpop.eup %7587  ;;  %v5571_v30 = vmul.f32 1.442695, %v5562_v2 }
0x15fb   :  { %v5555_v16 = vpop.xlane.xlu1 %5554  ;;  %v5577_v35 = vsel %vm652_vm2, %v7588_v42, 0.0 }
0x15fc   :  { %7593 = vpow2.f32 %v5571_v30  ;;  %v5563_v36 = vsub.f32 %v5539_v6, %v5555_v16  ;;  %5578 = vadd.xlane.f32.xlu1 %v5577_v35 }
0x15fe   :  { %v7590_v47 = vpop.eup %7589  ;;  %v5573_v37 = vmul.f32 1.442695, %v5563_v36 }
0x15ff   :  { %v5558_v5 = vpop.xlane.xlu0 %5557  ;;  %v5580_v45 = vsel %vm652_vm2, %v7590_v47, 0.0 }
0x1600   :  { %7595 = vpow2.f32 %v5573_v37  ;;  %v5564_v49 = vsub.f32 %v5540_v51, %v5558_v5  ;;  %5581 = vadd.xlane.f32.xlu0 %v5580_v45 }
0x1602   :  { %v7592_v27 = vpop.eup %7591  ;;  %v5575_v21 = vmul.f32 1.442695, %v5564_v49 }
0x1603   :  { %v5583_v56 = vsel %vm652_vm2, %v7592_v27, 0.0 }
0x1604   :  { %7597 = vpow2.f32 %v5575_v21  ;;  %5584 = vadd.xlane.f32.xlu1 %v5583_v56 }
0x1606   :  { %v7594_v3 = vpop.eup %7593 }
0x1607   :  { %v5586_v62 = vsel %vm652_vm2, %v7594_v3, 0.0 }
0x1608   :  { %5587 = vadd.xlane.f32.xlu0 %v5586_v62 }
0x160a   :  { %v7596_v33 = vpop.eup %7595 }
0x160b   :  { %v5589_v55 = vsel %vm652_vm2, %v7596_v33, 0.0 }
0x160c   :  { %5590 = vadd.xlane.f32.xlu1 %v5589_v55 }
0x160e   :  { %v7598_v29 = vpop.eup %7597 }
0x160f   :  { %v5592_v32 = vsel %vm652_vm2, %v7598_v29, 0.0 }
0x1610   :  { %5593 = vadd.xlane.f32.xlu0 %v5592_v32 }
0x1689   :  { %v5579_v41 = vpop.xlane.xlu1 %5578 }
0x168a   :  { %7599 = vrcp.f32 %v5579_v41 }
0x168d   :  { %v5582_v7 = vpop.xlane.xlu0 %5581 }
0x168e   :  { %7601 = vrcp.f32 %v5582_v7 }
0x1691   :  { %v5585_v28 = vpop.xlane.xlu1 %5584 }
0x1692   :  { %7603 = vrcp.f32 %v5585_v28 }
0x1694   :  { %v7600_v18 = vpop.eup %7599 }
0x1695   :  { %v5601_v12 = vmul.f32 %v7600_v18, %v7588_v42  ;;  %v5588_v50 = vpop.xlane.xlu0 %5587 }
0x1696   :  { %7605 = vrcp.f32 %v5588_v50 }
0x1697   :  { %v5607_v6 = vpack.c.bf16 %v5601_v12, %v5601_v12 }
0x1698   :  { %v7602_v4 = vpop.eup %7601 }
0x1699   :  { %v5602_v24 = vmul.f32 %v7602_v4, %v7590_v47  ;;  %7316 = vmatmul.mubr.msk.bf16.vlgmr.msra.gmra.mrb[188].mxu1 %vm725_vm4, %v5607_v6  ;;  %v5591_v58 = vpop.xlane.xlu1 %5590 }
0x169a   :  { %7326 = vmatpush3.bf16.msra.mxu1 %v8458_v38  ;;  %7607 = vrcp.f32 %v5591_v58  ;;  %7327 = vmatprep.mubr.msk.bf16.mxu1 %vm7628_vm1, %v7627_v10 }
0x169b   :  { %v5608_v63 = vpack.c.bf16 %v5602_v24, %v5602_v24  ;;  %7337 = vmatprep.subr.bf16.mxu1 %v7627_v10 }
0x169c   :  { %v7604_v54 = vpop.eup %7603 }
0x169d   :  { %v5603_v51 = vmul.f32 %v7604_v54, %v7592_v27  ;;  %7322 = vmatmul.mubr.msk.bf16.vlgmr.msra.gmra.mrb[200].mxu0 %vm725_vm4, %v5608_v63  ;;  %v5594_v46 = vpop.xlane.xlu0 %5593  ;;  %v6450_v63 = vld [vmem:[%s8909_s9] ss:$0 sm:$0xff] }
0x169e   :  { %7332 = vmatpush3.bf16.msra.mxu0 %v8466_v57  ;;  %7609 = vrcp.f32 %v5594_v46  ;;  %7333 = vmatprep.mubr.msk.bf16.mxu0 %vm7628_vm1, %v7627_v10 }
0x169f   :  { %v5609_v34 = vpack.c.bf16 %v5603_v51, %v5603_v51  ;;  %7343 = vmatprep.subr.bf16.mxu0 %v7627_v10 }
0x16a0   :  { %v7606_v38 = vpop.eup %7605 }
0x16a1   :  { %v5604_v13 = vmul.f32 %v7606_v38, %v7594_v3  ;;  %7328 = vmatmul.mubr.msk.bf16.vlgmr.msra.gmra.mrb[192].mxu1 %vm725_vm4, %v5609_v34 }
0x16a2   :  { %7338 = vmatpush3.bf16.msra.mxu1 %v8476_v60  ;;  %7339 = vmatprep.mubr.msk.bf16.mxu1 %vm7628_vm1, %v7627_v10  ;;  %v7400_v60 = vld [vmem:[%s8908_s8] sm:$0xff]  }
0x16a3   :  { %v5610_v1 = vpack.c.bf16 %v5604_v13, %v5604_v13  ;;  %7349 = vmatprep.subr.bf16.mxu1 %v7400_v60 }
0x16a4   :  { %v7608_v23 = vpop.eup %7607 }
0x16a5   :  { %v5605_v59 = vmul.f32 %v7608_v23, %v7596_v33  ;;  %7334 = vmatmul.mubr.msk.bf16.vlgmr.msra.gmra.mrb[204].mxu0 %vm725_vm4, %v5610_v1 }
0x16a6   :  { %7344 = vmatpush3.bf16.msra.mxu0 %v8484_v61  ;;  %7345 = vmatprep.mubr.msk.bf16.mxu0 %vm7628_vm1, %v7627_v10  ;;  %v7401_v61 = vld [vmem:[%s8908_s8 + $0x8] sm:$0xff]   ;;  %v5871_v10 = vunpack.c.l.bf16 %v8695_v26 }
0x16a7   :  { %v5611_v57 = vpack.c.bf16 %v5605_v59, %v5605_v59 }
0x16a8   :  { %v7610_v20 = vpop.eup %7609  ;;  %v5875_v53 = vrot.slane %v5871_v10, %v2883_v40 }
0x16a9   :  { %v5606_v52 = vmul.f32 %v7610_v20, %v7598_v29  ;;  %7340 = vmatmul.mubr.msk.bf16.vlgmr.msra.gmra.mrb[196].mxu1 %vm725_vm4, %v5611_v57 }
0x16aa   :  { %7350 = vmatpush3.bf16.msra.mxu1 %v7400_v60 }
0x16ab   :  { %v5612_v17 = vpack.c.bf16 %v5606_v52, %v5606_v52  ;;  %7351 = vmatprep.subr.bf16.mxu1 %v7401_v61 }
0x16ad   :  { %7346 = vmatmul.mubr.msk.bf16.vlgmr.msra.gmra.mrb[208].mxu0 %vm725_vm4, %v5612_v17 }
0x16ae   :  { %7352 = vmatpush3.bf16.msra.mxu1 %v7401_v61 }
0x176c   :  { %v5650_v8 = vpop.f32.mrb[188].mxu1 }
0x176d   :  { %v5876_v39 = vmul.f32 %v5875_v53, %v5650_v8  ;;  %v7317_v9 = vpop.f32.mrb[189].mxu1 }
0x176e   :  { %v5653_v31 = vpop.f32.mrb[190].mxu1 }
0x176f   :  { %v5882_v2 = vadd.f32 %v5876_v39, %v8754_v43  ;;  %v7318_v42 = vpop.f32.mrb[191].mxu1 }
0x1770   :  { %v5693_v30 = vpop.f32.mrb[200].mxu0 }
0x1771   :  { %v5877_v16 = vmul.f32 %v5875_v53, %v5693_v30  ;;  %v7323_v35 = vpop.f32.mrb[201].mxu0  ;;  %v7402_v30 = vld [vmem:[%s8910_s10] sm:$0xff]  }
0x1772   :  { %v5696_v36 = vpop.f32.mrb[202].mxu0  ;;  %7357 = vmatprep.subr.bf16.mxu0 %v7402_v30  ;;  %v7404_v35 = vld [vmem:[%s8911_s12] sm:$0xff]  }
0x1773   :  { %v5883_v47 = vadd.f32 %v5877_v16, %v8757_v48  ;;  %v7324_v37 = vpop.f32.mrb[203].mxu0  ;;  %v7403_v16 = vld [vmem:[%s8910_s10 + $0x8] sm:$0xff]   ;;  %7358 = vmatpush3.bf16.msra.mxu0 %v7402_v30  ;;  %7365 = vmatprep.subr.bf16.mxu1 %v7404_v35 }
0x1774   :  { %v5736_v5 = vpop.f32.mrb[192].mxu1  ;;  %7359 = vmatprep.subr.bf16.mxu0 %v7403_v16  ;;  %v7405_v36 = vld [vmem:[%s8911_s12 + $0x8] sm:$0xff]   ;;  %v7407_v37 = vld [vmem:[%s8911_s12 + $0x18] sm:$0xff]  }
0x1775   :  { %v5894_v45 = vcombine.low %v5882_v2, %v5883_v47  ;;  %v5878_v26 = vmul.f32 %v5875_v53, %v5736_v5  ;;  %v7329_v49 = vpop.f32.mrb[193].mxu1  ;;  %v7406_v47 = vld [vmem:[%s8911_s12 + $0x10] sm:$0xff]   ;;  %v7408_v5 = vld [vmem:[%s8911_s12 + $0x20] sm:$0xff]  }
0x1776   :  { %v5739_v25 = vpop.f32.mrb[194].mxu1 }
0x1777   :  { %v5884_v40 = vadd.f32 %v5878_v26, %v8760_v19  ;;  %v7330_v27 = vpop.f32.mrb[195].mxu1  ;;  %7360 = vmatpush3.bf16.msra.mxu0 %v7403_v16 }
0x1778   :  { %v5779_v21 = vpop.f32.mrb[204].mxu0 }
0x1779   :  { %v5879_v56 = vmul.f32 %v5875_v53, %v5779_v21  ;;  %v7335_v3 = vpop.f32.mrb[205].mxu0 }
0x177a   :  { %v5782_v43 = vpop.f32.mrb[206].mxu0 }
0x177b   :  { %v5885_v62 = vadd.f32 %v5879_v56, %v8763_v11  ;;  %v7336_v33 = vpop.f32.mrb[207].mxu0 }
0x177c   :  { %v5822_v55 = vpop.f32.mrb[196].mxu1  ;;  %v6455_v33 = vld [vmem:[%s8906_s14 + $0x1] ss:$0 sm:$0xff] }
0x177d   :  { %v5895_v29 = vcombine.low %v5884_v40, %v5885_v62  ;;  %v5880_v32 = vmul.f32 %v5875_v53, %v5822_v55  ;;  %v7341_v48 = vpop.f32.mrb[197].mxu1 }
0x177e   :  { %v5825_v41 = vpop.f32.mrb[198].mxu1 }
0x177f   :  { %v5900_v7 = vpack.c.bf16 %v5895_v29, %v5894_v45  ;;  %v5886_v28 = vadd.f32 %v5880_v32, %v8766_v22  ;;  %v7342_v18 = vpop.f32.mrb[199].mxu1  ;;  %v7409_v45 = vld [vmem:[%s8911_s12 + $0x28] sm:$0xff]  }
0x1780   :  { %v5865_v12 = vpop.f32.mrb[208].mxu0 }
0x1781   :  { %v5881_v50 = vmul.f32 %v5875_v53, %v5865_v12  ;;  %v7347_v19 = vpop.f32.mrb[209].mxu0  ;;  %7353 = vmatprep.mubr.msk.bf16.mxu1 %vm94_vm0, %v5900_v7  ;;  %v6456_v7 = vld [vmem:[%s8907_s15 + $0x1] ss:$0 sm:$0xff] }
0x1782   :  { %v5868_v6 = vpop.f32.mrb[210].mxu0 }
0x1783   :  { %v5887_v4 = vadd.f32 %v5881_v50, %v8769_v0  ;;  %v7348_v24 = vpop.f32.mrb[211].mxu0 }
0x1785   :  { %v5896_v11 = vcombine.low %v5886_v28, %v5887_v4 }
0x1787   :  { %v5901_v58 = vpack.c.bf16 %v5896_v11, %v5896_v11  ;;  %v7410_v11 = vld [vmem:[%s8911_s12 + $0x30] sm:$0xff]  }
0x1789   :  { %7354 = vmatmul.mubr.msk.bf16.vlgmr.msra.gmra.mrb[200].mxu1 %vm94_vm0, %v5901_v58  ;;  %v7411_v58 = vld [vmem:[%s8911_s12 + $0x38] sm:$0xff]  }
0x178a   :  { %7366 = vmatpush3.bf16.msra.mxu1 %v7404_v35 }
0x178b   :  { %7367 = vmatprep.subr.bf16.mxu1 %v7405_v36 }
0x178e   :  { %7368 = vmatpush3.bf16.msra.mxu1 %v7405_v36 }
0x178f   :  { %7369 = vmatprep.subr.bf16.mxu1 %v7406_v47 }
0x1792   :  { %7370 = vmatpush3.bf16.msra.mxu1 %v7406_v47 }
0x1793   :  { %7371 = vmatprep.subr.bf16.mxu1 %v7407_v37 }
0x1796   :  { %7372 = vmatpush3.bf16.msra.mxu1 %v7407_v37 }
0x1797   :  { %7373 = vmatprep.subr.bf16.mxu1 %v7408_v5 }
0x179a   :  { %7374 = vmatpush3.bf16.msra.mxu1 %v7408_v5 }
0x179b   :  { %7375 = vmatprep.subr.bf16.mxu1 %v7409_v45 }
0x179e   :  { %7376 = vmatpush3.bf16.msra.mxu1 %v7409_v45 }
0x179f   :  { %7377 = vmatprep.subr.bf16.mxu1 %v7410_v11 }
0x17a2   :  { %7378 = vmatpush3.bf16.msra.mxu1 %v7410_v11 }
0x17a3   :  { %7379 = vmatprep.subr.bf16.mxu1 %v7411_v58 }
0x17a6   :  { %7380 = vmatpush3.bf16.msra.mxu1 %v7411_v58 }
0x185c   :  { %v7355_v54 = vpop.f32.mrb[200].mxu1 }
0x185d   :  { %v5965_v22 = vpop.f32.mrb[201].mxu1  ;;  %v5974_v51 = vadd.f32 %v7355_v54, %v6450_v63 }
0x185e   :  { %v5966_v46 = vadd.f32 %v6450_v63, %v5965_v22  ;;  %v7356_v34 = vpop.f32.mrb[202].mxu1 }
0x185f   :  { %v5968_v38 = vpop.f32.mrb[203].mxu1  ;;  %v5981_v0 = vadd.f32 %v5974_v51, %v8310_v44 }
0x1860   :  { %v5979_v13 = vadd.f32 %v5966_v46, %v8312_v15  ;;  %v5969_v1 = vadd.f32 %v6450_v63, %v5968_v38  ;;  %v6457_v63 = vld [vmem:[%s8912_s11] ss:$0 sm:$0xff] }
0x1861   :  { %v5990_v20 = vsel %vm94_vm0, %v5981_v0, 0.0 }
0x1862   :  { %v5980_v23 = vadd.f32 %v5969_v1, %v8314_v14  ;;  %v5984_v59 = vsel %vm94_vm0, %v5979_v13, 0.0 }
0x1863   :  { %5985 = vadd.xlane.f32.xlu1 %v5984_v59 }
0x1864   :  { %v5987_v57 = vsel %vm94_vm0, %v5980_v23, 0.0 }
0x1865   :  { %5988 = vadd.xlane.f32.xlu0 %v5987_v57 }
0x1867   :  { %5991 = vadd.xlane.f32.xlu1 %v5990_v20  ;;  %v6462_v20 = vld [vmem:[%s8913_s13] ss:$0 sm:$0xff] }
0x18f0   :  { %v5986_v52 = vpop.xlane.xlu1 %5985 }
0x18f1   :  { %v5993_v17 = vmul.f32 0.03125, %v5986_v52 }
0x18f2   :  { %v5989_v60 = vpop.xlane.xlu0 %5988 }
0x18f3   :  { %v5996_v61 = vsub.f32 %v5979_v13, %v5993_v17  ;;  %v5994_v10 = vmul.f32 0.03125, %v5989_v60 }
0x18f4   :  { %v5992_v15 = vpop.xlane.xlu1 %5991 }
0x18f5   :  { %v5997_v53 = vsub.f32 %v5980_v23, %v5994_v10  ;;  %v5995_v8 = vmul.f32 0.03125, %v5992_v15  ;;  %v5999_v44 = vmul.f32 %v5996_v61, %v5996_v61 }
0x18f7   :  { %v5998_v39 = vsub.f32 %v5981_v0, %v5995_v8  ;;  %v6002_v14 = vsel %vm94_vm0, %v5999_v44, 0.0  ;;  %v6000_v9 = vmul.f32 %v5997_v53, %v5997_v53 }
0x18f8   :  { %6003 = vadd.xlane.f32.xlu0 %v6002_v14 }
0x18f9   :  { %v6005_v31 = vsel %vm94_vm0, %v6000_v9, 0.0  ;;  %v6001_v2 = vmul.f32 %v5998_v39, %v5998_v39 }
0x18fa   :  { %6006 = vadd.xlane.f32.xlu1 %v6005_v31 }
0x18fb   :  { %v6008_v42 = vsel %vm94_vm0, %v6001_v2, 0.0 }
0x18fc   :  { %6009 = vadd.xlane.f32.xlu0 %v6008_v42 }
0x1985   :  { %v6004_v26 = vpop.xlane.xlu0 %6003 }
0x1986   :  { %v6011_v49 = vmul.f32 0.03125, %v6004_v26 }
0x1987   :  { %v6007_v25 = vpop.xlane.xlu1 %6006 }
0x1988   :  { %v6014_v40 = vadd.f32 1e-05, %v6011_v49  ;;  %v6012_v27 = vmul.f32 0.03125, %v6007_v25 }
0x1989   :  { %v6010_v21 = vpop.xlane.xlu0 %6009 }
0x198a   :  { %7611 = vrsqrt.f32 %v6014_v40  ;;  %v6015_v56 = vadd.f32 1e-05, %v6012_v27  ;;  %v6013_v3 = vmul.f32 0.03125, %v6010_v21 }
0x198c   :  { %7613 = vrsqrt.f32 %v6015_v56  ;;  %v6016_v43 = vadd.f32 1e-05, %v6013_v3 }
0x198e   :  { %7615 = vrsqrt.f32 %v6016_v43 }
0x1994   :  { %v7612_v62 = vpop.eup %7611 }
0x1995   :  { %v6020_v55 = vmul.f32 %v7612_v62, %v5996_v61 }
0x1996   :  { %v7614_v29 = vpop.eup %7613 }
0x1997   :  { %v6021_v32 = vmul.f32 %v7614_v29, %v5997_v53  ;;  %v6027_v48 = vmul.f32 %v6455_v33, %v6020_v55 }
0x1998   :  { %v7616_v41 = vpop.eup %7615 }
0x1999   :  { %v6022_v28 = vmul.f32 %v7616_v41, %v5998_v39  ;;  %v6028_v18 = vmul.f32 %v6455_v33, %v6021_v32  ;;  %v6034_v12 = vadd.f32 %v6456_v7, %v6027_v48  ;;  %v6471_v41 = vld [vmem:[%s8906_s14 + $0x2] ss:$0 sm:$0xff] }
0x199b   :  { %v6035_v50 = vadd.f32 %v6456_v7, %v6028_v18  ;;  %v6029_v19 = vmul.f32 %v6455_v33, %v6022_v28  ;;  %v6472_v18 = vld [vmem:[%s8907_s15 + $0x2] ss:$0 sm:$0xff] }
0x199d   :  { %v6037_v6 = vpack.c.bf16 %v6035_v50, %v6034_v12  ;;  %v6036_v4 = vadd.f32 %v6456_v7, %v6029_v19 }
0x199f   :  { %7361 = vmatprep.mubr.msk.bf16.mxu0 %vm94_vm0, %v6037_v6  ;;  %v6038_v24 = vpack.c.bf16 %v6036_v4, %v6036_v4 }
0x19a1   :  { %7362 = vmatmul.mubr.msk.bf16.vlgmr.msra.gmra.mrb[212].mxu0 %vm94_vm0, %v6038_v24 }
0x1a74   :  { %v7363_v54 = vpop.f32.mrb[212].mxu0 }
0x1a75   :  { %v6111_v22 = vadd.f32 %v7363_v54, %v6457_v63  ;;  %v6102_v51 = vpop.f32.mrb[213].mxu0 }
0x1a76   :  { %v6103_v46 = vadd.f32 %v6457_v63, %v6102_v51  ;;  %v7364_v34 = vpop.f32.mrb[214].mxu0 }
0x1a77   :  { %v6105_v38 = vpop.f32.mrb[215].mxu0  ;;  %v6118_v1 = vmax.f32 %v6111_v22, 0.0 }
0x1a78   :  { %v6106_v13 = vadd.f32 %v6457_v63, %v6105_v38  ;;  %v6116_v0 = vmax.f32 %v6103_v46, 0.0 }
0x1a79   :  { %v6120_v57 = vpack.c.bf16 %v6118_v1, %v6118_v1 }
0x1a7a   :  { %v6117_v23 = vmax.f32 %v6106_v13, 0.0 }
0x1a7c   :  { %v6119_v59 = vpack.c.bf16 %v6117_v23, %v6116_v0 }
0x1a7e   :  { %7381 = vmatprep.mubr.bf16.mxu1 %v6119_v59 }
0x1a7f   :  { %7382 = vmatmul.mubr.bf16.vlgmr.msra.gmra.mrb[204].mxu1 %v6120_v57 }
0x1b52   :  { %v7383_v52 = vpop.f32.mrb[204].mxu1 }
0x1b53   :  { %v6226_v17 = vpop.f32.mrb[205].mxu1  ;;  %v6235_v60 = vadd.f32 %v7383_v52, %v6462_v20 }
0x1b54   :  { %v6227_v61 = vadd.f32 %v6462_v20, %v6226_v17  ;;  %v7384_v10 = vpop.f32.mrb[206].mxu1 }
0x1b55   :  { %v6229_v15 = vpop.f32.mrb[207].mxu1  ;;  %v6242_v44 = vadd.f32 %v6235_v60, %v6036_v4 }
0x1b56   :  { %v6240_v53 = vadd.f32 %v6227_v61, %v6034_v12  ;;  %v6230_v8 = vadd.f32 %v6462_v20, %v6229_v15 }
0x1b57   :  { %v6251_v31 = vsel %vm94_vm0, %v6242_v44, 0.0 }
0x1b58   :  { %v6241_v39 = vadd.f32 %v6230_v8, %v6035_v50  ;;  %v6245_v14 = vsel %vm94_vm0, %v6240_v53, 0.0 }
0x1b59   :  { %6246 = vadd.xlane.f32.xlu1 %v6245_v14 }
0x1b5a   :  { %v6248_v9 = vsel %vm94_vm0, %v6241_v39, 0.0 }
0x1b5b   :  { %6249 = vadd.xlane.f32.xlu0 %v6248_v9 }
0x1b5d   :  { %6252 = vadd.xlane.f32.xlu1 %v6251_v31 }
0x1be6   :  { %v6247_v2 = vpop.xlane.xlu1 %6246 }
0x1be7   :  { %v6254_v42 = vmul.f32 0.03125, %v6247_v2 }
0x1be8   :  { %v6250_v30 = vpop.xlane.xlu0 %6249 }
0x1be9   :  { %v6257_v16 = vsub.f32 %v6240_v53, %v6254_v42  ;;  %v6255_v35 = vmul.f32 0.03125, %v6250_v30 }
0x1bea   :  { %v6253_v36 = vpop.xlane.xlu1 %6252 }
0x1beb   :  { %v6258_v47 = vsub.f32 %v6241_v39, %v6255_v35  ;;  %v6256_v37 = vmul.f32 0.03125, %v6253_v36  ;;  %v6260_v5 = vmul.f32 %v6257_v16, %v6257_v16 }
0x1bed   :  { %v6259_v45 = vsub.f32 %v6242_v44, %v6256_v37  ;;  %v6263_v26 = vsel %vm94_vm0, %v6260_v5, 0.0  ;;  %v6261_v49 = vmul.f32 %v6258_v47, %v6258_v47 }
0x1bee   :  { %6264 = vadd.xlane.f32.xlu0 %v6263_v26 }
0x1bef   :  { %v6266_v25 = vsel %vm94_vm0, %v6261_v49, 0.0  ;;  %v6262_v40 = vmul.f32 %v6259_v45, %v6259_v45 }
0x1bf0   :  { %6267 = vadd.xlane.f32.xlu1 %v6266_v25 }
0x1bf1   :  { %v6269_v27 = vsel %vm94_vm0, %v6262_v40, 0.0 }
0x1bf2   :  { %6270 = vadd.xlane.f32.xlu0 %v6269_v27 }
0x1c7b   :  { %v6265_v21 = vpop.xlane.xlu0 %6264 }
0x1c7c   :  { %v6272_v56 = vmul.f32 0.03125, %v6265_v21 }
0x1c7d   :  { %v6268_v3 = vpop.xlane.xlu1 %6267 }
0x1c7e   :  { %v6275_v43 = vadd.f32 1e-05, %v6272_v56  ;;  %v6273_v62 = vmul.f32 0.03125, %v6268_v3 }
0x1c7f   :  { %v6271_v33 = vpop.xlane.xlu0 %6270 }
0x1c80   :  { %7617 = vrsqrt.f32 %v6275_v43  ;;  %v6276_v55 = vadd.f32 1e-05, %v6273_v62  ;;  %v6274_v29 = vmul.f32 0.03125, %v6271_v33 }
0x1c82   :  { %7619 = vrsqrt.f32 %v6276_v55  ;;  %v6277_v32 = vadd.f32 1e-05, %v6274_v29 }
0x1c84   :  { %7621 = vrsqrt.f32 %v6277_v32 }
0x1c8a   :  { %v7618_v48 = vpop.eup %7617 }
0x1c8b   :  { %v6281_v7 = vmul.f32 %v7618_v48, %v6257_v16 }
0x1c8c   :  { %v7620_v28 = vpop.eup %7619 }
0x1c8d   :  { %v6288_v12 = vmul.f32 %v6471_v41, %v6281_v7  ;;  %v6282_v50 = vmul.f32 %v7620_v28, %v6258_v47 }
0x1c8e   :  { %v7622_v19 = vpop.eup %7621 }
0x1c8f   :  { %v6295_v6 = vadd.f32 %v6472_v18, %v6288_v12  ;;  %v6289_v4 = vmul.f32 %v6471_v41, %v6282_v50  ;;  %v6283_v24 = vmul.f32 %v7622_v19, %v6259_v45 }
0x1c91   :  { %v6476_v11 = vpack.c.bf16 %v6295_v6, %v6295_v6  ;;  %v6296_v58 = vadd.f32 %v6472_v18, %v6289_v4  ;;  %v6290_v63 = vmul.f32 %v6471_v41, %v6283_v24 }
0x1c93   :  { %6312 = vst.msk [vmem:[%s8914_s17] sm:$0xf] %vm6311_vm5, %v6476_v11  ;;  %v6477_v54 = vpack.c.bf16 %v6296_v58, %v6296_v58  ;;  %v6297_v22 = vadd.f32 %v6472_v18, %v6290_v63 }
0x1c95   :  { %6313 = vst.msk [vmem:[%s8914_s17 + $0x4] sm:$0xf] %vm6311_vm5, %v6477_v54  ;;  %v6478_v51 = vpack.c.bf16 %v6297_v22, %v6297_v22 }
0x1c97   :  { %6314 = vst.msk [vmem:[%s8914_s17 + $0x8] sm:$0xf] %vm6311_vm5, %v6478_v51 }

</bundles_post_ra>
